<compile_context>
chip_gen: v5e
topology: v5e:2x2
jax: 0.10.0
libtpu: 0.0.40
codegen_flags: <defaults>
</compile_context>

<pallas_src>
import jax
import jax.numpy as jnp
import numpy as np
from jax.experimental import pallas as pl
from jax.experimental.pallas import tpu as pltpu

N_CLASSES = 10
IMG_SHAPE = 28 * 28              # 784
IN_DIM = IMG_SHAPE + N_CLASSES   # 794
H1, H2, H3, OUT = 512, 512, 256, 1


def _leaky_relu(x, slope=0.2):
    return jnp.where(x > 0, x, slope * x)


def discriminator_kernel(img_ref, lab_ref,
                         w1a_ref, w1b_ref, b1_ref,
                         w2_ref, b2_ref,
                         w3_ref, b3_ref,
                         w4_ref, b4_ref,
                         o_ref):
    # img_ref: (TB, 784) f32, lab_ref: (TB, 10) f32.  Cast to bf16 here on the
    # VPU (hidden under MXU work) instead of a standalone XLA cast in HBM.
    img_bf = img_ref[...].astype(jnp.bfloat16)
    lab_bf = lab_ref[...].astype(jnp.bfloat16)

    # Layer 1: split 794-K matmul into aligned 784 + 10 pieces, fp32 accum.
    h = (jnp.dot(img_bf, w1a_ref[...], preferred_element_type=jnp.float32)
         + jnp.dot(lab_bf, w1b_ref[...], preferred_element_type=jnp.float32)
         + b1_ref[...])
    h = _leaky_relu(h)

    h = jnp.dot(h.astype(jnp.bfloat16), w2_ref[...],
                preferred_element_type=jnp.float32) + b2_ref[...]
    h = _leaky_relu(h)
    # Dropout(0.35) -> identity in eval mode.

    h = jnp.dot(h.astype(jnp.bfloat16), w3_ref[...],
                preferred_element_type=jnp.float32) + b3_ref[...]
    h = _leaky_relu(h)
    # Dropout(0.35) -> identity in eval mode.

    # Final 256 -> 1 layer as a lane reduction on the VPU/XLU (idle slots here)
    # instead of a 1-output-column MXU matmul with 127/128 lanes wasted.
    w4_row = w4_ref[...].astype(jnp.float32)                      # (1, 256)
    logit = jnp.sum(h * w4_row, axis=-1, keepdims=True) + b4_ref[...]
    o_ref[...] = jax.nn.sigmoid(logit)


def init_params(key):
    """Deterministic parameter init (shapes match the PyTorch module)."""
    ks = jax.random.split(key, 9)

    def linear(kw, fan_in, fan_out):
        bound = 1.0 / np.sqrt(fan_in)
        w = jax.random.uniform(kw, (fan_in, fan_out), jnp.float32, -bound, bound)
        b = jnp.zeros((1, fan_out), jnp.float32)
        return w, b

    embed = jax.random.normal(ks[0], (N_CLASSES, N_CLASSES), jnp.float32)
    w1, b1 = linear(ks[1], IN_DIM, H1)
    w2, b2 = linear(ks[2], H1, H2)
    w3, b3 = linear(ks[3], H2, H3)
    w4, b4 = linear(ks[4], H3, OUT)
    return dict(embed=embed, w1=w1, b1=b1, w2=w2, b2=b2,
                w3=w3, b3=b3, w4=w4, b4=b4)


def _batch_tile(B):
    # v6e/v7x MXU is 2x256^2 -> use 256-row multiples, and keep >=2 grid steps
    # when the batch allows so dimension_semantics=("parallel",) gives both
    # v7x TensorCores work.  Per-step overhead (~0.35 us) stays well below the
    # per-tile MXU time at these sizes, and VMEM is ample even at TB=512.
    if B >= 1024:
        return 512
    if B >= 512:
        return 256
    if B >= 256:
        return 128
    # Small batches: a single tile, rounded to a multiple of 16 (sublane
    # packing for the in-kernel bf16 operands).
    return max(16, -(-B // 16) * 16)


def discriminator_forward(params, lab, img):
    """lab: int32 (B,), img: float32 (B, 1, 28, 28) NCHW."""
    B = img.shape[0]

    # Glue in plain JAX: embedding lookup + flatten (layout-only, cheap).
    # (On v5e one could also fold the 10-wide label matmul into a gathered
    #  (B,512) table here; skipped -- it adds HBM traffic on v6e/v7x.)
    label_vec = jnp.take(params["embed"], lab, axis=0)             # (B, 10) f32
    img_flat = img.reshape(B, -1)                                  # (B, 784) f32

    TB = _batch_tile(B)
    Bp = -(-B // TB) * TB
    if Bp != B:
        img_flat = jnp.pad(img_flat, ((0, Bp - B), (0, 0)))
        label_vec = jnp.pad(label_vec, ((0, Bp - B), (0, 0)))

    # bf16 weights (MXU-native), f32 biases.  Activations stay f32 in HBM and
    # are cast to bf16 inside the kernel.
    w1a = params["w1"][:IMG_SHAPE].astype(jnp.bfloat16)            # (784, 512)
    w1b = params["w1"][IMG_SHAPE:].astype(jnp.bfloat16)            # (10, 512)
    w2 = params["w2"].astype(jnp.bfloat16)
    w3 = params["w3"].astype(jnp.bfloat16)
    w4_row = params["w4"].T.astype(jnp.bfloat16)                   # (1, 256)

    # Weights/biases: same block every grid step -> VMEM-resident; single
    # buffer (double-buffering a constant-index block is wasted VMEM).
    def resident(shape):
        return pl.BlockSpec(shape, lambda i: tuple(0 for _ in shape),
                            pipeline_mode=pl.Buffered(1))

    out = pl.pallas_call(
        discriminator_kernel,
        out_shape=jax.ShapeDtypeStruct((Bp, OUT), jnp.float32),
        grid=(Bp // TB,),
        in_specs=[
            pl.BlockSpec((TB, IMG_SHAPE), lambda i: (i, 0)),
            pl.BlockSpec((TB, N_CLASSES), lambda i: (i, 0)),
            resident((IMG_SHAPE, H1)), resident((N_CLASSES, H1)), resident((1, H1)),
            resident((H1, H2)), resident((1, H2)),
            resident((H2, H3)), resident((1, H3)),
            resident((1, H3)), resident((1, OUT)),
        ],
        out_specs=pl.BlockSpec((TB, OUT), lambda i: (i, 0)),
        compiler_params=pltpu.CompilerParams(
            dimension_semantics=("parallel",),
            vmem_limit_bytes=32 << 20),
    )(img_flat, label_vec,
      w1a, w1b, params["b1"],
      w2, params["b2"],
      w3, params["b3"],
      w4_row, params["b4"])

    return out[:B]


def reference_forward(params, lab, img):
    """Pure-JAX reference.  Weights are quantized to bf16 (as in the kernel);
    activations stay fp32, so the comparison isolates kernel correctness."""
    B = img.shape[0]
    q = lambda w: w.astype(jnp.bfloat16).astype(jnp.float32)
    label_vec = jnp.take(params["embed"], lab, axis=0)
    x = jnp.concatenate([img.reshape(B, -1), label_vec], axis=1).astype(jnp.float32)
    h = _leaky_relu(x @ q(params["w1"]) + params["b1"])
    h = _leaky_relu(h @ q(params["w2"]) + params["b2"])
    h = _leaky_relu(h @ q(params["w3"]) + params["b3"])
    return jax.nn.sigmoid(h @ q(params["w4"]) + params["b4"])


if __name__ == "__main__":
    key = jax.random.PRNGKey(0)
    k_param, k_data = jax.random.split(key)

    params = init_params(k_param)

    # B=8: single small tile.  B=272: multi-step grid (TB=128, padded to 384),
    # exercises the pipelined path and batch-padding slice-off.
    for B in (8, 272):
        k_i, k_l = jax.random.split(jax.random.fold_in(k_data, B))
        img = jax.random.normal(k_i, (B, 1, 28, 28), jnp.float32)  # NCHW like PyTorch
        lab = jax.random.randint(k_l, (B,), 0, N_CLASSES, jnp.int32)

        out = jax.block_until_ready(discriminator_forward(params, lab, img))
        ref = jax.block_until_ready(reference_forward(params, lab, img))

        assert out.shape == (B, 1), out.shape
        # bf16 streamed activations in the kernel vs fp32 activations in the
        # reference -> loose tolerance (sigmoid outputs are in (0, 1)).
        np.testing.assert_allclose(np.asarray(out), np.asarray(ref),
                                   rtol=0.0, atol=2e-2)

    print("KERNEL_OK")
</pallas_src>

<mosaic_0001>
module attributes {stable_mosaic.version = 11 : i64} {
  func.func @discriminator_kernel(%arg0: i32, %arg1: memref<16x784xf32, #tpu.memory_space<vmem>>, %arg2: memref<16x10xf32, #tpu.memory_space<vmem>>, %arg3: memref<784x512xbf16, #tpu.memory_space<vmem>>, %arg4: memref<10x512xbf16, #tpu.memory_space<vmem>>, %arg5: memref<1x512xf32, #tpu.memory_space<vmem>>, %arg6: memref<512x512xbf16, #tpu.memory_space<vmem>>, %arg7: memref<1x512xf32, #tpu.memory_space<vmem>>, %arg8: memref<512x256xbf16, #tpu.memory_space<vmem>>, %arg9: memref<1x256xf32, #tpu.memory_space<vmem>>, %arg10: memref<1x256xbf16, #tpu.memory_space<vmem>>, %arg11: memref<1x1xf32, #tpu.memory_space<vmem>>, %arg12: memref<16x1xf32, #tpu.memory_space<vmem>>) attributes {dimension_semantics = [#tpu.dimension_semantics<parallel>], iteration_bounds = array<i64: 1>, scalar_prefetch = 0 : i64, scratch_operands = 0 : i64, tpu.core_type = #tpu.core_type<tc>, window_params = [{transform_indices = @transform_0, window_bounds = array<i64: 16, 784>}, {transform_indices = @transform_1, window_bounds = array<i64: 16, 10>}, {pipeline_mode = #tpu.pipeline_mode<synchronous>, transform_indices = @transform_2, window_bounds = array<i64: 784, 512>}, {pipeline_mode = #tpu.pipeline_mode<synchronous>, transform_indices = @transform_3, window_bounds = array<i64: 10, 512>}, {pipeline_mode = #tpu.pipeline_mode<synchronous>, transform_indices = @transform_4, window_bounds = array<i64: 1, 512>}, {pipeline_mode = #tpu.pipeline_mode<synchronous>, transform_indices = @transform_5, window_bounds = array<i64: 512, 512>}, {pipeline_mode = #tpu.pipeline_mode<synchronous>, transform_indices = @transform_6, window_bounds = array<i64: 1, 512>}, {pipeline_mode = #tpu.pipeline_mode<synchronous>, transform_indices = @transform_7, window_bounds = array<i64: 512, 256>}, {pipeline_mode = #tpu.pipeline_mode<synchronous>, transform_indices = @transform_8, window_bounds = array<i64: 1, 256>}, {pipeline_mode = #tpu.pipeline_mode<synchronous>, transform_indices = @transform_9, window_bounds = array<i64: 1, 256>}, {pipeline_mode = #tpu.pipeline_mode<synchronous>, transform_indices = @transform_10, window_bounds = array<i64: 1, 1>}, {transform_indices = @transform_11, window_bounds = array<i64: 16, 1>}]} {
    %c0 = arith.constant 0 : index
    %c0_0 = arith.constant 0 : index
    %0 = vector.load %arg1[%c0, %c0_0] : memref<16x784xf32, #tpu.memory_space<vmem>>, vector<16x784xf32>
    %1 = arith.truncf %0 : vector<16x784xf32> to vector<16x784xbf16>
    %c0_1 = arith.constant 0 : index
    %c0_2 = arith.constant 0 : index
    %2 = vector.load %arg2[%c0_1, %c0_2] : memref<16x10xf32, #tpu.memory_space<vmem>>, vector<16x10xf32>
    %3 = arith.truncf %2 : vector<16x10xf32> to vector<16x10xbf16>
    %c0_3 = arith.constant 0 : index
    %c0_4 = arith.constant 0 : index
    %4 = vector.load %arg3[%c0_3, %c0_4] : memref<784x512xbf16, #tpu.memory_space<vmem>>, vector<784x512xbf16>
    %cst = arith.constant dense<0.000000e+00> : vector<16x512xf32>
    %5 = tpu.matmul %1, %4, %cst {dimension_numbers = #tpu.dot_dimension_numbers<[1], [0], [0], [1], [0, 0, 1, 1], [], []>} : vector<16x784xbf16>, vector<784x512xbf16>, vector<16x512xf32> -> vector<16x512xf32>
    %c0_5 = arith.constant 0 : index
    %c0_6 = arith.constant 0 : index
    %6 = vector.load %arg4[%c0_5, %c0_6] : memref<10x512xbf16, #tpu.memory_space<vmem>>, vector<10x512xbf16>
    %cst_7 = arith.constant dense<0.000000e+00> : vector<16x512xf32>
    %7 = tpu.matmul %3, %6, %cst_7 {dimension_numbers = #tpu.dot_dimension_numbers<[1], [0], [0], [1], [0, 0, 1, 1], [], []>} : vector<16x10xbf16>, vector<10x512xbf16>, vector<16x512xf32> -> vector<16x512xf32>
    %8 = arith.addf %5, %7 : vector<16x512xf32>
    %c0_8 = arith.constant 0 : index
    %c0_9 = arith.constant 0 : index
    %9 = vector.load %arg5[%c0_8, %c0_9] : memref<1x512xf32, #tpu.memory_space<vmem>>, vector<1x512xf32>
    %10 = vector.broadcast %9 : vector<1x512xf32> to vector<16x512xf32>
    %11 = arith.addf %8, %10 : vector<16x512xf32>
    %cst_10 = arith.constant 0.000000e+00 : f32
    %12 = vector.broadcast %cst_10 : f32 to vector<16x512xf32>
    %13 = arith.cmpf ogt, %11, %12 : vector<16x512xf32>
    %cst_11 = arith.constant 2.000000e-01 : f32
    %14 = vector.broadcast %cst_11 : f32 to vector<16x512xf32>
    %15 = arith.mulf %14, %11 : vector<16x512xf32>
    %16 = arith.select %13, %11, %15 : vector<16x512xi1>, vector<16x512xf32>
    %17 = arith.truncf %16 : vector<16x512xf32> to vector<16x512xbf16>
    %c0_12 = arith.constant 0 : index
    %c0_13 = arith.constant 0 : index
    %18 = vector.load %arg6[%c0_12, %c0_13] : memref<512x512xbf16, #tpu.memory_space<vmem>>, vector<512x512xbf16>
    %cst_14 = arith.constant dense<0.000000e+00> : vector<16x512xf32>
    %19 = tpu.matmul %17, %18, %cst_14 {dimension_numbers = #tpu.dot_dimension_numbers<[1], [0], [0], [1], [0, 0, 1, 1], [], []>} : vector<16x512xbf16>, vector<512x512xbf16>, vector<16x512xf32> -> vector<16x512xf32>
    %c0_15 = arith.constant 0 : index
    %c0_16 = arith.constant 0 : index
    %20 = vector.load %arg7[%c0_15, %c0_16] : memref<1x512xf32, #tpu.memory_space<vmem>>, vector<1x512xf32>
    %21 = vector.broadcast %20 : vector<1x512xf32> to vector<16x512xf32>
    %22 = arith.addf %19, %21 : vector<16x512xf32>
    %cst_17 = arith.constant 0.000000e+00 : f32
    %23 = vector.broadcast %cst_17 : f32 to vector<16x512xf32>
    %24 = arith.cmpf ogt, %22, %23 : vector<16x512xf32>
    %cst_18 = arith.constant 2.000000e-01 : f32
    %25 = vector.broadcast %cst_18 : f32 to vector<16x512xf32>
    %26 = arith.mulf %25, %22 : vector<16x512xf32>
    %27 = arith.select %24, %22, %26 : vector<16x512xi1>, vector<16x512xf32>
    %28 = arith.truncf %27 : vector<16x512xf32> to vector<16x512xbf16>
    %c0_19 = arith.constant 0 : index
    %c0_20 = arith.constant 0 : index
    %29 = vector.load %arg8[%c0_19, %c0_20] : memref<512x256xbf16, #tpu.memory_space<vmem>>, vector<512x256xbf16>
    %cst_21 = arith.constant dense<0.000000e+00> : vector<16x256xf32>
    %30 = tpu.matmul %28, %29, %cst_21 {dimension_numbers = #tpu.dot_dimension_numbers<[1], [0], [0], [1], [0, 0, 1, 1], [], []>} : vector<16x512xbf16>, vector<512x256xbf16>, vector<16x256xf32> -> vector<16x256xf32>
    %c0_22 = arith.constant 0 : index
    %c0_23 = arith.constant 0 : index
    %31 = vector.load %arg9[%c0_22, %c0_23] : memref<1x256xf32, #tpu.memory_space<vmem>>, vector<1x256xf32>
    %32 = vector.broadcast %31 : vector<1x256xf32> to vector<16x256xf32>
    %33 = arith.addf %30, %32 : vector<16x256xf32>
    %cst_24 = arith.constant 0.000000e+00 : f32
    %34 = vector.broadcast %cst_24 : f32 to vector<16x256xf32>
    %35 = arith.cmpf ogt, %33, %34 : vector<16x256xf32>
    %cst_25 = arith.constant 2.000000e-01 : f32
    %36 = vector.broadcast %cst_25 : f32 to vector<16x256xf32>
    %37 = arith.mulf %36, %33 : vector<16x256xf32>
    %38 = arith.select %35, %33, %37 : vector<16x256xi1>, vector<16x256xf32>
    %c0_26 = arith.constant 0 : index
    %c0_27 = arith.constant 0 : index
    %39 = vector.load %arg10[%c0_26, %c0_27] : memref<1x256xbf16, #tpu.memory_space<vmem>>, vector<1x256xbf16>
    %40 = arith.extf %39 : vector<1x256xbf16> to vector<1x256xf32>
    %41 = vector.broadcast %40 : vector<1x256xf32> to vector<16x256xf32>
    %42 = arith.mulf %38, %41 : vector<16x256xf32>
    %cst_28 = arith.constant dense<0.000000e+00> : vector<16xf32>
    %43 = vector.multi_reduction <add>, %42, %cst_28 [1] : vector<16x256xf32> to vector<16xf32>
    %44 = vector.shape_cast %43 : vector<16xf32> to vector<16x1xf32>
    %c0_29 = arith.constant 0 : index
    %c0_30 = arith.constant 0 : index
    %45 = vector.load %arg11[%c0_29, %c0_30] : memref<1x1xf32, #tpu.memory_space<vmem>>, vector<1x1xf32>
    %46 = vector.broadcast %45 : vector<1x1xf32> to vector<16x1xf32>
    %47 = arith.addf %44, %46 : vector<16x1xf32>
    %48 = arith.negf %47 : vector<16x1xf32>
    %49 = math.exp %48 : vector<16x1xf32>
    %cst_31 = arith.constant 1.000000e+00 : f32
    %50 = vector.broadcast %cst_31 : f32 to vector<16x1xf32>
    %51 = arith.addf %50, %49 : vector<16x1xf32>
    %52 = arith.divf %50, %51 : vector<16x1xf32>
    %c0_32 = arith.constant 0 : index
    %c0_33 = arith.constant 0 : index
    %53 = vector.load %arg12[%c0_32, %c0_33] : memref<16x1xf32, #tpu.memory_space<vmem>>, vector<16x1xf32>
    tpu.vector_store %arg12[%c0_32, %c0_33], %52 {strides = array<i32>} : memref<16x1xf32, #tpu.memory_space<vmem>>, vector<16x1xf32>,
    return
  }
  func.func @transform_0(%arg0: i32) -> (i32, i32) {
    %c0_i32 = arith.constant 0 : i32
    %c0_i32_0 = arith.constant 0 : i32
    return %arg0, %c0_i32 : i32, i32
  }
  func.func @transform_1(%arg0: i32) -> (i32, i32) {
    %c0_i32 = arith.constant 0 : i32
    %c0_i32_0 = arith.constant 0 : i32
    return %arg0, %c0_i32 : i32, i32
  }
  func.func @transform_2(%arg0: i32) -> (i32, i32) {
    %c0_i32 = arith.constant 0 : i32
    %c0_i32_0 = arith.constant 0 : i32
    %c0_i32_1 = arith.constant 0 : i32
    return %c0_i32, %c0_i32_0 : i32, i32
  }
  func.func @transform_3(%arg0: i32) -> (i32, i32) {
    %c0_i32 = arith.constant 0 : i32
    %c0_i32_0 = arith.constant 0 : i32
    %c0_i32_1 = arith.constant 0 : i32
    return %c0_i32, %c0_i32_0 : i32, i32
  }
  func.func @transform_4(%arg0: i32) -> (i32, i32) {
    %c0_i32 = arith.constant 0 : i32
    %c0_i32_0 = arith.constant 0 : i32
    %c0_i32_1 = arith.constant 0 : i32
    return %c0_i32, %c0_i32_0 : i32, i32
  }
  func.func @transform_5(%arg0: i32) -> (i32, i32) {
    %c0_i32 = arith.constant 0 : i32
    %c0_i32_0 = arith.constant 0 : i32
    %c0_i32_1 = arith.constant 0 : i32
    return %c0_i32, %c0_i32_0 : i32, i32
  }
  func.func @transform_6(%arg0: i32) -> (i32, i32) {
    %c0_i32 = arith.constant 0 : i32
    %c0_i32_0 = arith.constant 0 : i32
    %c0_i32_1 = arith.constant 0 : i32
    return %c0_i32, %c0_i32_0 : i32, i32
  }
  func.func @transform_7(%arg0: i32) -> (i32, i32) {
    %c0_i32 = arith.constant 0 : i32
    %c0_i32_0 = arith.constant 0 : i32
    %c0_i32_1 = arith.constant 0 : i32
    return %c0_i32, %c0_i32_0 : i32, i32
  }
  func.func @transform_8(%arg0: i32) -> (i32, i32) {
    %c0_i32 = arith.constant 0 : i32
    %c0_i32_0 = arith.constant 0 : i32
    %c0_i32_1 = arith.constant 0 : i32
    return %c0_i32, %c0_i32_0 : i32, i32
  }
  func.func @transform_9(%arg0: i32) -> (i32, i32) {
    %c0_i32 = arith.constant 0 : i32
    %c0_i32_0 = arith.constant 0 : i32
    %c0_i32_1 = arith.constant 0 : i32
    return %c0_i32, %c0_i32_0 : i32, i32
  }
  func.func @transform_10(%arg0: i32) -> (i32, i32) {
    %c0_i32 = arith.constant 0 : i32
    %c0_i32_0 = arith.constant 0 : i32
    %c0_i32_1 = arith.constant 0 : i32
    return %c0_i32, %c0_i32_0 : i32, i32
  }
  func.func @transform_11(%arg0: i32) -> (i32, i32) {
    %c0_i32 = arith.constant 0 : i32
    %c0_i32_0 = arith.constant 0 : i32
    return %arg0, %c0_i32 : i32, i32
  }
}

</mosaic_0001>

<bundles_post_ra>
// kernel: tpu_custom_call.1
= control target key start
LH: loop header
LB: loop body
LE: loop exit
PB: predicated region body
PF: predicated region fallthrough
CT: control target
= control target key end

     0   :  { %s5934_s0 = inlined_call_operand.hbm [shape: f32[16,784], index: 0, kind: input, shape index: {}]   ;;  %s5935_s1 = inlined_call_operand.hbm [shape: f32[16,10], index: 1, kind: input, shape index: {}]   ;;  %s5936_s2 = inlined_call_operand.hbm [shape: bf16[784,512], index: 2, kind: input, shape index: {}]   ;;  %s5937_s3 = inlined_call_operand.hbm [shape: bf16[10,512], index: 3, kind: input, shape index: {}]   ;;  %s5938_s4 = inlined_call_operand.vmem [shape: f32[1,512], index: 4, kind: input, shape index: {}]   ;;  %s5939_s5 = inlined_call_operand.hbm [shape: bf16[512,512], index: 5, kind: input, shape index: {}]   ;;  %s5940_s6 = inlined_call_operand.hbm [shape: f32[1,512], index: 6, kind: input, shape index: {}]   ;;  %s5941_s7 = inlined_call_operand.hbm [shape: bf16[512,256], index: 7, kind: input, shape index: {}]   ;;  %s5942_s8 = inlined_call_operand.vmem [shape: f32[1,256], index: 8, kind: input, shape index: {}]   ;;  %s5943_s9 = inlined_call_operand.vmem [shape: bf16[1,256], index: 9, kind: input, shape index: {}]   ;;  %s5944_s10 = inlined_call_operand.<no memory space> [shape: f32[1,1], index: 10, kind: input, shape index: {}]   ;;  %s5945_s11 = inlined_call_operand.vmem [shape: f32[16,1], index: 11, kind: output, shape index: {}]  }
   0x1   :  { %v16_v0 = vstv %s5944_s10 }
   0x2   :  { %17 = vst [vmem:[#allocation2] sm:$0x1] %v16_v0 }
   0x3   :  { %18 = vsyncpa [#allocation4], 0 }
   0x4   :  { %19 = vsyncpa [#allocation6], 0 }
   0x5   :  { %20 = vsyncpa [#allocation9], 0  ;;  %s39_s21 = sshll.u32 %s5935_s1, 4  ;;  %s40_s21 = int_to_ptr.hbm [resolvable:$true] %s39_s21 }
   0x6   :  { %21 = vsyncpa [#allocation12], 0  ;;  %s5669_s22 = smov [#allocation5]   ;;  %s5670_s24 = smov 128  }
   0x7   :  { %s41_s23 = sshll.u32 %s5669_s22, 4  ;;  %s5671_s25 = smov 8   ;;  %s42_s23 = int_to_ptr.vmem [resolvable:$true] %s41_s23 }
   0x8   :  { %47 = dma.hbm_to_vmem [thread:$0]  %s40_s21, 256, %s42_s23, [#allocation6], %s5670_s24, %s5670_s24, %s5671_s25  }
   0x9   :  { %s65_s27 = sshll.u32 %s5937_s3, 4  ;;  %s5672_s28 = smov [#allocation8]   ;;  %s66_s27 = int_to_ptr.hbm [resolvable:$true] %s65_s27 }
   0xa   :  { %s67_s29 = sshll.u32 %s5672_s28, 4  ;;  %s94_s12 = sshll.u32 %s5940_s6, 4  ;;  %s68_s29 = int_to_ptr.vmem [resolvable:$true] %s67_s29  ;;  %s95_s12 = int_to_ptr.hbm [resolvable:$true] %s94_s12 }
   0xb   :  { %s5673_s13 = smov 256   ;;  %s5674_s14 = smov 16  }
   0xc   :  { %73 = dma.hbm_to_vmem [thread:$0]  %s66_s27, 512, %s68_s29, [#allocation9], %s5673_s13, %s5673_s13, %s5674_s14  }
   0xd   :  { %s26_s17 = sshll.u32 %s5934_s0, 4  ;;  %s5675_s3 = smov [#allocation11]   ;;  %s27_s17 = int_to_ptr.hbm [resolvable:$true] %s26_s17 }
   0xe   :  { %s96_s18 = sshll.u32 %s5675_s3, 4  ;;  %s5676_s19 = smov [#allocation3]   ;;  %s97_s18 = int_to_ptr.vmem [resolvable:$true] %s96_s18 }
   0xf   :  { %99 = dma.hbm_to_vmem [thread:$0]  %s95_s12, 64, %s97_s18, [#allocation12]  }
  0x10   :  { %s28_s20 = sshll.u32 %s5676_s19, 4  ;;  %s5677_s6 = smov 896   ;;  %s29_s20 = int_to_ptr.vmem [resolvable:$true] %s28_s20 }
  0x11   :  { %s5678_s21 = smov 56   ;;  %s52_s10 = sshll.u32 %s5936_s2, 4  ;;  %s53_s10 = int_to_ptr.hbm [resolvable:$true] %s52_s10 }
  0x12   :  { %34 = dma.hbm_to_vmem [thread:$0]  %s27_s17, 1792, %s29_s20, [#allocation4], %s5677_s6, %s5677_s6, %s5678_s21  }
  0x13   :  { %s5679_s26 = smov [#allocation7]   ;;  %s80_s29 = sshll.u32 %s5939_s5, 4  ;;  %s81_s29 = int_to_ptr.hbm [resolvable:$true] %s80_s29 }
  0x14   :  { %s54_s27 = sshll.u32 %s5679_s26, 4  ;;  %s5680_s30 = smov [#allocation10]   ;;  %s55_s27 = int_to_ptr.vmem [resolvable:$true] %s54_s27 }
  0x15   :  { %60 = dma.hbm_to_vmem [thread:$0]  %s53_s10, 25088, %s55_s27, [#allocation6], %s5673_s13, %s5673_s13, %s5674_s14  }
  0x16   :  { %s82_s1 = sshll.u32 %s5680_s30, 4  ;;  %s104_s16 = sshll.u32 %s5941_s7, 4  ;;  %s83_s1 = int_to_ptr.vmem [resolvable:$true] %s82_s1  ;;  %s105_s16 = int_to_ptr.hbm [resolvable:$true] %s104_s16 }
  0x17   :  { %88 = dma.hbm_to_vmem [thread:$0]  %s81_s29, 16384, %s83_s1, [#allocation9], %s5673_s13, %s5673_s13, %s5674_s14  }
  0x18   :  { %s5681_s2 = smov [#allocation13]  }
  0x19   :  { %s106_s17 = sshll.u32 %s5681_s2, 4  ;;  %s107_s17 = int_to_ptr.vmem [resolvable:$true] %s106_s17 }
  0x1a   :  { %112 = dma.hbm_to_vmem [thread:$0]  %s105_s16, 8192, %s107_s17, [#allocation12], %s5670_s24, %s5670_s24, %s5671_s25  }
  0x1b   :  { %5661 = dma.done.wait [#allocation4], 1792  }
  0x1c   :  { %5662 = vsyncadd [#allocation4], 4294965504 }
  0x1d   :  { %5663 = dma.done.wait [#allocation6], 25344  }
  0x1e   :  { %5664 = vsyncadd [#allocation6], 4294941952 }
  0x1f   :  { %5665 = dma.done.wait [#allocation9], 16896  }
  0x20   :  { %5666 = vsyncadd [#allocation9], 4294950400 }
  0x21   :  { %5667 = dma.done.wait [#allocation12], 8256  }
  0x22   :  { %5668 = vsyncadd [#allocation12], 4294959040  ;;  %vm392_vm0 = vcmask 1044480   ;;  %vm388_vm1 = vcmask 80896   ;;  %v3503_v1 = vld [vmem:[#allocation8] sm:$0xf] }
  0x23   :  { %v5277_v2 = vld [vmem:[#allocation8 + $0xc] sm:$0x10]  ;;  %v5275_v3 = vld [vmem:[#allocation8 + $0x4] sm:$0xf]  ;;  %v3505_v5 = vld [vmem:[#allocation8 + $0x10] sm:$0x10] }
  0x24   :  { %v3504_v4 = vor.u32 %v5277_v2, %v3503_v1  ;;  %v3511_v6 = vld [vmem:[#allocation8 + $0x8] sm:$0xf]  ;;  %v5278_v7 = vld [vmem:[#allocation8 + $0x14] sm:$0x10]  ;;  %v3508_v8 = vor.u32 %v5275_v3, %v3505_v5  ;;  %v5276_v10 = vld [vmem:[#allocation8 + $0xc] sm:$0xf] }
  0x25   :  { %v3512_v9 = vor.u32 %v5278_v7, %v3511_v6  ;;  %v3513_v11 = vld [vmem:[#allocation8 + $0x18] sm:$0x10]  ;;  %v3635_v12 = vld [vmem:[#allocation7 + $0xe0] sm:$0xf]  ;;  %v5109_v15 = vld [vmem:[#allocation7 + $0xec] sm:$0xf0] }
  0x26   :  { %v394_v13 = vsel %vm392_vm0, %v3504_v4, 0  ;;  %v3516_v14 = vor.u32 %v5276_v10, %v3513_v11  ;;  %v3763_v16 = vld [vmem:[#allocation7 + $0x1e0] sm:$0xf]  ;;  %v169_v17 = vld [vmem:[#allocation5] sm:$0xff]  ;;  %v397_v18 = vsel %vm392_vm0, %v3508_v8, 0  ;;  %v3636_v20 = vor.u32 %v5109_v15, %v3635_v12  ;;  %v170_v27 = vld [vmem:[#allocation5 + $0x8] sm:$0xff] }
  0x27   :  { %412 = vmatpush.bf16.msra.mxu0 %v394_v13  ;;  %v400_v19 = vsel %vm392_vm0, %v3512_v9, 0  ;;  %v5141_v21 = vld [vmem:[#allocation7 + $0x1ec] sm:$0xf0]  ;;  %v3891_v22 = vld [vmem:[#allocation7 + $0x2e0] sm:$0xf]  ;;  %426 = vmatpush.bf16.msra.mxu1 %v397_v18  ;;  %v171_v32 = vpack.c.bf16 %v170_v27, %v169_v17  ;;  %vm1441_vm2 = vcmask 130048  }
  0x28   :  { %440 = vmatpush.bf16.msra.mxu2 %v400_v19  ;;  %v403_v23 = vsel %vm392_vm0, %v3516_v14, 0  ;;  %v3764_v24 = vor.u32 %v5141_v21, %v3763_v16  ;;  %v5173_v25 = vld [vmem:[#allocation7 + $0x2ec] sm:$0xf0]  ;;  %v4019_v26 = vld [vmem:[#allocation7 + $0x3e0] sm:$0xf] }
  0x29   :  { %454 = vmatpush.bf16.msra.mxu3 %v403_v23  ;;  %v3892_v28 = vor.u32 %v5173_v25, %v3891_v22  ;;  %v5205_v29 = vld [vmem:[#allocation7 + $0x3ec] sm:$0xf0]  ;;  %v3619_v30 = vld [vmem:[#allocation7 + $0xc0] sm:$0xf] }
  0x2a   :  { %v5105_v31 = vld [vmem:[#allocation7 + $0xcc] sm:$0xf0]  ;;  %v4020_v33 = vor.u32 %v5205_v29, %v4019_v26  ;;  %v3747_v35 = vld [vmem:[#allocation7 + $0x1c0] sm:$0xf]  ;;  %3517 = vmatmul.msk.bf16.vlgmr.msra.gmra.mxu0 %vm388_vm1, %v171_v32  ;;  %3518 = vmatmul.msk.bf16.vlgmr.msra.gmra.mxu1 %vm388_vm1, %v171_v32 }
  0x2b   :  { %1445 = vmatpush.bf16.msrb.mxu0 %v3636_v20  ;;  %1459 = vmatpush.bf16.msrb.mxu1 %v3764_v24  ;;  %v3620_v34 = vor.u32 %v5105_v31, %v3619_v30  ;;  %v5137_v36 = vld [vmem:[#allocation7 + $0x1cc] sm:$0xf0]  ;;  %v3875_v37 = vld [vmem:[#allocation7 + $0x2c0] sm:$0xf] }
  0x2c   :  { %1473 = vmatpush.bf16.msrb.mxu2 %v3892_v28  ;;  %v3748_v38 = vor.u32 %v5137_v36, %v3747_v35  ;;  %v5169_v39 = vld [vmem:[#allocation7 + $0x2cc] sm:$0xf0]  ;;  %v4003_v40 = vld [vmem:[#allocation7 + $0x3c0] sm:$0xf]  ;;  %3520 = vmatmul.msk.bf16.vlgmr.msra.gmra.mxu3 %vm388_vm1, %v171_v32 }
  0x2d   :  { %v5201_v41 = vld [vmem:[#allocation7 + $0x3cc] sm:$0xf0]  ;;  %1487 = vmatpush.bf16.msrb.mxu3 %v4020_v33  ;;  %v3876_v42 = vor.u32 %v5169_v39, %v3875_v37  ;;  %v3603_v44 = vld [vmem:[#allocation7 + $0xa0] sm:$0xf]  ;;  %3519 = vmatmul.msk.bf16.vlgmr.msra.gmra.mxu2 %vm388_vm1, %v171_v32 }
  0x2e   :  { %v4004_v43 = vor.u32 %v5201_v41, %v4003_v40  ;;  %v5101_v45 = vld [vmem:[#allocation7 + $0xac] sm:$0xf0]  ;;  %v3731_v46 = vld [vmem:[#allocation7 + $0x1a0] sm:$0xf] }
  0x2f   :  { %1446 = vmatpush.bf16.msrb.mxu0 %v3620_v34  ;;  %v3604_v47 = vor.u32 %v5101_v45, %v3603_v44  ;;  %v5133_v48 = vld [vmem:[#allocation7 + $0x1ac] sm:$0xf0]  ;;  %v3859_v49 = vld [vmem:[#allocation7 + $0x2a0] sm:$0xf]  ;;  %1460 = vmatpush.bf16.msrb.mxu1 %v3748_v38 }
  0x30   :  { %v5165_v50 = vld [vmem:[#allocation7 + $0x2ac] sm:$0xf0]  ;;  %v3732_v51 = vor.u32 %v5133_v48, %v3731_v46  ;;  %v3987_v52 = vld [vmem:[#allocation7 + $0x3a0] sm:$0xf]  ;;  %1474 = vmatpush.bf16.msrb.mxu2 %v3876_v42 }
  0x31   :  { %v5197_v53 = vld [vmem:[#allocation7 + $0x3ac] sm:$0xf0]  ;;  %v3587_v54 = vld [vmem:[#allocation7 + $0x80] sm:$0xf]  ;;  %v3860_v55 = vor.u32 %v5165_v50, %v3859_v49  ;;  %1488 = vmatpush.bf16.msrb.mxu3 %v4004_v43 }
  0x32   :  { %v5097_v56 = vld [vmem:[#allocation7 + $0x8c] sm:$0xf0]  ;;  %v3715_v57 = vld [vmem:[#allocation7 + $0x180] sm:$0xf]  ;;  %v3988_v59 = vor.u32 %v5197_v53, %v3987_v52  ;;  %v5107_v52 = vld [vmem:[#allocation7 + $0xe4] sm:$0xf] }
  0x33   :  { %v5129_v58 = vld [vmem:[#allocation7 + $0x18c] sm:$0xf0]  ;;  %v3843_v60 = vld [vmem:[#allocation7 + $0x280] sm:$0xf]  ;;  %1447 = vmatpush.bf16.msrb.mxu0 %v3604_v47  ;;  %v3588_v62 = vor.u32 %v5097_v56, %v3587_v54  ;;  %1461 = vmatpush.bf16.msrb.mxu1 %v3732_v51  ;;  %v3637_v53 = vld [vmem:[#allocation7 + $0xf0] sm:$0xf0] }
  0x34   :  { %v5161_v61 = vld [vmem:[#allocation7 + $0x28c] sm:$0xf0]  ;;  %v3971_v63 = vld [vmem:[#allocation7 + $0x380] sm:$0xf]  ;;  %v3716_v1 = vor.u32 %v5129_v58, %v3715_v57  ;;  %1475 = vmatpush.bf16.msrb.mxu2 %v3860_v55 }
  0x35   :  { %v5193_v0 = vld [vmem:[#allocation7 + $0x38c] sm:$0xf0]  ;;  %v3571_v2 = vld [vmem:[#allocation7 + $0x60] sm:$0xf]  ;;  %v3844_v4 = vor.u32 %v5161_v61, %v3843_v60  ;;  %1489 = vmatpush.bf16.msrb.mxu3 %v3988_v59  ;;  %v157_v60 = vld [vmem:[#allocation3 + $0x48] sm:$0xff] }
  0x36   :  { %v5093_v3 = vld [vmem:[#allocation7 + $0x6c] sm:$0xf0]  ;;  %v3699_v5 = vld [vmem:[#allocation7 + $0x160] sm:$0xf]  ;;  %v3972_v7 = vor.u32 %v5193_v0, %v3971_v63 }
  0x37   :  { %v5125_v6 = vld [vmem:[#allocation7 + $0x16c] sm:$0xf0]  ;;  %v3827_v8 = vld [vmem:[#allocation7 + $0x260] sm:$0xf]  ;;  %1448 = vmatpush.bf16.msrb.mxu0 %v3588_v62  ;;  %v3572_v10 = vor.u32 %v5093_v3, %v3571_v2  ;;  %1462 = vmatpush.bf16.msrb.mxu1 %v3716_v1  ;;  %v155_v62 = vld [vmem:[#allocation3 + $0x38] sm:$0xff] }
  0x38   :  { %v5157_v9 = vld [vmem:[#allocation7 + $0x26c] sm:$0xf0]  ;;  %v3955_v11 = vld [vmem:[#allocation7 + $0x360] sm:$0xf]  ;;  %v3700_v13 = vor.u32 %v5125_v6, %v3699_v5  ;;  %1476 = vmatpush.bf16.msrb.mxu2 %v3844_v4  ;;  %v5139_v1 = vld [vmem:[#allocation7 + $0x1e4] sm:$0xf] }
  0x39   :  { %v5189_v12 = vld [vmem:[#allocation7 + $0x36c] sm:$0xf0]  ;;  %v3555_v14 = vld [vmem:[#allocation7 + $0x40] sm:$0xf]  ;;  %v3828_v16 = vor.u32 %v5157_v9, %v3827_v8  ;;  %1490 = vmatpush.bf16.msrb.mxu3 %v3972_v7  ;;  %v3765_v6 = vld [vmem:[#allocation7 + $0x1f0] sm:$0xf0]  ;;  %v3640_v9 = vor.u32 %v5107_v52, %v3637_v53 }
  0x3a   :  { %v5089_v15 = vld [vmem:[#allocation7 + $0x4c] sm:$0xf0]  ;;  %v3683_v17 = vld [vmem:[#allocation7 + $0x140] sm:$0xf]  ;;  %v3956_v19 = vor.u32 %v5189_v12, %v3955_v11  ;;  %v151_v7 = vld [vmem:[#allocation3 + $0x18] sm:$0xff] }
  0x3b   :  { %v5121_v18 = vld [vmem:[#allocation7 + $0x14c] sm:$0xf0]  ;;  %v3811_v20 = vld [vmem:[#allocation7 + $0x240] sm:$0xf]  ;;  %1449 = vmatpush.bf16.msrb.mxu0 %v3572_v10  ;;  %v3556_v22 = vor.u32 %v5089_v15, %v3555_v14  ;;  %1463 = vmatpush.bf16.msrb.mxu1 %v3700_v13  ;;  %v5103_v13 = vld [vmem:[#allocation7 + $0xc4] sm:$0xf] }
  0x3c   :  { %v5153_v21 = vld [vmem:[#allocation7 + $0x24c] sm:$0xf0]  ;;  %v3939_v23 = vld [vmem:[#allocation7 + $0x340] sm:$0xf]  ;;  %v3684_v25 = vor.u32 %v5121_v18, %v3683_v17  ;;  %1477 = vmatpush.bf16.msrb.mxu2 %v3828_v16  ;;  %v3621_v16 = vld [vmem:[#allocation7 + $0xd0] sm:$0xf0] }
  0x3d   :  { %v5185_v24 = vld [vmem:[#allocation7 + $0x34c] sm:$0xf0]  ;;  %v3539_v26 = vld [vmem:[#allocation7 + $0x20] sm:$0xf]  ;;  %v3812_v28 = vor.u32 %v5153_v21, %v3811_v20  ;;  %1491 = vmatpush.bf16.msrb.mxu3 %v3956_v19  ;;  %v149_v17 = vld [vmem:[#allocation3 + $0x8] sm:$0xff]  ;;  %v3768_v19 = vor.u32 %v5139_v1, %v3765_v6 }
  0x3e   :  { %v5085_v27 = vld [vmem:[#allocation7 + $0x2c] sm:$0xf0]  ;;  %v3667_v29 = vld [vmem:[#allocation7 + $0x120] sm:$0xf]  ;;  %v3940_v32 = vor.u32 %v5185_v24, %v3939_v23  ;;  %v5135_v24 = vld [vmem:[#allocation7 + $0x1c4] sm:$0xf] }
  0x3f   :  { %v5117_v30 = vld [vmem:[#allocation7 + $0x12c] sm:$0xf0]  ;;  %v3795_v31 = vld [vmem:[#allocation7 + $0x220] sm:$0xf]  ;;  %1450 = vmatpush.bf16.msrb.mxu0 %v3556_v22  ;;  %v3540_v36 = vor.u32 %v5085_v27, %v3539_v26  ;;  %1464 = vmatpush.bf16.msrb.mxu1 %v3684_v25  ;;  %v3749_v25 = vld [vmem:[#allocation7 + $0x1d0] sm:$0xf0]  ;;  %v3624_v26 = vor.u32 %v5103_v13, %v3621_v16 }
  0x40   :  { %v5149_v33 = vld [vmem:[#allocation7 + $0x22c] sm:$0xf0]  ;;  %v3923_v34 = vld [vmem:[#allocation7 + $0x320] sm:$0xf]  ;;  %v3668_v40 = vor.u32 %v5117_v30, %v3667_v29  ;;  %1478 = vmatpush.bf16.msrb.mxu2 %v3812_v28  ;;  %v5087_v6 = vld [vmem:[#allocation7 + $0x44] sm:$0xf] }
  0x41   :  { %v5181_v35 = vld [vmem:[#allocation7 + $0x32c] sm:$0xf0]  ;;  %v3523_v37 = vld [vmem:[#allocation7] sm:$0xf]  ;;  %v3796_v44 = vor.u32 %v5149_v33, %v3795_v31  ;;  %1492 = vmatpush.bf16.msrb.mxu3 %v3940_v32  ;;  %v5099_v31 = vld [vmem:[#allocation7 + $0xa4] sm:$0xf]  ;;  %v3752_v33 = vor.u32 %v5135_v24, %v3749_v25 }
  0x42   :  { %v5081_v38 = vld [vmem:[#allocation7 + $0xc] sm:$0xf0]  ;;  %v3651_v39 = vld [vmem:[#allocation7 + $0x100] sm:$0xf]  ;;  %v3924_v50 = vor.u32 %v5181_v35, %v3923_v34  ;;  %v3605_v32 = vld [vmem:[#allocation7 + $0xb0] sm:$0xf0] }
  0x43   :  { %v5113_v41 = vld [vmem:[#allocation7 + $0x10c] sm:$0xf0]  ;;  %v3779_v42 = vld [vmem:[#allocation7 + $0x200] sm:$0xf]  ;;  %1451 = vmatpush.bf16.msrb.mxu0 %v3540_v36  ;;  %v3524_v54 = vor.u32 %v5081_v38, %v3523_v37  ;;  %1465 = vmatpush.bf16.msrb.mxu1 %v3668_v40  ;;  %v5131_v37 = vld [vmem:[#allocation7 + $0x1a4] sm:$0xf] }
  0x44   :  { %v5145_v43 = vld [vmem:[#allocation7 + $0x20c] sm:$0xf0]  ;;  %v3907_v45 = vld [vmem:[#allocation7 + $0x300] sm:$0xf]  ;;  %v3652_v58 = vor.u32 %v5113_v41, %v3651_v39  ;;  %1479 = vmatpush.bf16.msrb.mxu2 %v3796_v44  ;;  %v3733_v38 = vld [vmem:[#allocation7 + $0x1b0] sm:$0xf0]  ;;  %v3608_v39 = vor.u32 %v5099_v31, %v3605_v32 }
  0x45   :  { %v5177_v46 = vld [vmem:[#allocation7 + $0x30c] sm:$0xf0]  ;;  %v4147_v47 = vld [vmem:[#allocation7 + $0x4e0] sm:$0xf]  ;;  %v3780_v63 = vor.u32 %v5145_v43, %v3779_v42  ;;  %1493 = vmatpush.bf16.msrb.mxu3 %v3924_v50  ;;  %v5095_v43 = vld [vmem:[#allocation7 + $0x84] sm:$0xf] }
  0x46   :  { %v5237_v48 = vld [vmem:[#allocation7 + $0x4ec] sm:$0xf0]  ;;  %v4275_v49 = vld [vmem:[#allocation7 + $0x5e0] sm:$0xf]  ;;  %v3908_v4 = vor.u32 %v5177_v46, %v3907_v45  ;;  %v3589_v44 = vld [vmem:[#allocation7 + $0x90] sm:$0xf0]  ;;  %v3736_v45 = vor.u32 %v5131_v37, %v3733_v38 }
  0x47   :  { %v5269_v51 = vld [vmem:[#allocation7 + $0x5ec] sm:$0xf0]  ;;  %v4291_v56 = vld [vmem:[#allocation7 + $0x600] sm:$0xf]  ;;  %v4148_v59 = vor.u32 %v5237_v48, %v4147_v47  ;;  %1452 = vmatpush.bf16.msrb.mxu0 %v3524_v54  ;;  %1466 = vmatpush.bf16.msrb.mxu1 %v3652_v58  ;;  %v3717_v50 = vld [vmem:[#allocation7 + $0x190] sm:$0xf0] }
  0x48   :  { %v150_v55 = vld [vmem:[#allocation3 + $0x10] sm:$0xff]  ;;  %v148_v61 = vld [vmem:[#allocation3] sm:$0xff]  ;;  %v4276_v0 = vor.u32 %v5269_v51, %v4275_v49  ;;  %1480 = vmatpush.bf16.msrb.mxu2 %v3780_v63  ;;  %v3592_v51 = vor.u32 %v5095_v43, %v3589_v44 }
  0x49   :  { %v5273_v57 = vld [vmem:[#allocation7 + $0x60c] sm:$0xf0]  ;;  %v4131_v2 = vld [vmem:[#allocation7 + $0x4c0] sm:$0xf]  ;;  %v5789_v10 = vpack.c.bf16 %v155_v62, %v148_v61  ;;  %v5791_v14 = vpack.c.bf16 %v157_v60, %v150_v55  ;;  %1494 = vmatpush.bf16.msrb.mxu3 %v3908_v4  ;;  %v5127_v49 = vld [vmem:[#allocation7 + $0x184] sm:$0xf] }
  0x4a   :  { %v5233_v3 = vld [vmem:[#allocation7 + $0x4cc] sm:$0xf0]  ;;  %v4292_v5 = vor.u32 %v5273_v57, %v4291_v56  ;;  %v4259_v11 = vld [vmem:[#allocation7 + $0x5c0] sm:$0xf]  ;;  %v5091_v55 = vld [vmem:[#allocation7 + $0x64] sm:$0xf]  ;;  %v3720_v58 = vor.u32 %v5127_v49, %v3717_v50 }
  0x4b   :  { %v158_v8 = vld [vmem:[#allocation3 + $0x50] sm:$0xff]  ;;  %1501 = vmatpush.bf16.msra.mxu0 %v4148_v59  ;;  %v4132_v15 = vor.u32 %v5233_v3, %v4131_v2  ;;  %v156_v18 = vld [vmem:[#allocation3 + $0x40] sm:$0xff]  ;;  %1515 = vmatpush.bf16.msra.mxu1 %v4276_v0  ;;  %v161_v59 = vld [vmem:[#allocation3 + $0x68] sm:$0xff] }
  0x4c   :  { %v5265_v12 = vld [vmem:[#allocation7 + $0x5cc] sm:$0xf0]  ;;  %v5793_v20 = vpack.c.bf16 %v158_v8, %v151_v7  ;;  %v4115_v21 = vld [vmem:[#allocation7 + $0x4a0] sm:$0xf]  ;;  %1536 = vmatpush.bf16.msra.mxu2 %v4292_v5  ;;  %1453 = vmatmul.bf16.vlgmr.msrb.gmra.mxu0 %v5789_v10  ;;  %v5796_v27 = vpack.c.bf16 %v156_v18, %v149_v17  ;;  %v3573_v56 = vld [vmem:[#allocation7 + $0x70] sm:$0xf0] }
  0x4d   :  { %v5229_v22 = vld [vmem:[#allocation7 + $0x4ac] sm:$0xf0]  ;;  %v4260_v23 = vor.u32 %v5265_v12, %v4259_v11  ;;  %1543 = vmatpush.bf16.msra.mxu3 %v3640_v9  ;;  %v4243_v28 = vld [vmem:[#allocation7 + $0x5a0] sm:$0xf]  ;;  %1481 = vmatmul.bf16.vlgmr.msrb.gmra.mxu2 %v5791_v14  ;;  %v5123_v63 = vld [vmem:[#allocation7 + $0x164] sm:$0xf]  ;;  %v3576_v1 = vor.u32 %v5091_v55, %v3573_v56 }
  0x4e   :  { %v5261_v29 = vld [vmem:[#allocation7 + $0x5ac] sm:$0xf0]  ;;  %v4116_v30 = vor.u32 %v5229_v22, %v4115_v21  ;;  %1495 = vmatmul.bf16.vlgmr.msrb.gmra.mxu3 %v5793_v20  ;;  %v4099_v34 = vld [vmem:[#allocation7 + $0x480] sm:$0xf]  ;;  %1467 = vmatmul.bf16.vlgmr.msrb.gmra.mxu1 %v5796_v27  ;;  %v3701_v0 = vld [vmem:[#allocation7 + $0x170] sm:$0xf0] }
  0x4f   :  { %1502 = vmatpush.bf16.msra.mxu0 %v4132_v15  ;;  %v5225_v35 = vld [vmem:[#allocation7 + $0x48c] sm:$0xf0]  ;;  %1516 = vmatpush.bf16.msra.mxu1 %v4260_v23  ;;  %v4244_v36 = vor.u32 %v5261_v29, %v4243_v28  ;;  %v4227_v40 = vld [vmem:[#allocation7 + $0x580] sm:$0xf]  ;;  %v3557_v7 = vld [vmem:[#allocation7 + $0x50] sm:$0xf0]  ;;  %v3704_v8 = vor.u32 %v5123_v63, %v3701_v0 }
  0x50   :  { %1557 = vmatpush.bf16.msrb.mxu2 %v3768_v19  ;;  %v5257_v41 = vld [vmem:[#allocation7 + $0x58c] sm:$0xf0]  ;;  %v4100_v42 = vor.u32 %v5225_v35, %v4099_v34  ;;  %v4083_v46 = vld [vmem:[#allocation7 + $0x460] sm:$0xf]  ;;  %v5119_v13 = vld [vmem:[#allocation7 + $0x144] sm:$0xf]  ;;  %v3560_v16 = vor.u32 %v5087_v6, %v3557_v7 }
  0x51   :  { %1544 = vmatpush.bf16.msra.mxu3 %v3624_v26  ;;  %v5221_v47 = vld [vmem:[#allocation7 + $0x46c] sm:$0xf0]  ;;  %v4228_v48 = vor.u32 %v5257_v41, %v4227_v40  ;;  %v4211_v52 = vld [vmem:[#allocation7 + $0x560] sm:$0xf]  ;;  %v3685_v15 = vld [vmem:[#allocation7 + $0x150] sm:$0xf0] }
  0x52   :  { %v5253_v53 = vld [vmem:[#allocation7 + $0x56c] sm:$0xf0]  ;;  %v4084_v54 = vor.u32 %v5221_v47, %v4083_v46  ;;  %v4067_v60 = vld [vmem:[#allocation7 + $0x440] sm:$0xf]  ;;  %v5083_v19 = vld [vmem:[#allocation7 + $0x24] sm:$0xf]  ;;  %v3688_v25 = vor.u32 %v5119_v13, %v3685_v15 }
  0x53   :  { %1503 = vmatpush.bf16.msra.mxu0 %v4116_v30  ;;  %1517 = vmatpush.bf16.msra.mxu1 %v4244_v36  ;;  %v154_v57 = vld [vmem:[#allocation3 + $0x30] sm:$0xff]  ;;  %v4212_v62 = vor.u32 %v5253_v53, %v4211_v52  ;;  %v4195_v2 = vld [vmem:[#allocation7 + $0x540] sm:$0xf]  ;;  %v5115_v23 = vld [vmem:[#allocation7 + $0x124] sm:$0xf] }
  0x54   :  { %1558 = vmatpush.bf16.msrb.mxu2 %v3752_v33  ;;  %v5217_v61 = vld [vmem:[#allocation7 + $0x44c] sm:$0xf0]  ;;  %v5801_v4 = vpack.c.bf16 %v161_v59, %v154_v57  ;;  %v4051_v9 = vld [vmem:[#allocation7 + $0x420] sm:$0xf]  ;;  %v3541_v22 = vld [vmem:[#allocation7 + $0x30] sm:$0xf0] }
  0x55   :  { %1545 = vmatpush.bf16.msra.mxu3 %v3608_v39  ;;  %v5249_v3 = vld [vmem:[#allocation7 + $0x54c] sm:$0xf0]  ;;  %v4068_v5 = vor.u32 %v5217_v61, %v4067_v60  ;;  %v4179_v17 = vld [vmem:[#allocation7 + $0x520] sm:$0xf]  ;;  %v3669_v24 = vld [vmem:[#allocation7 + $0x130] sm:$0xf0]  ;;  %v3544_v34 = vor.u32 %v5083_v19, %v3541_v22 }
  0x56   :  { %v5213_v11 = vld [vmem:[#allocation7 + $0x42c] sm:$0xf0]  ;;  %v4196_v12 = vor.u32 %v5249_v3, %v4195_v2  ;;  %v4035_v26 = vld [vmem:[#allocation7 + $0x400] sm:$0xf]  ;;  %v5171_v32 = vld [vmem:[#allocation7 + $0x2e4] sm:$0xf] }
  0x57   :  { %1504 = vmatpush.bf16.msra.mxu0 %v4100_v42  ;;  %1518 = vmatpush.bf16.msra.mxu1 %v4228_v48  ;;  %v5245_v18 = vld [vmem:[#allocation7 + $0x52c] sm:$0xf0]  ;;  %v4052_v21 = vor.u32 %v5213_v11, %v4051_v9  ;;  %v4163_v29 = vld [vmem:[#allocation7 + $0x500] sm:$0xf]  ;;  %v3893_v33 = vld [vmem:[#allocation7 + $0x2f0] sm:$0xf0]  ;;  %v3672_v42 = vor.u32 %v5115_v23, %v3669_v24 }
  0x58   :  { %1559 = vmatpush.bf16.msrb.mxu2 %v3736_v45  ;;  %v5209_v28 = vld [vmem:[#allocation7 + $0x40c] sm:$0xf0]  ;;  %v4180_v30 = vor.u32 %v5245_v18, %v4179_v17  ;;  %v5079_v35 = vld [vmem:[#allocation7 + $0x4] sm:$0xf]  ;;  %v3525_v36 = vld [vmem:[#allocation7 + $0x10] sm:$0xf0]  ;;  %v3896_v43 = vor.u32 %v5171_v32, %v3893_v33 }
  0x59   :  { %1546 = vmatpush.bf16.msra.mxu3 %v3592_v51  ;;  %v5241_v31 = vld [vmem:[#allocation7 + $0x50c] sm:$0xf0]  ;;  %v5203_v37 = vld [vmem:[#allocation7 + $0x3e4] sm:$0xf]  ;;  %v4036_v38 = vor.u32 %v5209_v28, %v4035_v26  ;;  %v4021_v39 = vld [vmem:[#allocation7 + $0x3f0] sm:$0xf0]  ;;  %v3528_v51 = vor.u32 %v5079_v35, %v3525_v36 }
  0x5a   :  { %v5235_v40 = vld [vmem:[#allocation7 + $0x4e4] sm:$0xf]  ;;  %v4149_v41 = vld [vmem:[#allocation7 + $0x4f0] sm:$0xf0]  ;;  %v159_v45 = vld [vmem:[#allocation3 + $0x58] sm:$0xff]  ;;  %v4164_v47 = vor.u32 %v5241_v31, %v4163_v29  ;;  %v4024_v52 = vor.u32 %v5203_v37, %v4021_v39 }
  0x5b   :  { %1505 = vmatpush.bf16.msra.mxu0 %v4084_v54  ;;  %1519 = vmatpush.bf16.msra.mxu1 %v4212_v62  ;;  %v152_v44 = vld [vmem:[#allocation3 + $0x20] sm:$0xff]  ;;  %v3653_v48 = vld [vmem:[#allocation7 + $0x110] sm:$0xf0]  ;;  %v153_v49 = vld [vmem:[#allocation3 + $0x28] sm:$0xff]  ;;  %v4152_v56 = vor.u32 %v5235_v40, %v4149_v41 }
  0x5c   :  { %1560 = vmatpush.bf16.msrb.mxu2 %v3720_v58  ;;  %v5111_v46 = vld [vmem:[#allocation7 + $0x104] sm:$0xf]  ;;  %v4277_v54 = vld [vmem:[#allocation7 + $0x5f0] sm:$0xf0]  ;;  %v5805_v57 = vpack.c.bf16 %v159_v45, %v152_v44 }
  0x5d   :  { %1547 = vmatpush.bf16.msra.mxu3 %v3576_v1  ;;  %4305 = vmatmul.msk.bf16.vlgmr.msra.gmra.mxu2 %vm1441_vm2, %v5801_v4  ;;  %v160_v50 = vld [vmem:[#allocation3 + $0x60] sm:$0xff]  ;;  %v3877_v58 = vld [vmem:[#allocation7 + $0x2d0] sm:$0xf0]  ;;  %v3656_v61 = vor.u32 %v5111_v46, %v3653_v48 }
  0x5e   :  { %v5267_v53 = vld [vmem:[#allocation7 + $0x5e4] sm:$0xf]  ;;  %v4005_v60 = vld [vmem:[#allocation7 + $0x3d0] sm:$0xf0]  ;;  %v5807_v62 = vpack.c.bf16 %v160_v50, %v153_v49 }
  0x5f   :  { %1506 = vmatpush.bf16.msra.mxu0 %v4068_v5  ;;  %1520 = vmatpush.bf16.msra.mxu1 %v4196_v12  ;;  %v5167_v55 = vld [vmem:[#allocation7 + $0x2c4] sm:$0xf]  ;;  %v4133_v0 = vld [vmem:[#allocation7 + $0x4d0] sm:$0xf0]  ;;  %v4280_v1 = vor.u32 %v5267_v53, %v4277_v54 }
  0x60   :  { %1561 = vmatpush.bf16.msrb.mxu2 %v3704_v8  ;;  %v5199_v59 = vld [vmem:[#allocation7 + $0x3c4] sm:$0xf]  ;;  %v3880_v2 = vor.u32 %v5167_v55, %v3877_v58  ;;  %v4261_v6 = vld [vmem:[#allocation7 + $0x5d0] sm:$0xf0] }
  0x61   :  { %1548 = vmatpush.bf16.msra.mxu3 %v3560_v16  ;;  %v5231_v63 = vld [vmem:[#allocation7 + $0x4c4] sm:$0xf]  ;;  %v4008_v3 = vor.u32 %v5199_v59, %v4005_v60  ;;  %v3861_v9 = vld [vmem:[#allocation7 + $0x2b0] sm:$0xf0] }
  0x62   :  { %v5263_v5 = vld [vmem:[#allocation7 + $0x5c4] sm:$0xf]  ;;  %v4136_v8 = vor.u32 %v5231_v63, %v4133_v0  ;;  %v3989_v12 = vld [vmem:[#allocation7 + $0x3b0] sm:$0xf0] }
  0x63   :  { %1507 = vmatpush.bf16.msra.mxu0 %v4052_v21  ;;  %1521 = vmatpush.bf16.msra.mxu1 %v4180_v30  ;;  %v5163_v7 = vld [vmem:[#allocation7 + $0x2a4] sm:$0xf]  ;;  %v4117_v15 = vld [vmem:[#allocation7 + $0x4b0] sm:$0xf0]  ;;  %v4264_v16 = vor.u32 %v5263_v5, %v4261_v6 }
  0x64   :  { %1562 = vmatpush.bf16.msrb.mxu2 %v3688_v25  ;;  %v5195_v11 = vld [vmem:[#allocation7 + $0x3a4] sm:$0xf]  ;;  %v3864_v17 = vor.u32 %v5163_v7, %v3861_v9  ;;  %v4245_v21 = vld [vmem:[#allocation7 + $0x5b0] sm:$0xf0] }
  0x65   :  { %1549 = vmatpush.bf16.msra.mxu3 %v3544_v34  ;;  %v5227_v13 = vld [vmem:[#allocation7 + $0x4a4] sm:$0xf]  ;;  %v3992_v18 = vor.u32 %v5195_v11, %v3989_v12  ;;  %v3845_v24 = vld [vmem:[#allocation7 + $0x290] sm:$0xf0] }
  0x66   :  { %v5259_v19 = vld [vmem:[#allocation7 + $0x5a4] sm:$0xf]  ;;  %v4120_v23 = vor.u32 %v5227_v13, %v4117_v15  ;;  %v3973_v26 = vld [vmem:[#allocation7 + $0x390] sm:$0xf0] }
  0x67   :  { %1508 = vmatpush.bf16.msra.mxu0 %v4036_v38  ;;  %1522 = vmatpush.bf16.msra.mxu1 %v4164_v47  ;;  %v5159_v22 = vld [vmem:[#allocation7 + $0x284] sm:$0xf]  ;;  %v4101_v29 = vld [vmem:[#allocation7 + $0x490] sm:$0xf0]  ;;  %v4248_v30 = vor.u32 %v5259_v19, %v4245_v21  ;;  %v3643_v19 = vld [vmem:[#allocation7 + $0xe8] sm:$0xf] }
  0x68   :  { %1563 = vmatpush.bf16.msrb.mxu2 %v3672_v42  ;;  %v5191_v25 = vld [vmem:[#allocation7 + $0x384] sm:$0xf]  ;;  %v3848_v31 = vor.u32 %v5159_v22, %v3845_v24  ;;  %v4229_v34 = vld [vmem:[#allocation7 + $0x590] sm:$0xf0]  ;;  %v5110_v21 = vld [vmem:[#allocation7 + $0xf4] sm:$0xf0] }
  0x69   :  { %1550 = vmatpush.bf16.msra.mxu3 %v3528_v51  ;;  %v5223_v28 = vld [vmem:[#allocation7 + $0x484] sm:$0xf]  ;;  %v3976_v32 = vor.u32 %v5191_v25, %v3973_v26  ;;  %v3829_v37 = vld [vmem:[#allocation7 + $0x270] sm:$0xf0]  ;;  %v3899_v25 = vld [vmem:[#allocation7 + $0x2e8] sm:$0xf] }
  0x6a   :  { %1509 = vmatmul.bf16.vlgmr.msra.gmra.mxu0 %v5805_v57  ;;  %1523 = vmatmul.bf16.vlgmr.msra.gmra.mxu1 %v5807_v62  ;;  %v5255_v33 = vld [vmem:[#allocation7 + $0x584] sm:$0xf]  ;;  %v4104_v36 = vor.u32 %v5223_v28, %v4101_v29  ;;  %v3957_v39 = vld [vmem:[#allocation7 + $0x370] sm:$0xf0]  ;;  %v5174_v26 = vld [vmem:[#allocation7 + $0x2f4] sm:$0xf0] }
  0x6b   :  { %1571 = vmatpush.bf16.msrb.mxu0 %v3896_v43  ;;  %1585 = vmatpush.bf16.msrb.mxu1 %v4024_v52  ;;  %v5155_v35 = vld [vmem:[#allocation7 + $0x264] sm:$0xf]  ;;  %v4085_v41 = vld [vmem:[#allocation7 + $0x470] sm:$0xf0]  ;;  %v4232_v42 = vor.u32 %v5255_v33, %v4229_v34  ;;  %v3644_v33 = vor.u32 %v5110_v21, %v3643_v19  ;;  %v4027_v34 = vld [vmem:[#allocation7 + $0x3e8] sm:$0xf] }
  0x6c   :  { %1564 = vmatpush.bf16.msrb.mxu2 %v3656_v61  ;;  %1551 = vmatmul.bf16.vlgmr.msra.gmra.mxu3 %v5789_v10  ;;  %v5187_v38 = vld [vmem:[#allocation7 + $0x364] sm:$0xf]  ;;  %v3832_v43 = vor.u32 %v5155_v35, %v3829_v37  ;;  %v4213_v46 = vld [vmem:[#allocation7 + $0x570] sm:$0xf0]  ;;  %v5206_v35 = vld [vmem:[#allocation7 + $0x3f4] sm:$0xf0] }
  0x6d   :  { %1599 = vmatpush.bf16.msrb.mxu3 %v4152_v56  ;;  %v5219_v40 = vld [vmem:[#allocation7 + $0x464] sm:$0xf]  ;;  %v3960_v44 = vor.u32 %v5187_v38, %v3957_v39  ;;  %v3813_v49 = vld [vmem:[#allocation7 + $0x250] sm:$0xf0]  ;;  %v3771_v37 = vld [vmem:[#allocation7 + $0x1e8] sm:$0xf]  ;;  %v3900_v39 = vor.u32 %v5174_v26, %v3899_v25 }
  0x6e   :  { %v5251_v45 = vld [vmem:[#allocation7 + $0x564] sm:$0xf]  ;;  %v4088_v48 = vor.u32 %v5219_v40, %v4085_v41  ;;  %v3941_v51 = vld [vmem:[#allocation7 + $0x350] sm:$0xf0]  ;;  %v5142_v38 = vld [vmem:[#allocation7 + $0x1f4] sm:$0xf0] }
  0x6f   :  { %1572 = vmatpush.bf16.msrb.mxu0 %v3880_v2  ;;  %1586 = vmatpush.bf16.msrb.mxu1 %v4008_v3  ;;  %v5151_v47 = vld [vmem:[#allocation7 + $0x244] sm:$0xf]  ;;  %v4069_v53 = vld [vmem:[#allocation7 + $0x450] sm:$0xf0]  ;;  %v4216_v54 = vor.u32 %v5251_v45, %v4213_v46  ;;  %v3627_v41 = vld [vmem:[#allocation7 + $0xc8] sm:$0xf]  ;;  %v3772_v46 = vor.u32 %v5142_v38, %v3771_v37 }
  0x70   :  { %1613 = vmatpush.bf16.msra.mxu2 %v4280_v1  ;;  %v5183_v50 = vld [vmem:[#allocation7 + $0x344] sm:$0xf]  ;;  %v3816_v55 = vor.u32 %v5151_v47, %v3813_v49  ;;  %v4197_v59 = vld [vmem:[#allocation7 + $0x550] sm:$0xf0]  ;;  %v5170_v45 = vld [vmem:[#allocation7 + $0x2d4] sm:$0xf0] }
  0x71   :  { %1600 = vmatpush.bf16.msrb.mxu3 %v4136_v8  ;;  %1565 = vmatmul.bf16.vlgmr.msrb.gmra.mxu2 %v5796_v27  ;;  %v5215_v52 = vld [vmem:[#allocation7 + $0x444] sm:$0xf]  ;;  %v3944_v56 = vor.u32 %v5183_v50, %v3941_v51  ;;  %v3797_v63 = vld [vmem:[#allocation7 + $0x230] sm:$0xf0]  ;;  %v4011_v47 = vld [vmem:[#allocation7 + $0x3c8] sm:$0xf] }
  0x72   :  { %v5247_v58 = vld [vmem:[#allocation7 + $0x544] sm:$0xf]  ;;  %v4072_v61 = vor.u32 %v5215_v52, %v4069_v53  ;;  %v3925_v1 = vld [vmem:[#allocation7 + $0x330] sm:$0xf0]  ;;  %v3755_v50 = vld [vmem:[#allocation7 + $0x1c8] sm:$0xf] }
  0x73   :  { %1573 = vmatpush.bf16.msrb.mxu0 %v3864_v17  ;;  %1587 = vmatpush.bf16.msrb.mxu1 %v3992_v18  ;;  %v5147_v60 = vld [vmem:[#allocation7 + $0x224] sm:$0xf]  ;;  %v4053_v3 = vld [vmem:[#allocation7 + $0x430] sm:$0xf0]  ;;  %v4200_v5 = vor.u32 %v5247_v58, %v4197_v59  ;;  %v5138_v51 = vld [vmem:[#allocation7 + $0x1d4] sm:$0xf0] }
  0x74   :  { %1614 = vmatpush.bf16.msra.mxu2 %v4264_v16  ;;  %v5179_v0 = vld [vmem:[#allocation7 + $0x324] sm:$0xf]  ;;  %v4181_v7 = vld [vmem:[#allocation7 + $0x530] sm:$0xf0]  ;;  %v3800_v8 = vor.u32 %v5147_v60, %v3797_v63  ;;  %v3611_v53 = vld [vmem:[#allocation7 + $0xa8] sm:$0xf]  ;;  %v3756_v59 = vor.u32 %v5138_v51, %v3755_v50 }
  0x75   :  { %1601 = vmatpush.bf16.msrb.mxu3 %v4120_v23  ;;  %v5211_v2 = vld [vmem:[#allocation7 + $0x424] sm:$0xf]  ;;  %v3928_v9 = vor.u32 %v5179_v0, %v3925_v1  ;;  %v3781_v12 = vld [vmem:[#allocation7 + $0x210] sm:$0xf0]  ;;  %v5166_v58 = vld [vmem:[#allocation7 + $0x2b4] sm:$0xf0] }
  0x76   :  { %v5243_v6 = vld [vmem:[#allocation7 + $0x524] sm:$0xf]  ;;  %v4056_v15 = vor.u32 %v5211_v2, %v4053_v3  ;;  %v3909_v16 = vld [vmem:[#allocation7 + $0x310] sm:$0xf0]  ;;  %v3995_v60 = vld [vmem:[#allocation7 + $0x3a8] sm:$0xf] }
  0x77   :  { %1574 = vmatpush.bf16.msrb.mxu0 %v3848_v31  ;;  %1588 = vmatpush.bf16.msrb.mxu1 %v3976_v32  ;;  %v5143_v11 = vld [vmem:[#allocation7 + $0x204] sm:$0xf]  ;;  %v4037_v18 = vld [vmem:[#allocation7 + $0x410] sm:$0xf0]  ;;  %v4184_v23 = vor.u32 %v5243_v6, %v4181_v7  ;;  %v3739_v0 = vld [vmem:[#allocation7 + $0x1a8] sm:$0xf] }
  0x78   :  { %1615 = vmatpush.bf16.msra.mxu2 %v4248_v30  ;;  %v5175_v13 = vld [vmem:[#allocation7 + $0x304] sm:$0xf]  ;;  %v4293_v24 = vld [vmem:[#allocation7 + $0x610] sm:$0xf0]  ;;  %v3784_v28 = vor.u32 %v5143_v11, %v3781_v12  ;;  %v5134_v1 = vld [vmem:[#allocation7 + $0x1b4] sm:$0xf0] }
  0x79   :  { %1602 = vmatpush.bf16.msrb.mxu3 %v4104_v36  ;;  %v5207_v17 = vld [vmem:[#allocation7 + $0x404] sm:$0xf]  ;;  %v3912_v29 = vor.u32 %v5175_v13, %v3909_v16  ;;  %v4165_v31 = vld [vmem:[#allocation7 + $0x510] sm:$0xf0]  ;;  %v3595_v3 = vld [vmem:[#allocation7 + $0x88] sm:$0xf] }
  0x7a   :  { %v5271_v22 = vld [vmem:[#allocation7 + $0x604] sm:$0xf]  ;;  %v4040_v32 = vor.u32 %v5207_v17, %v4037_v18  ;;  %v3851_v7 = vld [vmem:[#allocation7 + $0x288] sm:$0xf]  ;;  %v5194_v12 = vld [vmem:[#allocation7 + $0x394] sm:$0xf0] }
  0x7b   :  { %1575 = vmatpush.bf16.msrb.mxu0 %v3832_v43  ;;  %1589 = vmatpush.bf16.msrb.mxu1 %v3960_v44  ;;  %v5239_v30 = vld [vmem:[#allocation7 + $0x504] sm:$0xf]  ;;  %v4296_v36 = vor.u32 %v5271_v22, %v4293_v24  ;;  %v4028_v43 = vor.u32 %v5206_v35, %v4027_v34  ;;  %v3883_v44 = vld [vmem:[#allocation7 + $0x2c8] sm:$0xf]  ;;  %v5130_v16 = vld [vmem:[#allocation7 + $0x194] sm:$0xf0] }
  0x7c   :  { %1616 = vmatpush.bf16.msra.mxu2 %v4232_v42  ;;  %v4168_v40 = vor.u32 %v5239_v30, %v4165_v31  ;;  %v5106_v42 = vld [vmem:[#allocation7 + $0xd4] sm:$0xf0]  ;;  %v3884_v52 = vor.u32 %v5170_v45, %v3883_v44  ;;  %v3979_v11 = vld [vmem:[#allocation7 + $0x388] sm:$0xf] }
  0x7d   :  { %1603 = vmatpush.bf16.msrb.mxu3 %v4088_v48  ;;  %v5202_v48 = vld [vmem:[#allocation7 + $0x3d4] sm:$0xf0]  ;;  %v3628_v49 = vor.u32 %v5106_v42, %v3627_v41  ;;  %v3579_v18 = vld [vmem:[#allocation7 + $0x68] sm:$0xf]  ;;  %v3980_v21 = vor.u32 %v5194_v12, %v3979_v11 }
  0x7e   :  { %v5094_v19 = vld [vmem:[#allocation7 + $0x74] sm:$0xf0]  ;;  %v3835_v22 = vld [vmem:[#allocation7 + $0x268] sm:$0xf] }
  0x7f   :  { %1576 = vmatpush.bf16.msrb.mxu0 %v3816_v55  ;;  %1590 = vmatpush.bf16.msrb.mxu1 %v3944_v56  ;;  %v4012_v55 = vor.u32 %v5202_v48, %v4011_v47  ;;  %v3867_v56 = vld [vmem:[#allocation7 + $0x2a8] sm:$0xf]  ;;  %v5190_v26 = vld [vmem:[#allocation7 + $0x374] sm:$0xf0] }
  0x80   :  { %1617 = vmatpush.bf16.msra.mxu2 %v4216_v54  ;;  %v5102_v54 = vld [vmem:[#allocation7 + $0xb4] sm:$0xf0]  ;;  %v3868_v2 = vor.u32 %v5166_v58, %v3867_v56  ;;  %v3963_v25 = vld [vmem:[#allocation7 + $0x368] sm:$0xf] }
  0x81   :  { %1604 = vmatpush.bf16.msrb.mxu3 %v4072_v61  ;;  %v5198_v61 = vld [vmem:[#allocation7 + $0x3b4] sm:$0xf0]  ;;  %v3612_v63 = vor.u32 %v5102_v54, %v3611_v53  ;;  %v3964_v34 = vor.u32 %v5190_v26, %v3963_v25  ;;  %v3819_v35 = vld [vmem:[#allocation7 + $0x248] sm:$0xf]  ;;  %v3773_v25 = vld [vmem:[#allocation7 + $0x1f8] sm:$0xf0] }
  0x82   :  { %v3996_v6 = vor.u32 %v5198_v61, %v3995_v60  ;;  %v5126_v30 = vld [vmem:[#allocation7 + $0x174] sm:$0xf0]  ;;  %v3947_v38 = vld [vmem:[#allocation7 + $0x348] sm:$0xf] }
  0x83   :  { %1577 = vmatpush.bf16.msrb.mxu0 %v3800_v8  ;;  %1591 = vmatpush.bf16.msrb.mxu1 %v3928_v9  ;;  %v5162_v8 = vld [vmem:[#allocation7 + $0x294] sm:$0xf0]  ;;  %v3740_v9 = vor.u32 %v5134_v1, %v3739_v0  ;;  %v3691_v41 = vld [vmem:[#allocation7 + $0x148] sm:$0xf] }
  0x84   :  { %1618 = vmatpush.bf16.msra.mxu2 %v4200_v5  ;;  %v5098_v5 = vld [vmem:[#allocation7 + $0x94] sm:$0xf0]  ;;  %v3852_v17 = vor.u32 %v5162_v8, %v3851_v7  ;;  %v3547_v44 = vld [vmem:[#allocation7 + $0x28] sm:$0xf] }
  0x85   :  { %1605 = vmatpush.bf16.msrb.mxu3 %v4056_v15  ;;  %v3596_v13 = vor.u32 %v5098_v5, %v3595_v3  ;;  %v3723_v15 = vld [vmem:[#allocation7 + $0x188] sm:$0xf]  ;;  %v5122_v42 = vld [vmem:[#allocation7 + $0x154] sm:$0xf0] }
  0x86   :  { %v3724_v24 = vor.u32 %v5130_v16, %v3723_v15  ;;  %v5086_v45 = vld [vmem:[#allocation7 + $0x34] sm:$0xf0]  ;;  %v3803_v47 = vld [vmem:[#allocation7 + $0x228] sm:$0xf]  ;;  %v5108_v16 = vld [vmem:[#allocation7 + $0xec] sm:$0xf] }
  0x87   :  { %1578 = vmatpush.bf16.msrb.mxu0 %v3784_v28  ;;  %1592 = vmatpush.bf16.msrb.mxu1 %v3912_v29  ;;  %v3580_v28 = vor.u32 %v5094_v19, %v3579_v18  ;;  %v3707_v29 = vld [vmem:[#allocation7 + $0x168] sm:$0xf]  ;;  %v5150_v48 = vld [vmem:[#allocation7 + $0x234] sm:$0xf0] }
  0x88   :  { %1619 = vmatpush.bf16.msra.mxu2 %v4184_v23  ;;  %v5158_v23 = vld [vmem:[#allocation7 + $0x274] sm:$0xf0]  ;;  %v3708_v37 = vor.u32 %v5126_v30, %v3707_v29  ;;  %v3931_v50 = vld [vmem:[#allocation7 + $0x328] sm:$0xf]  ;;  %v3804_v56 = vor.u32 %v5150_v48, %v3803_v47 }
  0x89   :  { %1606 = vmatpush.bf16.msrb.mxu3 %v4040_v32  ;;  %v3836_v31 = vor.u32 %v5158_v23, %v3835_v22  ;;  %v3563_v32 = vld [vmem:[#allocation7 + $0x48] sm:$0xf]  ;;  %v5182_v51 = vld [vmem:[#allocation7 + $0x334] sm:$0xf0] }
  0x8a   :  { %1579 = vmatmul.bf16.vlgmr.msrb.gmra.mxu0 %v5791_v14  ;;  %1593 = vmatmul.bf16.vlgmr.msrb.gmra.mxu1 %v5793_v20  ;;  %v3675_v53 = vld [vmem:[#allocation7 + $0x128] sm:$0xf]  ;;  %v5118_v54 = vld [vmem:[#allocation7 + $0x134] sm:$0xf0]  ;;  %v3932_v61 = vor.u32 %v5182_v51, %v3931_v50  ;;  %v3741_v50 = vld [vmem:[#allocation7 + $0x1b8] sm:$0xf0] }
  0x8b   :  { %1641 = vmatpush.bf16.msra.mxu1 %v3644_v33  ;;  %1669 = vmatpush.bf16.msra.mxu0 %v3900_v39  ;;  %v5090_v33 = vld [vmem:[#allocation7 + $0x54] sm:$0xf0]  ;;  %v3915_v1 = vld [vmem:[#allocation7 + $0x308] sm:$0xf] }
  0x8c   :  { %1620 = vmatpush.bf16.msra.mxu2 %v4168_v40  ;;  %1607 = vmatmul.bf16.vlgmr.msrb.gmra.mxu3 %v5805_v57  ;;  %v5186_v39 = vld [vmem:[#allocation7 + $0x354] sm:$0xf0]  ;;  %v3564_v40 = vor.u32 %v5090_v33, %v3563_v32  ;;  %v4299_v5 = vld [vmem:[#allocation7 + $0x608] sm:$0xf]  ;;  %v5104_v32 = vld [vmem:[#allocation7 + $0xcc] sm:$0xf] }
  0x8d   :  { %1634 = vmatpush.bf16.msra.mxu3 %v4296_v36  ;;  %v5154_v36 = vld [vmem:[#allocation7 + $0x254] sm:$0xf0]  ;;  %v3659_v8 = vld [vmem:[#allocation7 + $0x108] sm:$0xf]  ;;  %v3629_v33 = vld [vmem:[#allocation7 + $0xd8] sm:$0xf0] }
  0x8e   :  { %v5082_v58 = vld [vmem:[#allocation7 + $0x14] sm:$0xf0]  ;;  %v4283_v11 = vld [vmem:[#allocation7 + $0x5e8] sm:$0xf] }
  0x8f   :  { %1642 = vmatpush.bf16.msra.mxu1 %v3628_v49  ;;  %1621 = vmatmul.bf16.vlgmr.msra.gmra.mxu2 %v5807_v62  ;;  %v3692_v49 = vor.u32 %v5122_v42, %v3691_v41  ;;  %v5238_v60 = vld [vmem:[#allocation7 + $0x4f4] sm:$0xf0]  ;;  %v4139_v19 = vld [vmem:[#allocation7 + $0x4c8] sm:$0xf] }
  0x90   :  { %1683 = vmatpush.bf16.msrb.mxu2 %v4028_v43  ;;  %1670 = vmatpush.bf16.msra.mxu0 %v3884_v52  ;;  %v3820_v43 = vor.u32 %v5154_v36, %v3819_v35  ;;  %v3548_v52 = vor.u32 %v5086_v45, %v3547_v44  ;;  %v5146_v0 = vld [vmem:[#allocation7 + $0x214] sm:$0xf0]  ;;  %v4267_v29 = vld [vmem:[#allocation7 + $0x5c8] sm:$0xf]  ;;  %v5100_v44 = vld [vmem:[#allocation7 + $0xac] sm:$0xf] }
  0x91   :  { %1655 = vmatpush.bf16.msrb.mxu3 %v3772_v46  ;;  %v3948_v46 = vor.u32 %v5186_v39, %v3947_v38  ;;  %v5178_v3 = vld [vmem:[#allocation7 + $0x314] sm:$0xf0]  ;;  %v4123_v35 = vld [vmem:[#allocation7 + $0x4a8] sm:$0xf]  ;;  %v3757_v38 = vld [vmem:[#allocation7 + $0x1d8] sm:$0xf0] }
  0x92   :  { %v5270_v15 = vld [vmem:[#allocation7 + $0x5f4] sm:$0xf0]  ;;  %v3916_v18 = vor.u32 %v5178_v3, %v3915_v1  ;;  %v4251_v41 = vld [vmem:[#allocation7 + $0x5a8] sm:$0xf]  ;;  %v3613_v45 = vld [vmem:[#allocation7 + $0xb8] sm:$0xf0] }
  0x93   :  { %1643 = vmatpush.bf16.msra.mxu1 %v3612_v63  ;;  %v3787_v63 = vld [vmem:[#allocation7 + $0x208] sm:$0xf]  ;;  %v4284_v26 = vor.u32 %v5270_v15, %v4283_v11  ;;  %v5230_v36 = vld [vmem:[#allocation7 + $0x4b4] sm:$0xf0]  ;;  %v3709_v15 = vld [vmem:[#allocation7 + $0x178] sm:$0xf0] }
  0x94   :  { %1684 = vmatpush.bf16.msrb.mxu2 %v4012_v55  ;;  %1671 = vmatpush.bf16.msra.mxu0 %v3868_v2  ;;  %v3531_v55 = vld [vmem:[#allocation7 + $0x8] sm:$0xf]  ;;  %v3676_v2 = vor.u32 %v5118_v54, %v3675_v53  ;;  %v4124_v42 = vor.u32 %v5230_v36, %v4123_v35  ;;  %v5226_v48 = vld [vmem:[#allocation7 + $0x494] sm:$0xf0]  ;;  %v5084_v35 = vld [vmem:[#allocation7 + $0x2c] sm:$0xf] }
  0x95   :  { %1656 = vmatpush.bf16.msrb.mxu3 %v3756_v59  ;;  %v4155_v59 = vld [vmem:[#allocation7 + $0x4e8] sm:$0xf]  ;;  %v3532_v7 = vor.u32 %v5082_v58, %v3531_v55  ;;  %v5258_v55 = vld [vmem:[#allocation7 + $0x594] sm:$0xf0]  ;;  %v3597_v58 = vld [vmem:[#allocation7 + $0x98] sm:$0xf0] }
  0x96   :  { %v4156_v12 = vor.u32 %v5238_v60, %v4155_v59  ;;  %v4107_v47 = vld [vmem:[#allocation7 + $0x488] sm:$0xf]  ;;  %v3549_v36 = vld [vmem:[#allocation7 + $0x38] sm:$0xf0] }
  0x97   :  { %1644 = vmatpush.bf16.msra.mxu1 %v3596_v13  ;;  %v3788_v13 = vor.u32 %v5146_v0, %v3787_v63  ;;  %v4235_v53 = vld [vmem:[#allocation7 + $0x588] sm:$0xf]  ;;  %v4108_v54 = vor.u32 %v5226_v48, %v4107_v47  ;;  %v5128_v63 = vld [vmem:[#allocation7 + $0x18c] sm:$0xf]  ;;  %v3725_v0 = vld [vmem:[#allocation7 + $0x198] sm:$0xf0] }
  0x98   :  { %1685 = vmatpush.bf16.msrb.mxu2 %v3996_v6  ;;  %1672 = vmatpush.bf16.msra.mxu0 %v3852_v17  ;;  %v5274_v6 = vld [vmem:[#allocation7 + $0x614] sm:$0xf0]  ;;  %v3645_v17 = vld [vmem:[#allocation7 + $0xf8] sm:$0xf0]  ;;  %v4091_v60 = vld [vmem:[#allocation7 + $0x468] sm:$0xf]  ;;  %v4236_v1 = vor.u32 %v5258_v55, %v4235_v53 }
  0x99   :  { %1657 = vmatpush.bf16.msrb.mxu3 %v3740_v9  ;;  %v5114_v9 = vld [vmem:[#allocation7 + $0x114] sm:$0xf0]  ;;  %v4300_v22 = vor.u32 %v5274_v6, %v4299_v5  ;;  %v4219_v3 = vld [vmem:[#allocation7 + $0x568] sm:$0xf]  ;;  %v5204_v53 = vld [vmem:[#allocation7 + $0x3ec] sm:$0xf] }
  0x9a   :  { %v3660_v23 = vor.u32 %v5114_v9, %v3659_v8  ;;  %v5254_v6 = vld [vmem:[#allocation7 + $0x574] sm:$0xf0]  ;;  %v3581_v8 = vld [vmem:[#allocation7 + $0x78] sm:$0xf0]  ;;  %v3728_v9 = vor.u32 %v5128_v63, %v3725_v0  ;;  %v4075_v11 = vld [vmem:[#allocation7 + $0x448] sm:$0xf] }
  0x9b   :  { %1645 = vmatpush.bf16.msra.mxu1 %v3580_v28  ;;  %v3648_v28 = vor.u32 %v5108_v16, %v3645_v17  ;;  %v4220_v16 = vor.u32 %v5254_v6, %v4219_v3  ;;  %v5242_v48 = vld [vmem:[#allocation7 + $0x514] sm:$0xf0]  ;;  %v5236_v55 = vld [vmem:[#allocation7 + $0x4ec] sm:$0xf]  ;;  %v3661_v63 = vld [vmem:[#allocation7 + $0x118] sm:$0xf0] }
  0x9c   :  { %1686 = vmatpush.bf16.msrb.mxu2 %v3980_v21  ;;  %1673 = vmatpush.bf16.msra.mxu0 %v3836_v31  ;;  %v5234_v21 = vld [vmem:[#allocation7 + $0x4d4] sm:$0xf0]  ;;  %v4285_v3 = vld [vmem:[#allocation7 + $0x5f8] sm:$0xf0] }
  0x9d   :  { %1658 = vmatpush.bf16.msrb.mxu3 %v3724_v24  ;;  %v5140_v24 = vld [vmem:[#allocation7 + $0x1ec] sm:$0xf]  ;;  %v4140_v30 = vor.u32 %v5234_v21, %v4139_v19  ;;  %v5266_v31 = vld [vmem:[#allocation7 + $0x5d4] sm:$0xf0] }
  0x9e   :  { %4306 = vmatmul.msk.bf16.vlgmr.msra.gmra.mxu3 %vm1441_vm2, %v5801_v4  ;;  %v4268_v39 = vor.u32 %v5266_v31, %v4267_v29  ;;  %v5250_v21 = vld [vmem:[#allocation7 + $0x554] sm:$0xf0]  ;;  %v3693_v29 = vld [vmem:[#allocation7 + $0x158] sm:$0xf0] }
  0x9f   :  { %1646 = vmatpush.bf16.msra.mxu1 %v3564_v40  ;;  %v3632_v40 = vor.u32 %v5104_v32, %v3629_v33  ;;  %v4187_v32 = vld [vmem:[#allocation7 + $0x528] sm:$0xf] }
  0xa0   :  { %1687 = vmatpush.bf16.msrb.mxu2 %v3964_v34  ;;  %1674 = vmatpush.bf16.msra.mxu0 %v3820_v43  ;;  %v3776_v34 = vor.u32 %v5140_v24, %v3773_v25  ;;  %v5262_v43 = vld [vmem:[#allocation7 + $0x5b4] sm:$0xf0]  ;;  %v4059_v25 = vld [vmem:[#allocation7 + $0x428] sm:$0xf] }
  0xa1   :  { %1659 = vmatpush.bf16.msrb.mxu3 %v3708_v37  ;;  %v5136_v37 = vld [vmem:[#allocation7 + $0x1cc] sm:$0xf]  ;;  %v4252_v51 = vor.u32 %v5262_v43, %v4251_v41  ;;  %v3901_v41 = vld [vmem:[#allocation7 + $0x2f8] sm:$0xf0] }
  0xa2   :  { %v3677_v43 = vld [vmem:[#allocation7 + $0x138] sm:$0xf0] }
  0xa3   :  { %1647 = vmatpush.bf16.msra.mxu1 %v3548_v52  ;;  %v3616_v52 = vor.u32 %v5100_v44, %v3613_v45  ;;  %v3552_v45 = vor.u32 %v5084_v35, %v3549_v36  ;;  %v5260_v35 = vld [vmem:[#allocation7 + $0x5ac] sm:$0xf]  ;;  %v4253_v36 = vld [vmem:[#allocation7 + $0x5b8] sm:$0xf0] }
  0xa4   :  { %1688 = vmatpush.bf16.msrb.mxu2 %v3948_v46  ;;  %1675 = vmatpush.bf16.msra.mxu0 %v3804_v56  ;;  %v3760_v46 = vor.u32 %v5136_v37, %v3757_v38  ;;  %v5096_v56 = vld [vmem:[#allocation7 + $0x8c] sm:$0xf]  ;;  %v4043_v38 = vld [vmem:[#allocation7 + $0x408] sm:$0xf] }
  0xa5   :  { %1660 = vmatpush.bf16.msrb.mxu3 %v3692_v49  ;;  %v5132_v49 = vld [vmem:[#allocation7 + $0x1ac] sm:$0xf] }
  0xa6   :  { %v3744_v59 = vor.u32 %v5132_v49, %v3741_v50  ;;  %v5080_v49 = vld [vmem:[#allocation7 + $0xc] sm:$0xf]  ;;  %v3533_v50 = vld [vmem:[#allocation7 + $0x18] sm:$0xf0] }
  0xa7   :  { %1648 = vmatpush.bf16.msra.mxu1 %v3532_v7  ;;  %v5092_v7 = vld [vmem:[#allocation7 + $0x6c] sm:$0xf]  ;;  %v3536_v0 = vor.u32 %v5080_v49, %v3533_v50  ;;  %v4237_v49 = vld [vmem:[#allocation7 + $0x598] sm:$0xf0] }
  0xa8   :  { %1689 = vmatpush.bf16.msrb.mxu2 %v3932_v61  ;;  %1676 = vmatpush.bf16.msra.mxu0 %v3788_v13  ;;  %v5222_v61 = vld [vmem:[#allocation7 + $0x474] sm:$0xf0]  ;;  %v5124_v13 = vld [vmem:[#allocation7 + $0x16c] sm:$0xf]  ;;  %v3584_v17 = vor.u32 %v5092_v7, %v3581_v8 }
  0xa9   :  { %1661 = vmatpush.bf16.msrb.mxu3 %v3676_v2  ;;  %v3600_v2 = vor.u32 %v5096_v56, %v3597_v58  ;;  %v4092_v5 = vor.u32 %v5222_v61, %v4091_v60  ;;  %v3712_v24 = vor.u32 %v5124_v13, %v3709_v15  ;;  %v4157_v56 = vld [vmem:[#allocation7 + $0x4f8] sm:$0xf0]  ;;  %v5168_v58 = vld [vmem:[#allocation7 + $0x2cc] sm:$0xf] }
  0xaa   :  { %1649 = vmatmul.bf16.vlgmr.msra.gmra.mxu1 %v5789_v10  ;;  %v5112_v61 = vld [vmem:[#allocation7 + $0x10c] sm:$0xf]  ;;  %v4160_v6 = vor.u32 %v5236_v55, %v4157_v56  ;;  %v4141_v15 = vld [vmem:[#allocation7 + $0x4d8] sm:$0xf0] }
  0xab   :  { %1697 = vmatpush.bf16.msrb.mxu1 %v4156_v12  ;;  %1677 = vmatmul.bf16.vlgmr.msra.gmra.mxu0 %v5791_v14  ;;  %v5218_v12 = vld [vmem:[#allocation7 + $0x454] sm:$0xf0]  ;;  %v5200_v8 = vld [vmem:[#allocation7 + $0x3cc] sm:$0xf]  ;;  %v3664_v13 = vor.u32 %v5112_v61, %v3661_v63  ;;  %v4093_v56 = vld [vmem:[#allocation7 + $0x478] sm:$0xf0] }
  0xac   :  { %1690 = vmatpush.bf16.msrb.mxu2 %v3916_v18  ;;  %1732 = vmatpush.bf16.msrb.mxu0 %v4300_v22  ;;  %v4203_v18 = vld [vmem:[#allocation7 + $0x548] sm:$0xf]  ;;  %v4076_v19 = vor.u32 %v5218_v12, %v4075_v11  ;;  %v5088_v22 = vld [vmem:[#allocation7 + $0x4c] sm:$0xf]  ;;  %v5827_v12 = vpop.f32.mrf.mxu1 }
  0xad   :  { %1662 = vmatpush.bf16.msrb.mxu3 %v3660_v23  ;;  %v3565_v23 = vld [vmem:[#allocation7 + $0x58] sm:$0xf0]  ;;  %v5232_v11 = vld [vmem:[#allocation7 + $0x4cc] sm:$0xf] }
  0xae   :  { %v3568_v31 = vor.u32 %v5088_v22, %v3565_v23  ;;  %v5264_v22 = vld [vmem:[#allocation7 + $0x5cc] sm:$0xf]  ;;  %v4269_v23 = vld [vmem:[#allocation7 + $0x5d8] sm:$0xf0] }
  0xaf   :  { %1698 = vmatpush.bf16.msrb.mxu1 %v4140_v30  ;;  %1691 = vmatmul.bf16.vlgmr.msrb.gmra.mxu2 %v5793_v20  ;;  %v4204_v30 = vor.u32 %v5250_v21, %v4203_v18  ;;  %v5839_v50 = vpop.f32.mrf.mxu3  ;;  %v5220_v55 = vld [vmem:[#allocation7 + $0x46c] sm:$0xf] }
  0xb0   :  { %1739 = vmatpush.bf16.msra.mxu2 %v3648_v28  ;;  %1663 = vmatmul.bf16.vlgmr.msrb.gmra.mxu3 %v5796_v27  ;;  %v5120_v28 = vld [vmem:[#allocation7 + $0x14c] sm:$0xf]  ;;  %v5829_v18 = vpop.f32.mrf.mxu2 }
  0xb1   :  { %1711 = vmatpush.bf16.msra.mxu3 %v4284_v26  ;;  %1753 = vmatpush.bf16.msra.mxu0 %v3776_v34  ;;  %v5214_v26 = vld [vmem:[#allocation7 + $0x434] sm:$0xf0]  ;;  %v3696_v37 = vor.u32 %v5120_v28, %v3693_v29  ;;  %v3997_v28 = vld [vmem:[#allocation7 + $0x3b8] sm:$0xf0]  ;;  %v5228_v29 = vld [vmem:[#allocation7 + $0x4ac] sm:$0xf] }
  0xb2   :  { %v4060_v33 = vor.u32 %v5214_v26, %v4059_v25  ;;  %v5246_v34 = vld [vmem:[#allocation7 + $0x534] sm:$0xf0]  ;;  %v5196_v26 = vld [vmem:[#allocation7 + $0x3ac] sm:$0xf] }
  0xb3   :  { %1699 = vmatpush.bf16.msrb.mxu1 %v4124_v42  ;;  %v5116_v42 = vld [vmem:[#allocation7 + $0x12c] sm:$0xf]  ;;  %v4188_v44 = vor.u32 %v5246_v34, %v4187_v32  ;;  %v3853_v32 = vld [vmem:[#allocation7 + $0x298] sm:$0xf0]  ;;  %v4000_v34 = vor.u32 %v5196_v26, %v3997_v28 }
  0xb4   :  { %1740 = vmatpush.bf16.msra.mxu2 %v3632_v40  ;;  %v5172_v40 = vld [vmem:[#allocation7 + $0x2ec] sm:$0xf] }
  0xb5   :  { %1712 = vmatpush.bf16.msra.mxu3 %v4268_v39  ;;  %1754 = vmatpush.bf16.msra.mxu0 %v3760_v46  ;;  %v5210_v39 = vld [vmem:[#allocation7 + $0x414] sm:$0xf0]  ;;  %v4171_v46 = vld [vmem:[#allocation7 + $0x508] sm:$0xf]  ;;  %v5252_v63 = vld [vmem:[#allocation7 + $0x56c] sm:$0xf] }
  0xb6   :  { %v4044_v47 = vor.u32 %v5210_v39, %v4043_v38  ;;  %v4172_v60 = vor.u32 %v5242_v48, %v4171_v46  ;;  %v5192_v39 = vld [vmem:[#allocation7 + $0x38c] sm:$0xf]  ;;  %v5837_v46 = vpop.f32.mrf.mxu1 }
  0xb7   :  { %1700 = vmatpush.bf16.msrb.mxu1 %v4108_v54  ;;  %v4029_v54 = vld [vmem:[#allocation7 + $0x3f8] sm:$0xf0]  ;;  %v5256_v48 = vld [vmem:[#allocation7 + $0x58c] sm:$0xf] }
  0xb8   :  { %1741 = vmatpush.bf16.msra.mxu2 %v3616_v52  ;;  %v3680_v52 = vor.u32 %v5116_v42, %v3677_v43  ;;  %v4109_v42 = vld [vmem:[#allocation7 + $0x498] sm:$0xf0]  ;;  %v5156_v43 = vld [vmem:[#allocation7 + $0x26c] sm:$0xf] }
  0xb9   :  { %1713 = vmatpush.bf16.msra.mxu3 %v4252_v51  ;;  %1755 = vmatpush.bf16.msra.mxu0 %v3744_v59  ;;  %v3904_v51 = vor.u32 %v5172_v40, %v3901_v41  ;;  %v3885_v59 = vld [vmem:[#allocation7 + $0x2d8] sm:$0xf0]  ;;  %v5224_v41 = vld [vmem:[#allocation7 + $0x48c] sm:$0xf] }
  0xba   :  { %v3888_v7 = vor.u32 %v5168_v58, %v3885_v59  ;;  %v3981_v40 = vld [vmem:[#allocation7 + $0x398] sm:$0xf0]  ;;  %v5152_v58 = vld [vmem:[#allocation7 + $0x24c] sm:$0xf] }
  0xbb   :  { %1701 = vmatpush.bf16.msrb.mxu1 %v4092_v5  ;;  %4307 = vmatmul.msk.bf16.vlgmr.msrb.gmra.mxu0 %vm1441_vm2, %v5801_v4  ;;  %v5825_v5 = vpop.f32.mrf.mxu0  ;;  %v3821_v59 = vld [vmem:[#allocation7 + $0x258] sm:$0xf0]  ;;  %v5212_v26 = vld [vmem:[#allocation7 + $0x42c] sm:$0xf] }
  0xbc   :  { %1742 = vmatpush.bf16.msra.mxu2 %v3600_v2  ;;  %v5268_v2 = vld [vmem:[#allocation7 + $0x5ec] sm:$0xf] }
  0xbd   :  { %1714 = vmatpush.bf16.msra.mxu3 %v4236_v1  ;;  %1756 = vmatpush.bf16.msra.mxu0 %v3728_v9  ;;  %v4032_v1 = vor.u32 %v5204_v53, %v4029_v54  ;;  %v4013_v9 = vld [vmem:[#allocation7 + $0x3d8] sm:$0xf0]  ;;  %v5188_v53 = vld [vmem:[#allocation7 + $0x36c] sm:$0xf] }
  0xbe   :  { %v4016_v21 = vor.u32 %v5200_v8, %v4013_v9  ;;  %v3965_v54 = vld [vmem:[#allocation7 + $0x378] sm:$0xf0]  ;;  %v5148_v9 = vld [vmem:[#allocation7 + $0x22c] sm:$0xf] }
  0xbf   :  { %1702 = vmatpush.bf16.msrb.mxu1 %v4076_v19  ;;  %v4288_v19 = vor.u32 %v5268_v2, %v4285_v3  ;;  %v3968_v61 = vor.u32 %v5188_v53, %v3965_v54  ;;  %v3824_v2 = vor.u32 %v5152_v58, %v3821_v59  ;;  %v5184_v3 = vld [vmem:[#allocation7 + $0x34c] sm:$0xf]  ;;  %v4077_v8 = vld [vmem:[#allocation7 + $0x458] sm:$0xf0]  ;;  %v5341_v53 = vld [vmem:[#allocation10 + $0x1ec] sm:$0xf0] }
  0xc0   :  { %1743 = vmatpush.bf16.msra.mxu2 %v3584_v17  ;;  %v3869_v17 = vld [vmem:[#allocation7 + $0x2b8] sm:$0xf0] }
  0xc1   :  { %1715 = vmatpush.bf16.msra.mxu3 %v4220_v16  ;;  %1757 = vmatpush.bf16.msra.mxu0 %v3712_v24  ;;  %v5164_v16 = vld [vmem:[#allocation7 + $0x2ac] sm:$0xf]  ;;  %v4144_v24 = vor.u32 %v5232_v11, %v4141_v15  ;;  %v3805_v11 = vld [vmem:[#allocation7 + $0x238] sm:$0xf0] }
  0xc2   :  { %v3872_v25 = vor.u32 %v5164_v16, %v3869_v17  ;;  %v5248_v16 = vld [vmem:[#allocation7 + $0x54c] sm:$0xf]  ;;  %v4205_v17 = vld [vmem:[#allocation7 + $0x558] sm:$0xf0] }
  0xc3   :  { %1703 = vmatpush.bf16.msrb.mxu1 %v4060_v33  ;;  %v4272_v33 = vor.u32 %v5264_v22, %v4269_v23  ;;  %v3808_v23 = vor.u32 %v5148_v9, %v3805_v11 }
  0xc4   :  { %1744 = vmatpush.bf16.msra.mxu2 %v3568_v31  ;;  %v5160_v31 = vld [vmem:[#allocation7 + $0x28c] sm:$0xf] }
  0xc5   :  { %1716 = vmatpush.bf16.msra.mxu3 %v4204_v30  ;;  %1758 = vmatpush.bf16.msra.mxu0 %v3696_v37  ;;  %v4125_v30 = vld [vmem:[#allocation7 + $0x4b8] sm:$0xf0]  ;;  %v3856_v38 = vor.u32 %v5160_v31, %v3853_v32  ;;  %v5845_v32 = vpop.f32.mrf.mxu3 }
  0xc6   :  { %v4128_v37 = vor.u32 %v5228_v29, %v4125_v30  ;;  %v4061_v29 = vld [vmem:[#allocation7 + $0x438] sm:$0xf0]  ;;  %v5144_v30 = vld [vmem:[#allocation7 + $0x20c] sm:$0xf] }
  0xc7   :  { %1704 = vmatpush.bf16.msrb.mxu1 %v4044_v47  ;;  %v3984_v47 = vor.u32 %v5192_v39, %v3981_v40  ;;  %v3789_v31 = vld [vmem:[#allocation7 + $0x218] sm:$0xf0]  ;;  %v4064_v39 = vor.u32 %v5212_v26, %v4061_v29  ;;  %v5329_v29 = vld [vmem:[#allocation10 + $0x18c] sm:$0xf0] }
  0xc8   :  { %1745 = vmatpush.bf16.msra.mxu2 %v3552_v45  ;;  %v5835_v45 = vpop.f32.mrf.mxu0  ;;  %v3792_v40 = vor.u32 %v5144_v30, %v3789_v31 }
  0xc9   :  { %1717 = vmatpush.bf16.msra.mxu3 %v4188_v44  ;;  %1759 = vmatpush.bf16.msra.mxu0 %v3680_v52  ;;  %v3837_v44 = vld [vmem:[#allocation7 + $0x278] sm:$0xf0] }
  0xca   :  { %1705 = vmatmul.bf16.vlgmr.msrb.gmra.mxu1 %v5805_v57  ;;  %v3840_v52 = vor.u32 %v5156_v43, %v3837_v44  ;;  %v5208_v43 = vld [vmem:[#allocation7 + $0x40c] sm:$0xf] }
  0xcb   :  { %1767 = vmatpush.bf16.msra.mxu1 %v3904_v51  ;;  %v5841_v51 = vpop.f32.mrf.mxu2  ;;  %v1468_v28 = vpop.f32.mrf.mxu1 }
  0xcc   :  { %1746 = vmatpush.bf16.msra.mxu2 %v3536_v0  ;;  %v4221_v0 = vld [vmem:[#allocation7 + $0x578] sm:$0xf0] }
  0xcd   :  { %1718 = vmatpush.bf16.msra.mxu3 %v4172_v60  ;;  %1760 = vmatpush.bf16.msra.mxu0 %v3664_v13  ;;  %v4240_v60 = vor.u32 %v5256_v48, %v4237_v49  ;;  %v4224_v13 = vor.u32 %v5252_v63, %v4221_v0  ;;  %v5309_v48 = vld [vmem:[#allocation10 + $0xec] sm:$0xf0] }
  0xce   :  { %v5305_v63 = vld [vmem:[#allocation10 + $0xcc] sm:$0xf0] }
  0xcf   :  { %1768 = vmatpush.bf16.msra.mxu1 %v3888_v7  ;;  %1747 = vmatmul.bf16.vlgmr.msra.gmra.mxu2 %v5789_v10  ;;  %v4256_v10 = vor.u32 %v5260_v35, %v4253_v36  ;;  %v5216_v7 = vld [vmem:[#allocation7 + $0x44c] sm:$0xf]  ;;  %v4301_v35 = vld [vmem:[#allocation7 + $0x618] sm:$0xf0] }
  0xd0   :  { %1795 = vmatpush.bf16.msrb.mxu2 %v4160_v6  ;;  %1719 = vmatmul.bf16.vlgmr.msra.gmra.mxu3 %v5807_v62  ;;  %v3949_v6 = vld [vmem:[#allocation7 + $0x358] sm:$0xf0]  ;;  %v4080_v22 = vor.u32 %v5216_v7, %v4077_v8 }
  0xd1   :  { %1781 = vmatpush.bf16.msrb.mxu3 %v4032_v1  ;;  %1809 = vmatpush.bf16.msrb.mxu0 %v4288_v19  ;;  %v4096_v1 = vor.u32 %v5220_v55, %v4093_v56  ;;  %v3952_v15 = vor.u32 %v5184_v3, %v3949_v6  ;;  %v1454_v19 = vpop.f32.mrf.mxu0  ;;  %v5240_v55 = vld [vmem:[#allocation7 + $0x50c] sm:$0xf]  ;;  %v4173_v56 = vld [vmem:[#allocation7 + $0x518] sm:$0xf0]  ;;  %v4535_v3 = vld [vmem:[#allocation10 + $0x1c0] sm:$0xf]  ;;  %v1496_v8 = vpop.f32.mrf.mxu3 }
  0xd2   :  { %1761 = vmatmul.bf16.vlgmr.msra.gmra.mxu0 %v5796_v27  ;;  %v4112_v27 = vor.u32 %v5224_v41, %v4109_v42  ;;  %v5176_v41 = vld [vmem:[#allocation7 + $0x30c] sm:$0xf]  ;;  %v3917_v42 = vld [vmem:[#allocation7 + $0x318] sm:$0xf0]  ;;  %v1455_v44 = vadd.f32 %v1454_v19, %v5825_v5  ;;  %v5337_v6 = vld [vmem:[#allocation10 + $0x1cc] sm:$0xf0] }
  0xd3   :  { %1769 = vmatpush.bf16.msra.mxu1 %v3872_v25  ;;  %v3933_v25 = vld [vmem:[#allocation7 + $0x338] sm:$0xf0]  ;;  %v3920_v54 = vor.u32 %v5176_v41, %v3917_v42  ;;  %v1470_v7 = vpop.f32.mrf.mxu1  ;;  %v4519_v19 = vld [vmem:[#allocation10 + $0x1a0] sm:$0xf] }
  0xd4   :  { %1796 = vmatpush.bf16.msrb.mxu2 %v4144_v24  ;;  %v5180_v24 = vld [vmem:[#allocation7 + $0x32c] sm:$0xf] }
  0xd5   :  { %1782 = vmatpush.bf16.msrb.mxu3 %v4016_v21  ;;  %1810 = vmatpush.bf16.msrb.mxu0 %v4272_v33  ;;  %v5843_v21 = vpop.f32.mrf.mxu2  ;;  %v4208_v33 = vor.u32 %v5248_v16, %v4205_v17  ;;  %v3936_v36 = vor.u32 %v5180_v24, %v3933_v25  ;;  %v5301_v16 = vld [vmem:[#allocation10 + $0xac] sm:$0xf0]  ;;  %v4536_v17 = vor.u32 %v5337_v6, %v4535_v3  ;;  %v4311_v3 = vld [vmem:[#allocation10] sm:$0xf] }
  0xd6   :  { %v5297_v25 = vld [vmem:[#allocation10 + $0x8c] sm:$0xf0] }
  0xd7   :  { %1770 = vmatpush.bf16.msra.mxu1 %v3856_v38  ;;  %v4189_v38 = vld [vmem:[#allocation7 + $0x538] sm:$0xf0]  ;;  %v5281_v6 = vld [vmem:[#allocation10 + $0xc] sm:$0xf0] }
  0xd8   :  { %1797 = vmatpush.bf16.msrb.mxu2 %v4128_v37  ;;  %v5244_v37 = vld [vmem:[#allocation7 + $0x52c] sm:$0xf] }
  0xd9   :  { %1783 = vmatpush.bf16.msrb.mxu3 %v4000_v34  ;;  %1811 = vmatpush.bf16.msrb.mxu0 %v4256_v10  ;;  %v5272_v34 = vld [vmem:[#allocation7 + $0x60c] sm:$0xf]  ;;  %v4045_v10 = vld [vmem:[#allocation7 + $0x418] sm:$0xf0]  ;;  %v1456_v0 = vpop.f32.mrf.mxu0 }
  0xda   :  { %v4304_v49 = vor.u32 %v5272_v34, %v4301_v35  ;;  %v4048_v58 = vor.u32 %v5208_v43, %v4045_v10  ;;  %v5293_v35 = vld [vmem:[#allocation10 + $0x6c] sm:$0xf0]  ;;  %v4343_v43 = vld [vmem:[#allocation10 + $0x40] sm:$0xf] }
  0xdb   :  { %1771 = vmatpush.bf16.msra.mxu1 %v3840_v52  ;;  %v4551_v52 = vld [vmem:[#allocation10 + $0x1e0] sm:$0xf] }
  0xdc   :  { %1798 = vmatpush.bf16.msrb.mxu2 %v4112_v27  ;;  %v4192_v27 = vor.u32 %v5244_v37, %v4189_v38  ;;  %v4552_v5 = vor.u32 %v5341_v53, %v4551_v52  ;;  %v1498_v37 = vpop.f32.mrf.mxu3  ;;  %v5321_v52 = vld [vmem:[#allocation10 + $0x14c] sm:$0xf0] }
  0xdd   :  { %1784 = vmatpush.bf16.msrb.mxu3 %v3984_v47  ;;  %1812 = vmatpush.bf16.msrb.mxu0 %v4240_v60  ;;  %v4423_v47 = vld [vmem:[#allocation10 + $0xe0] sm:$0xf]  ;;  %v1469_v60 = vadd.f32 %v1468_v28, %v1455_v44  ;;  %v5289_v44 = vld [vmem:[#allocation10 + $0x4c] sm:$0xf0] }
  0xde   :  { %v4424_v59 = vor.u32 %v5309_v48, %v4423_v47  ;;  %v4503_v28 = vld [vmem:[#allocation10 + $0x180] sm:$0xf] }
  0xdf   :  { %1772 = vmatpush.bf16.msra.mxu1 %v3824_v2  ;;  %v4176_v2 = vor.u32 %v5240_v55, %v4173_v56  ;;  %v1483_v11 = vadd.f32 %v5843_v21, %v1469_v60  ;;  %v4375_v21 = vld [vmem:[#allocation10 + $0x80] sm:$0xf]  ;;  %v4344_v55 = vor.u32 %v5289_v44, %v4343_v43 }
  0xe0   :  { %1799 = vmatpush.bf16.msrb.mxu2 %v4096_v1  ;;  %v1484_v1 = vpop.f32.mrf.mxu2 }
  0xe1   :  { %1785 = vmatpush.bf16.msrb.mxu3 %v3968_v61  ;;  %1813 = vmatpush.bf16.msrb.mxu0 %v4224_v13  ;;  %v4407_v61 = vld [vmem:[#allocation10 + $0xc0] sm:$0xf]  ;;  %v1457_v13 = vadd.f32 %v1456_v0, %v5835_v45  ;;  %v5317_v0 = vld [vmem:[#allocation10 + $0x12c] sm:$0xf0] }
  0xe2   :  { %v4408_v9 = vor.u32 %v5305_v63, %v4407_v61 }
  0xe3   :  { %1773 = vmatpush.bf16.msra.mxu1 %v3808_v23  ;;  %v1497_v23 = vadd.f32 %v1496_v8, %v1483_v11  ;;  %v1471_v24 = vadd.f32 %v1470_v7, %v1457_v13  ;;  %v4425_v8 = vld [vmem:[#allocation10 + $0xf0] sm:$0xf0]  ;;  %v4439_v11 = vld [vmem:[#allocation10 + $0x100] sm:$0xf] }
  0xe4   :  { %1800 = vmatpush.bf16.msrb.mxu2 %v4080_v22  ;;  %v5333_v22 = vld [vmem:[#allocation10 + $0x1ac] sm:$0xf0] }
  0xe5   :  { %1786 = vmatpush.bf16.msrb.mxu3 %v3952_v15  ;;  %1814 = vmatpush.bf16.msrb.mxu0 %v4208_v33  ;;  %v4391_v15 = vld [vmem:[#allocation10 + $0xa0] sm:$0xf]  ;;  %v4520_v45 = vor.u32 %v5333_v22, %v4519_v19  ;;  %v4376_v33 = vor.u32 %v5297_v25, %v4375_v21  ;;  %v1485_v34 = vadd.f32 %v1484_v1, %v1471_v24  ;;  %v4553_v19 = vld [vmem:[#allocation10 + $0x1f0] sm:$0xf0] }
  0xe6   :  { %v4312_v22 = vor.u32 %v5281_v6, %v4311_v3 }
  0xe7   :  { %1774 = vmatpush.bf16.msra.mxu1 %v3792_v40  ;;  %v1510_v26 = vpop.f32.mrf.mxu0  ;;  %v5857_v40 = vld [vmem:[%s5938_s4] sm:$0xf]  ;;  %v1499_v42 = vadd.f32 %v1498_v37, %v1485_v34  ;;  %v4393_v34 = vld [vmem:[#allocation10 + $0xb0] sm:$0xf0] }
  0xe8   :  { %1801 = vmatpush.bf16.msrb.mxu2 %v4064_v39  ;;  %v1511_v30 = vadd.f32 %v1510_v26, %v1497_v23  ;;  %v1538_v31 = vpop.f32.mrf.mxu2  ;;  %v5325_v39 = vld [vmem:[#allocation10 + $0x16c] sm:$0xf0]  ;;  %v1839_v48 = vperm.slane %v5857_v40, 0  ;;  %v4409_v26 = vld [vmem:[#allocation10 + $0xd0] sm:$0xf0] }
  0xe9   :  { %1787 = vmatpush.bf16.msrb.mxu3 %v3936_v36  ;;  %1815 = vmatpush.bf16.msrb.mxu0 %v4192_v27  ;;  %v4504_v36 = vor.u32 %v5329_v29, %v4503_v28  ;;  %v4471_v27 = vld [vmem:[#allocation10 + $0x140] sm:$0xf] }
  0xea   :  { %1775 = vmatmul.bf16.vlgmr.msra.gmra.mxu1 %v5791_v14  ;;  %v4392_v14 = vor.u32 %v5301_v16, %v4391_v15  ;;  %v4472_v60 = vor.u32 %v5321_v52, %v4471_v27  ;;  %v5313_v15 = vld [vmem:[#allocation10 + $0x10c] sm:$0xf0]  ;;  %v5339_v16 = vld [vmem:[#allocation10 + $0x1e4] sm:$0xf]  ;;  %v4679_v37 = vld [vmem:[#allocation10 + $0x2e0] sm:$0xf] }
  0xeb   :  { %1830 = vmatpush.bf16.msrb.mxu1 %v4304_v49  ;;  %v4440_v21 = vor.u32 %v5313_v15, %v4439_v11  ;;  %v4556_v28 = vor.u32 %v5339_v16, %v4553_v19  ;;  %v5369_v27 = vld [vmem:[#allocation10 + $0x2cc] sm:$0xf0]  ;;  %v4329_v19 = vld [vmem:[#allocation10 + $0x30] sm:$0xf0] }
  0xec   :  { %1802 = vmatpush.bf16.msrb.mxu2 %v4048_v58  ;;  %v4327_v58 = vld [vmem:[#allocation10 + $0x20] sm:$0xf]  ;;  %v5361_v11 = vld [vmem:[#allocation10 + $0x28c] sm:$0xf0] }
  0xed   :  { %1788 = vmatpush.bf16.msrb.mxu3 %v3920_v54  ;;  %1816 = vmatpush.bf16.msrb.mxu0 %v4176_v2 }
  0xef   :  { %2675 = vmatpush.bf16.msra.mxu1 %v4552_v5  ;;  %1803 = vmatmul.bf16.vlgmr.msrb.gmra.mxu2 %v5805_v57  ;;  %v4359_v57 = vld [vmem:[#allocation10 + $0x60] sm:$0xf]  ;;  %v1512_v49 = vpop.f32.mrf.mxu0 }
  0xf0   :  { %1789 = vmatmul.bf16.vlgmr.msrb.gmra.mxu3 %v5793_v20  ;;  %1817 = vmatmul.bf16.vlgmr.msrb.gmra.mxu0 %v5807_v62  ;;  %v1524_v20 = vpop.f32.mrf.mxu1  ;;  %v4487_v62 = vld [vmem:[#allocation10 + $0x160] sm:$0xf]  ;;  %v4360_v41 = vor.u32 %v5293_v35, %v4359_v57  ;;  %v1513_v53 = vadd.f32 %v1512_v49, %v1499_v42  ;;  %v1540_v61 = vpop.f32.mrf.mxu2  ;;  %v5331_v35 = vld [vmem:[#allocation10 + $0x1a4] sm:$0xf]  ;;  %v4377_v42 = vld [vmem:[#allocation10 + $0x90] sm:$0xf0] }
  0xf1   :  { %2661 = vmatpush.bf16.msra.mxu3 %v4424_v59  ;;  %v1525_v38 = vadd.f32 %v1524_v20, %v1511_v30  ;;  %v4488_v10 = vor.u32 %v5325_v39, %v4487_v62  ;;  %v5285_v59 = vld [vmem:[#allocation10 + $0x2c] sm:$0xf0]  ;;  %v4455_v5 = vld [vmem:[#allocation10 + $0x120] sm:$0xf]  ;;  %v5335_v30 = vld [vmem:[#allocation10 + $0x1c4] sm:$0xf] }
  0xf2   :  { %v4328_v2 = vor.u32 %v5285_v59, %v4327_v58  ;;  %v4537_v20 = vld [vmem:[#allocation10 + $0x1d0] sm:$0xf0]  ;;  %v4663_v49 = vld [vmem:[#allocation10 + $0x2c0] sm:$0xf]  ;;  %v5323_v58 = vld [vmem:[#allocation10 + $0x164] sm:$0xf] }
  0xf3   :  { %2676 = vmatpush.bf16.msra.mxu1 %v4536_v17  ;;  %v1539_v47 = vadd.f32 %v1538_v31, %v1525_v38  ;;  %v4540_v57 = vor.u32 %v5335_v30, %v4537_v20  ;;  %v5373_v38 = vld [vmem:[#allocation10 + $0x2ec] sm:$0xf0]  ;;  %v4489_v59 = vld [vmem:[#allocation10 + $0x170] sm:$0xf0]  ;;  %v5279_v20 = vld [vmem:[#allocation10 + $0x4] sm:$0xf] }
  0xf4   :  { %v4680_v39 = vor.u32 %v5373_v38, %v4679_v37  ;;  %v4441_v37 = vld [vmem:[#allocation10 + $0x110] sm:$0xf0]  ;;  %v4599_v38 = vld [vmem:[#allocation10 + $0x240] sm:$0xf] }
  0xf5   :  { %2662 = vmatpush.bf16.msra.mxu3 %v4408_v9  ;;  %v1847_v63 = vadd.f32 %v1839_v48, %v1539_v47  ;;  %v4456_v9 = vor.u32 %v5317_v0, %v4455_v5  ;;  %v5327_v47 = vld [vmem:[#allocation10 + $0x184] sm:$0xf] }
  0xf6   :  { %2689 = vmatpush.bf16.msra.mxu2 %v4680_v39  ;;  %v5287_v0 = vld [vmem:[#allocation10 + $0x44] sm:$0xf] }
  0xf7   :  { %2677 = vmatpush.bf16.msra.mxu1 %v4520_v45  ;;  %v1863_v13 = vmul.f32 0.2, %v1847_v63  ;;  %vm1855_vm3 = vcmp.gt.f32.partialorder %v1847_v63, 0.0  ;;  %v5303_v45 = vld [vmem:[#allocation10 + $0xc4] sm:$0xf] }
  0xf8   :  { %v1526_v54 = vpop.f32.mrf.mxu1  ;;  %v4412_v31 = vor.u32 %v5303_v45, %v4409_v26  ;;  %v1566_v44 = vpop.f32.mrf.mxu2  ;;  %v4615_v45 = vld [vmem:[#allocation10 + $0x260] sm:$0xf]  ;;  %v5357_v26 = vld [vmem:[#allocation10 + $0x26c] sm:$0xf0] }
  0xf9   :  { %2663 = vmatpush.bf16.msra.mxu3 %v4392_v14  ;;  %v1527_v56 = vadd.f32 %v1526_v54, %v1513_v53  ;;  %v5862_v14 = vpop.f32.mrf.mxu3  ;;  %v1871_v25 = vsel %vm1855_vm3, %v1847_v63, %v1863_v13  ;;  %v4664_v53 = vor.u32 %v5369_v27, %v4663_v49  ;;  %v5291_v54 = vld [vmem:[#allocation10 + $0x64] sm:$0xf]  ;;  %v5306_v49 = vld [vmem:[#allocation10 + $0xd4] sm:$0xf0] }
  0xfa   :  { %4308 = vmatmul.msk.bf16.vlgmr.msrb.gmra.mxu1 %vm1441_vm2, %v5801_v4  ;;  %v5307_v4 = vld [vmem:[#allocation10 + $0xe4] sm:$0xf] }
  0xfb   :  { %2678 = vmatpush.bf16.msra.mxu1 %v4504_v36  ;;  %v1541_v1 = vadd.f32 %v1540_v61, %v1527_v56  ;;  %v4428_v23 = vor.u32 %v5307_v4, %v4425_v8  ;;  %v4521_v36 = vld [vmem:[#allocation10 + $0x1b0] sm:$0xf0]  ;;  %2690 = vmatpush.bf16.msra.mxu2 %v4664_v53  ;;  %v5365_v61 = vld [vmem:[#allocation10 + $0x2ac] sm:$0xf0]  ;;  %v1553_v8 = vadd.f32 %v5862_v14, %v5827_v12  ;;  %v4583_v53 = vld [vmem:[#allocation10 + $0x220] sm:$0xf] }
  0xfc   :  { %v4524_v43 = vor.u32 %v5331_v35, %v4521_v36  ;;  %v4473_v4 = vld [vmem:[#allocation10 + $0x150] sm:$0xf0]  ;;  %v4616_v12 = vor.u32 %v5357_v26, %v4615_v45  ;;  %v5310_v35 = vld [vmem:[#allocation10 + $0xf4] sm:$0xf0]  ;;  %v5311_v36 = vld [vmem:[#allocation10 + $0x104] sm:$0xf] }
  0xfd   :  { %2664 = vmatpush.bf16.msra.mxu3 %v4376_v33  ;;  %v1851_v7 = vadd.f32 %v1839_v48, %v1541_v1  ;;  %v5299_v33 = vld [vmem:[#allocation10 + $0xa4] sm:$0xf]  ;;  %v4505_v48 = vld [vmem:[#allocation10 + $0x190] sm:$0xf0]  ;;  %v5405_v45 = vld [vmem:[#allocation10 + $0x3ec] sm:$0xf0] }
  0xfe   :  { %v4396_v62 = vor.u32 %v5299_v33, %v4393_v34  ;;  %v4508_v56 = vor.u32 %v5327_v47, %v4505_v48  ;;  %v4345_v1 = vld [vmem:[#allocation10 + $0x50] sm:$0xf0]  ;;  %v4431_v33 = vld [vmem:[#allocation10 + $0xe8] sm:$0xf]  ;;  %v4444_v47 = vor.u32 %v5311_v36, %v4441_v37 }
  0xff   :  { %2679 = vmatpush.bf16.msra.mxu1 %v4488_v10  ;;  %vm1859_vm4 = vcmp.gt.f32.partialorder %v1851_v7, 0.0  ;;  %v1867_v17 = vmul.f32 0.2, %v1851_v7  ;;  %v4348_v15 = vor.u32 %v5287_v0, %v4345_v1  ;;  %v4415_v48 = vld [vmem:[#allocation10 + $0xc8] sm:$0xf] }
 0x100   :  { %v1568_v13 = vpop.f32.mrf.mxu2  ;;  %v4567_v0 = vld [vmem:[#allocation10 + $0x200] sm:$0xf]  ;;  %v5345_v1 = vld [vmem:[#allocation10 + $0x20c] sm:$0xf0] }
 0x101   :  { %2665 = vmatpush.bf16.msra.mxu3 %v4360_v41  ;;  %v1875_v24 = vsel %vm1859_vm4, %v1851_v7, %v1867_v17  ;;  %v5295_v41 = vld [vmem:[#allocation10 + $0x84] sm:$0xf]  ;;  %v1554_v10 = vpop.f32.mrf.mxu3 }
 0x102   :  { %v5864_v29 = vpack.c.bf16 %v1875_v24, %v1871_v25  ;;  %v4380_v52 = vor.u32 %v5295_v41, %v4377_v42  ;;  %v5319_v7 = vld [vmem:[#allocation10 + $0x144] sm:$0xf]  ;;  %v1567_v25 = vadd.f32 %v1566_v44, %v1553_v8  ;;  %v1555_v14 = vadd.f32 %v1554_v10, %v5837_v46 }
 0x103   :  { %2680 = vmatpush.bf16.msra.mxu1 %v4472_v60  ;;  %v4647_v60 = vld [vmem:[#allocation10 + $0x2a0] sm:$0xf]  ;;  %v5283_v17 = vld [vmem:[#allocation10 + $0x24] sm:$0xf]  ;;  %v4432_v10 = vor.u32 %v5310_v35, %v4431_v33 }
 0x104   :  { %v4648_v5 = vor.u32 %v5365_v61, %v4647_v60  ;;  %v5315_v24 = vld [vmem:[#allocation10 + $0x124] sm:$0xf]  ;;  %v1569_v44 = vadd.f32 %v1568_v13, %v1555_v14  ;;  %v4399_v60 = vld [vmem:[#allocation10 + $0xa8] sm:$0xf]  ;;  %v5302_v61 = vld [vmem:[#allocation10 + $0xb4] sm:$0xf0] }
 0x105   :  { %2666 = vmatpush.bf16.msra.mxu3 %v4344_v55  ;;  %v4361_v55 = vld [vmem:[#allocation10 + $0x70] sm:$0xf0]  ;;  %v5363_v33 = vld [vmem:[#allocation10 + $0x2a4] sm:$0xf] }
 0x106   :  { %v4364_v63 = vor.u32 %v5291_v54, %v4361_v55  ;;  %2691 = vmatpush.bf16.msra.mxu2 %v4648_v5  ;;  %v5349_v54 = vld [vmem:[#allocation10 + $0x22c] sm:$0xf0] }
 0x107   :  { %2681 = vmatpush.bf16.msra.mxu1 %v4456_v9  ;;  %v1580_v3 = vpop.f32.mrf.mxu0  ;;  %v4631_v9 = vld [vmem:[#allocation10 + $0x280] sm:$0xf] }
 0x108   :  { %v4632_v16 = vor.u32 %v5361_v11, %v4631_v9  ;;  %v1581_v30 = vadd.f32 %v1580_v3, %v1567_v25  ;;  %v4568_v3 = vor.u32 %v5345_v1, %v4567_v0  ;;  %v4400_v9 = vor.u32 %v5302_v61, %v4399_v60  ;;  %v4807_v25 = vld [vmem:[#allocation10 + $0x3e0] sm:$0xf]  ;;  %v5355_v61 = vld [vmem:[#allocation10 + $0x264] sm:$0xf]  ;;  %v4527_v1 = vld [vmem:[#allocation10 + $0x1a8] sm:$0xf] }
 0x109   :  { %2667 = vmatpush.bf16.msra.mxu3 %v4328_v2  ;;  %v4492_v2 = vor.u32 %v5323_v58, %v4489_v59  ;;  %v4416_v58 = vor.u32 %v5306_v49, %v4415_v48  ;;  %v4808_v14 = vor.u32 %v5405_v45, %v4807_v25  ;;  %v5389_v25 = vld [vmem:[#allocation10 + $0x36c] sm:$0xf0] }
 0x10a   :  { %2692 = vmatpush.bf16.msra.mxu2 %v4632_v16  ;;  %v5298_v16 = vld [vmem:[#allocation10 + $0x94] sm:$0xf0] }
 0x10b   :  { %2682 = vmatpush.bf16.msra.mxu1 %v4440_v21  ;;  %v4457_v21 = vld [vmem:[#allocation10 + $0x130] sm:$0xf0]  ;;  %2703 = vmatpush.bf16.msra.mxu0 %v4808_v14  ;;  %v5304_v14 = vld [vmem:[#allocation10 + $0xcc] sm:$0xf] }
 0x10c   :  { %v4460_v34 = vor.u32 %v5315_v24, %v4457_v21 }
 0x10d   :  { %2668 = vmatpush.bf16.msra.mxu3 %v4312_v22  ;;  %v4476_v22 = vor.u32 %v5319_v7, %v4473_v4  ;;  %v4681_v7 = vld [vmem:[#allocation10 + $0x2f0] sm:$0xf0] }
 0x10e   :  { %2693 = vmatpush.bf16.msra.mxu2 %v4616_v12  ;;  %v5294_v12 = vld [vmem:[#allocation10 + $0x74] sm:$0xf0] }
 0x10f   :  { %2731 = vmatpush.bf16.msrb.mxu1 %v4556_v28  ;;  %v1608_v6 = vpop.f32.mrf.mxu3  ;;  %v4332_v28 = vor.u32 %v5283_v17, %v4329_v19  ;;  %v1582_v39 = vpop.f32.mrf.mxu0  ;;  %v5367_v17 = vld [vmem:[#allocation10 + $0x2c4] sm:$0xf]  ;;  %v4665_v19 = vld [vmem:[#allocation10 + $0x2d0] sm:$0xf0] }
 0x110   :  { %2669 = vmatmul.bf16.vlgmr.msra.gmra.mxu3 %v5864_v29  ;;  %v4668_v21 = vor.u32 %v5367_v17, %v4665_v19  ;;  %v5351_v17 = vld [vmem:[#allocation10 + $0x244] sm:$0xf]  ;;  %v4601_v19 = vld [vmem:[#allocation10 + $0x250] sm:$0xf0] }
 0x111   :  { %2717 = vmatpush.bf16.msrb.mxu3 %v4428_v23  ;;  %v1594_v23 = vpop.f32.mrf.mxu1 }
 0x112   :  { %v1622_v41 = vpop.f32.mrf.mxu2  ;;  %v1595_v46 = vadd.f32 %v1594_v23, %v1581_v30 }
 0x113   :  { %2732 = vmatpush.bf16.msrb.mxu1 %v4540_v57 }
 0x114   :  { %v1609_v27 = vadd.f32 %v1608_v6, %v1595_v46  ;;  %v5371_v6 = vld [vmem:[#allocation10 + $0x2e4] sm:$0xf] }
 0x115   :  { %2718 = vmatpush.bf16.msrb.mxu3 %v4412_v31  ;;  %v4313_v31 = vld [vmem:[#allocation10 + $0x10] sm:$0xf0]  ;;  %v4684_v11 = vor.u32 %v5371_v6, %v4681_v7  ;;  %v5359_v46 = vld [vmem:[#allocation10 + $0x284] sm:$0xf]  ;;  %v5393_v6 = vld [vmem:[#allocation10 + $0x38c] sm:$0xf0] }
 0x116   :  { %v4316_v42 = vor.u32 %v5279_v20, %v4313_v31  ;;  %v4559_v20 = vld [vmem:[#allocation10 + $0x1e8] sm:$0xf]  ;;  %v5342_v31 = vld [vmem:[#allocation10 + $0x1f4] sm:$0xf0] }
 0x117   :  { %2733 = vmatpush.bf16.msrb.mxu1 %v4524_v43  ;;  %v1610_v57 = vpop.f32.mrf.mxu3 }
 0x119   :  { %2719 = vmatpush.bf16.msrb.mxu3 %v4396_v62  ;;  %v5353_v62 = vld [vmem:[#allocation10 + $0x24c] sm:$0xf0]  ;;  %v1596_v55 = vpop.f32.mrf.mxu1 }
 0x11a   :  { %v4600_v43 = vor.u32 %v5353_v62, %v4599_v38  ;;  %v1624_v13 = vpop.f32.mrf.mxu2  ;;  %v4791_v38 = vld [vmem:[#allocation10 + $0x3c0] sm:$0xf]  ;;  %v5401_v62 = vld [vmem:[#allocation10 + $0x3cc] sm:$0xf0] }
 0x11b   :  { %2734 = vmatpush.bf16.msrb.mxu1 %v4508_v56  ;;  %v4584_v56 = vor.u32 %v5349_v54, %v4583_v53  ;;  %v4775_v54 = vld [vmem:[#allocation10 + $0x3a0] sm:$0xf] }
 0x11c   :  { %2694 = vmatpush.bf16.msra.mxu2 %v4600_v43 }
 0x11d   :  { %2720 = vmatpush.bf16.msrb.mxu3 %v4380_v52  ;;  %v1583_v52 = vadd.f32 %v1582_v39, %v1569_v44  ;;  %v4351_v39 = vld [vmem:[#allocation10 + $0x48] sm:$0xf]  ;;  %v4560_v44 = vor.u32 %v5342_v31, %v4559_v20  ;;  %v5347_v20 = vld [vmem:[#allocation10 + $0x224] sm:$0xf]  ;;  %v4585_v31 = vld [vmem:[#allocation10 + $0x230] sm:$0xf0] }
 0x11f   :  { %2735 = vmatpush.bf16.msrb.mxu1 %v4492_v2  ;;  %v1597_v5 = vadd.f32 %v1596_v55, %v1583_v52  ;;  %v1840_v2 = vperm.slane %v5857_v40, 1  ;;  %v5338_v52 = vld [vmem:[#allocation10 + $0x1d4] sm:$0xf0] }
 0x120   :  { %2695 = vmatpush.bf16.msra.mxu2 %v4584_v56  ;;  %v4335_v56 = vld [vmem:[#allocation10 + $0x28] sm:$0xf] }
 0x121   :  { %2721 = vmatpush.bf16.msrb.mxu3 %v4364_v63  ;;  %v1636_v59 = vpop.f32.mrf.mxu3  ;;  %v1623_v63 = vadd.f32 %v1622_v41, %v1609_v27  ;;  %v1611_v4 = vadd.f32 %v1610_v57, %v1597_v5  ;;  %v5290_v41 = vld [vmem:[#allocation10 + $0x54] sm:$0xf0]  ;;  %v4543_v27 = vld [vmem:[#allocation10 + $0x1c8] sm:$0xf] }
 0x122   :  { %v4352_v49 = vor.u32 %v5290_v41, %v4351_v39  ;;  %v4544_v5 = vor.u32 %v5338_v52, %v4543_v27  ;;  %v5300_v41 = vld [vmem:[#allocation10 + $0xac] sm:$0xf]  ;;  %v5381_v27 = vld [vmem:[#allocation10 + $0x32c] sm:$0xf0] }
 0x123   :  { %2736 = vmatpush.bf16.msrb.mxu1 %v4476_v22  ;;  %v1637_v8 = vadd.f32 %v1636_v59, %v1623_v63  ;;  %v1625_v22 = vadd.f32 %v1624_v13, %v1611_v4  ;;  %v5397_v59 = vld [vmem:[#allocation10 + $0x3ac] sm:$0xf0]  ;;  %v4617_v63 = vld [vmem:[#allocation10 + $0x270] sm:$0xf0]  ;;  %v5334_v4 = vld [vmem:[#allocation10 + $0x1b4] sm:$0xf0] }
 0x124   :  { %2696 = vmatpush.bf16.msra.mxu2 %v4568_v3  ;;  %v4776_v60 = vor.u32 %v5397_v59, %v4775_v54  ;;  %v4759_v3 = vld [vmem:[#allocation10 + $0x380] sm:$0xf]  ;;  %v4479_v54 = vld [vmem:[#allocation10 + $0x148] sm:$0xf]  ;;  %v5296_v59 = vld [vmem:[#allocation10 + $0x8c] sm:$0xf] }
 0x125   :  { %2722 = vmatpush.bf16.msrb.mxu3 %v4348_v15  ;;  %v4383_v15 = vld [vmem:[#allocation10 + $0x88] sm:$0xf]  ;;  %v1848_v23 = vadd.f32 %v1840_v2, %v1637_v8 }
 0x126   :  { %v4384_v24 = vor.u32 %v5298_v16, %v4383_v15  ;;  %v4319_v8 = vld [vmem:[#allocation10 + $0x8] sm:$0xf]  ;;  %v5308_v15 = vld [vmem:[#allocation10 + $0xec] sm:$0xf]  ;;  %v4433_v16 = vld [vmem:[#allocation10 + $0xf8] sm:$0xf0] }
 0x127   :  { %2737 = vmatpush.bf16.msrb.mxu1 %v4460_v34  ;;  %v4649_v34 = vld [vmem:[#allocation10 + $0x2b0] sm:$0xf0]  ;;  %v1864_v57 = vmul.f32 0.2, %v1848_v23  ;;  %vm1856_vm5 = vcmp.gt.f32.partialorder %v1848_v23, 0.0  ;;  %v1650_v13 = vpop.f32.mrf.mxu1  ;;  %v4436_v45 = vor.u32 %v5308_v15, %v4433_v16 }
 0x128   :  { %2745 = vmatpush.bf16.msrb.mxu2 %v4684_v11  ;;  %v4652_v37 = vor.u32 %v5363_v33, %v4649_v34  ;;  %v5875_v7 = vpop.f32.mrf.mxu0  ;;  %v4760_v11 = vor.u32 %v5393_v6, %v4759_v3  ;;  %v1651_v52 = vadd.f32 %v1650_v13, %v5829_v18  ;;  %v5318_v18 = vld [vmem:[#allocation10 + $0x134] sm:$0xf0]  ;;  %v5403_v6 = vld [vmem:[#allocation10 + $0x3e4] sm:$0xf]  ;;  %v4369_v13 = vld [vmem:[#allocation10 + $0x78] sm:$0xf0] }
 0x129   :  { %2723 = vmatpush.bf16.msrb.mxu3 %v4332_v28  ;;  %v1638_v26 = vpop.f32.mrf.mxu3  ;;  %v4367_v28 = vld [vmem:[#allocation10 + $0x68] sm:$0xf] }
 0x12a   :  { %v1639_v30 = vadd.f32 %v1638_v26, %v1625_v22  ;;  %v4368_v36 = vor.u32 %v5294_v12, %v4367_v28  ;;  %v4528_v22 = vor.u32 %v5334_v4, %v4527_v1  ;;  %v4511_v26 = vld [vmem:[#allocation10 + $0x188] sm:$0xf]  ;;  %v5330_v28 = vld [vmem:[#allocation10 + $0x194] sm:$0xf0]  ;;  %v5377_v1 = vld [vmem:[#allocation10 + $0x30c] sm:$0xf0] }
 0x12b   :  { %2738 = vmatpush.bf16.msrb.mxu1 %v4444_v47  ;;  %v1872_v47 = vsel %vm1856_vm5, %v1848_v23, %v1864_v57  ;;  %v4512_v34 = vor.u32 %v5330_v28, %v4511_v26  ;;  %v4588_v57 = vor.u32 %v5347_v20, %v4585_v31  ;;  %v4809_v4 = vld [vmem:[#allocation10 + $0x3f0] sm:$0xf0]  ;;  %v5399_v26 = vld [vmem:[#allocation10 + $0x3c4] sm:$0xf] }
 0x12c   :  { %2746 = vmatpush.bf16.msrb.mxu2 %v4668_v21  ;;  %v1852_v35 = vadd.f32 %v1840_v2, %v1639_v30  ;;  %v4620_v2 = vor.u32 %v5355_v61, %v4617_v63  ;;  %v4743_v21 = vld [vmem:[#allocation10 + $0x360] sm:$0xf]  ;;  %v4417_v30 = vld [vmem:[#allocation10 + $0xd8] sm:$0xf0]  ;;  %v4812_v15 = vor.u32 %v5403_v6, %v4809_v4  ;;  %v4793_v28 = vld [vmem:[#allocation10 + $0x3d0] sm:$0xf0] }
 0x12d   :  { %2724 = vmatpush.bf16.msrb.mxu3 %v4316_v42  ;;  %v4792_v42 = vor.u32 %v5401_v62, %v4791_v38  ;;  %v4744_v12 = vor.u32 %v5389_v25, %v4743_v21  ;;  %v4495_v38 = vld [vmem:[#allocation10 + $0x168] sm:$0xf]  ;;  %v5326_v62 = vld [vmem:[#allocation10 + $0x174] sm:$0xf0]  ;;  %v4796_v20 = vor.u32 %v5399_v26, %v4793_v28  ;;  %v4513_v6 = vld [vmem:[#allocation10 + $0x198] sm:$0xf0] }
 0x12e   :  { %vm1860_vm6 = vcmp.gt.f32.partialorder %v1852_v35, 0.0  ;;  %v1868_v43 = vmul.f32 0.2, %v1852_v35  ;;  %v4745_v4 = vld [vmem:[#allocation10 + $0x370] sm:$0xf0] }
 0x12f   :  { %2704 = vmatpush.bf16.msra.mxu0 %v4792_v42  ;;  %v4401_v42 = vld [vmem:[#allocation10 + $0xb8] sm:$0xf0]  ;;  %v4687_v26 = vld [vmem:[#allocation10 + $0x2e8] sm:$0xf]  ;;  %v5374_v28 = vld [vmem:[#allocation10 + $0x2f4] sm:$0xf0] }
 0x130   :  { %2725 = vmatmul.bf16.vlgmr.msrb.gmra.mxu3 %v5864_v29  ;;  %2747 = vmatpush.bf16.msrb.mxu2 %v4652_v37  ;;  %v1876_v48 = vsel %vm1860_vm6, %v1852_v35, %v1868_v43  ;;  %v4727_v35 = vld [vmem:[#allocation10 + $0x340] sm:$0xf]  ;;  %v4420_v37 = vor.u32 %v5304_v14, %v4417_v30  ;;  %v5877_v43 = vpop.f32.mrf.mxu0  ;;  %v5288_v14 = vld [vmem:[#allocation10 + $0x4c] sm:$0xf]  ;;  %v4353_v30 = vld [vmem:[#allocation10 + $0x58] sm:$0xf0] }
 0x131   :  { %2773 = vmatpush.bf16.msra.mxu3 %v4432_v10  ;;  %v4633_v10 = vld [vmem:[#allocation10 + $0x290] sm:$0xf0]  ;;  %v5872_v55 = vpack.c.bf16 %v1876_v48, %v1872_v47  ;;  %v4496_v47 = vor.u32 %v5326_v62, %v4495_v38  ;;  %v4545_v62 = vld [vmem:[#allocation10 + $0x1d8] sm:$0xf0] }
 0x132   :  { %v4636_v53 = vor.u32 %v5359_v46, %v4633_v10  ;;  %v4569_v46 = vld [vmem:[#allocation10 + $0x210] sm:$0xf0]  ;;  %v1652_v10 = vpop.f32.mrf.mxu1 }
 0x133   :  { %2683 = vmatmul.bf16.vlgmr.msra.gmra.mxu1 %v5872_v55  ;;  %2705 = vmatpush.bf16.msra.mxu0 %v4776_v60  ;;  %v1664_v33 = vpop.f32.mrf.mxu3  ;;  %v4385_v60 = vld [vmem:[#allocation10 + $0x98] sm:$0xf0]  ;;  %v1653_v21 = vadd.f32 %v1652_v10, %v5841_v51  ;;  %v5336_v51 = vld [vmem:[#allocation10 + $0x1cc] sm:$0xf] }
 0x134   :  { %2748 = vmatpush.bf16.msrb.mxu2 %v4636_v53  ;;  %2787 = vmatpush.bf16.msra.mxu1 %v4560_v44  ;;  %v5343_v44 = vld [vmem:[#allocation10 + $0x204] sm:$0xf]  ;;  %v4404_v53 = vor.u32 %v5300_v41, %v4401_v42  ;;  %v1665_v61 = vadd.f32 %v1664_v33, %v1651_v52  ;;  %v4337_v41 = vld [vmem:[#allocation10 + $0x38] sm:$0xf0] }
 0x135   :  { %2774 = vmatpush.bf16.msra.mxu3 %v4416_v58  ;;  %v5286_v58 = vld [vmem:[#allocation10 + $0x34] sm:$0xf0]  ;;  %v4572_v48 = vor.u32 %v5343_v44, %v4569_v46  ;;  %v5391_v52 = vld [vmem:[#allocation10 + $0x384] sm:$0xf] }
 0x136   :  { %v4336_v0 = vor.u32 %v5286_v58, %v4335_v56  ;;  %v5322_v56 = vld [vmem:[#allocation10 + $0x154] sm:$0xf0]  ;;  %v1679_v16 = vadd.f32 %v5875_v7, %v1665_v61 }
 0x137   :  { %2706 = vmatpush.bf16.msra.mxu0 %v4760_v11  ;;  %v4480_v63 = vor.u32 %v5322_v56, %v4479_v54  ;;  %v5292_v11 = vld [vmem:[#allocation10 + $0x6c] sm:$0xf]  ;;  %v4529_v56 = vld [vmem:[#allocation10 + $0x1b8] sm:$0xf0] }
 0x138   :  { %2749 = vmatpush.bf16.msrb.mxu2 %v4620_v2  ;;  %2788 = vmatpush.bf16.msra.mxu1 %v4544_v5  ;;  %v4463_v5 = vld [vmem:[#allocation10 + $0x128] sm:$0xf]  ;;  %v4388_v2 = vor.u32 %v5296_v59, %v4385_v60  ;;  %v4372_v25 = vor.u32 %v5292_v11, %v4369_v13  ;;  %v4321_v59 = vld [vmem:[#allocation10 + $0x18] sm:$0xf0] }
 0x139   :  { %2775 = vmatpush.bf16.msra.mxu3 %v4400_v9  ;;  %v5282_v9 = vld [vmem:[#allocation10 + $0x14] sm:$0xf0] }
 0x13a   :  { %v4320_v23 = vor.u32 %v5282_v9, %v4319_v8  ;;  %v1692_v8 = vpop.f32.mrf.mxu2 }
 0x13b   :  { %2707 = vmatpush.bf16.msra.mxu0 %v4744_v12  ;;  %v1666_v9 = vpop.f32.mrf.mxu3  ;;  %v4561_v12 = vld [vmem:[#allocation10 + $0x1f8] sm:$0xf0]  ;;  %v1693_v7 = vadd.f32 %v1692_v8, %v1679_v16  ;;  %v5383_v16 = vld [vmem:[#allocation10 + $0x344] sm:$0xf] }
 0x13c   :  { %2789 = vmatpush.bf16.msra.mxu1 %v4528_v22  ;;  %v4464_v22 = vor.u32 %v5318_v18, %v4463_v5  ;;  %v1667_v31 = vadd.f32 %v1666_v9, %v1653_v21 }
 0x13d   :  { %2776 = vmatpush.bf16.msra.mxu3 %v4384_v24  ;;  %v4604_v24 = vor.u32 %v5351_v17, %v4601_v19  ;;  %v1734_v17 = vpop.f32.mrf.mxu0 }
 0x13e   :  { %v1681_v44 = vadd.f32 %v5877_v43, %v1667_v31  ;;  %v1841_v43 = vperm.slane %v5857_v40, 2  ;;  %v4713_v31 = vld [vmem:[#allocation10 + $0x330] sm:$0xf0] }
 0x13f   :  { %2750 = vmatpush.bf16.msrb.mxu2 %v4604_v24  ;;  %v5314_v24 = vld [vmem:[#allocation10 + $0x114] sm:$0xf0] }
 0x140   :  { %2790 = vmatpush.bf16.msra.mxu1 %v4512_v34 }
 0x141   :  { %2777 = vmatpush.bf16.msra.mxu3 %v4368_v36  ;;  %v5385_v36 = vld [vmem:[#allocation10 + $0x34c] sm:$0xf0] }
 0x142   :  { %v4728_v39 = vor.u32 %v5385_v36, %v4727_v35  ;;  %v4356_v35 = vor.u32 %v5288_v14, %v4353_v30  ;;  %v5395_v36 = vld [vmem:[#allocation10 + $0x3a4] sm:$0xf]  ;;  %v1694_v10 = vpop.f32.mrf.mxu2 }
 0x143   :  { %2751 = vmatpush.bf16.msrb.mxu2 %v4588_v57  ;;  %2739 = vmatmul.bf16.vlgmr.msrb.gmra.mxu1 %v5872_v55  ;;  %v1695_v61 = vadd.f32 %v1694_v10, %v1681_v44  ;;  %v5379_v30 = vld [vmem:[#allocation10 + $0x324] sm:$0xf] }
 0x144   :  { %2708 = vmatpush.bf16.msra.mxu0 %v4728_v39  ;;  %2791 = vmatpush.bf16.msra.mxu1 %v4496_v47  ;;  %v5284_v39 = vld [vmem:[#allocation10 + $0x2c] sm:$0xf] }
 0x145   :  { %2778 = vmatpush.bf16.msra.mxu3 %v4352_v49  ;;  %v4711_v49 = vld [vmem:[#allocation10 + $0x320] sm:$0xf]  ;;  %v1736_v47 = vpop.f32.mrf.mxu0 }
 0x146   :  { %v4712_v58 = vor.u32 %v5381_v27, %v4711_v49  ;;  %v4340_v49 = vor.u32 %v5284_v39, %v4337_v41  ;;  %v5332_v27 = vld [vmem:[#allocation10 + $0x1ac] sm:$0xf] }
 0x147   :  { %2752 = vmatpush.bf16.msrb.mxu2 %v4572_v48  ;;  %v1706_v19 = vpop.f32.mrf.mxu1  ;;  %v4548_v48 = vor.u32 %v5336_v51, %v4545_v62  ;;  %v4697_v62 = vld [vmem:[#allocation10 + $0x310] sm:$0xf0]  ;;  %v5316_v41 = vld [vmem:[#allocation10 + $0x12c] sm:$0xf] }
 0x148   :  { %2709 = vmatpush.bf16.msra.mxu0 %v4712_v58  ;;  %2792 = vmatpush.bf16.msra.mxu1 %v4480_v63  ;;  %v1707_v34 = vadd.f32 %v1706_v19, %v1693_v7  ;;  %v5280_v58 = vld [vmem:[#allocation10 + $0xc] sm:$0xf]  ;;  %v4481_v7 = vld [vmem:[#allocation10 + $0x158] sm:$0xf0] }
 0x149   :  { %2779 = vmatpush.bf16.msra.mxu3 %v4336_v0  ;;  %v4695_v0 = vld [vmem:[#allocation10 + $0x300] sm:$0xf] }
 0x14a   :  { %v4696_v3 = vor.u32 %v5377_v1, %v4695_v0  ;;  %v4532_v0 = vor.u32 %v5332_v27, %v4529_v56  ;;  %v4324_v1 = vor.u32 %v5280_v58, %v4321_v59  ;;  %v4639_v59 = vld [vmem:[#allocation10 + $0x288] sm:$0xf] }
 0x14c   :  { %2710 = vmatpush.bf16.msra.mxu0 %v4696_v3  ;;  %2793 = vmatpush.bf16.msra.mxu1 %v4464_v22  ;;  %v5328_v3 = vld [vmem:[#allocation10 + $0x18c] sm:$0xf] }
 0x14d   :  { %2780 = vmatpush.bf16.msra.mxu3 %v4320_v23  ;;  %v4447_v23 = vld [vmem:[#allocation10 + $0x108] sm:$0xf]  ;;  %v5324_v22 = vld [vmem:[#allocation10 + $0x16c] sm:$0xf] }
 0x14e   :  { %v4448_v33 = vor.u32 %v5314_v24, %v4447_v23  ;;  %v4497_v23 = vld [vmem:[#allocation10 + $0x178] sm:$0xf0] }
 0x14f   :  { %v1708_v54 = vpop.f32.mrf.mxu1  ;;  %v4500_v14 = vor.u32 %v5324_v22, %v4497_v23  ;;  %v4591_v23 = vld [vmem:[#allocation10 + $0x228] sm:$0xf] }
 0x150   :  { %2781 = vmatmul.bf16.vlgmr.msra.gmra.mxu3 %v5864_v29  ;;  %2759 = vmatpush.bf16.msrb.mxu0 %v4812_v15  ;;  %v1709_v5 = vadd.f32 %v1708_v54, %v1695_v61  ;;  %v4516_v15 = vor.u32 %v5328_v3, %v4513_v6  ;;  %v4449_v54 = vld [vmem:[#allocation10 + $0x118] sm:$0xf0]  ;;  %v5358_v3 = vld [vmem:[#allocation10 + $0x274] sm:$0xf0] }
 0x151   :  { %2829 = vmatpush.bf16.msrb.mxu3 %v4436_v45  ;;  %v5340_v45 = vld [vmem:[#allocation10 + $0x1ec] sm:$0xf]  ;;  %2794 = vmatpush.bf16.msra.mxu1 %v4448_v33 }
 0x152   :  { %v4564_v57 = vor.u32 %v5340_v45, %v4561_v12  ;;  %v1748_v19 = vpop.f32.mrf.mxu2 }
 0x153   :  { %v1720_v38 = vpop.f32.mrf.mxu3  ;;  %v1749_v10 = vadd.f32 %v1748_v19, %v5839_v50 }
 0x154   :  { %2760 = vmatpush.bf16.msrb.mxu0 %v4796_v20  ;;  %v1721_v46 = vadd.f32 %v1720_v38, %v1707_v34  ;;  %2795 = vmatmul.bf16.vlgmr.msra.gmra.mxu1 %v5872_v55  ;;  %v5320_v20 = vld [vmem:[#allocation10 + $0x14c] sm:$0xf]  ;;  %v5375_v38 = vld [vmem:[#allocation10 + $0x304] sm:$0xf] }
 0x155   :  { %2830 = vmatpush.bf16.msrb.mxu3 %v4420_v37  ;;  %v4777_v37 = vld [vmem:[#allocation10 + $0x3b0] sm:$0xf0]  ;;  %2843 = vmatpush.bf16.msrb.mxu1 %v4564_v57  ;;  %v4688_v57 = vor.u32 %v5374_v28, %v4687_v26  ;;  %v4700_v44 = vor.u32 %v5375_v38, %v4697_v62  ;;  %v4815_v38 = vld [vmem:[#allocation10 + $0x3e8] sm:$0xf]  ;;  %v5406_v62 = vld [vmem:[#allocation10 + $0x3f4] sm:$0xf0] }
 0x156   :  { %v4780_v42 = vor.u32 %v5395_v36, %v4777_v37  ;;  %v1735_v63 = vadd.f32 %v1734_v17, %v1721_v46  ;;  %v4729_v17 = vld [vmem:[#allocation10 + $0x350] sm:$0xf0]  ;;  %v4671_v36 = vld [vmem:[#allocation10 + $0x2c8] sm:$0xf]  ;;  %v5370_v37 = vld [vmem:[#allocation10 + $0x2d4] sm:$0xf0] }
 0x157   :  { %v4732_v24 = vor.u32 %v5383_v16, %v4729_v17  ;;  %v4672_v46 = vor.u32 %v5370_v37, %v4671_v36 }
 0x158   :  { %2761 = vmatpush.bf16.msrb.mxu0 %v4780_v42  ;;  %v1849_v8 = vadd.f32 %v1841_v43, %v1735_v63  ;;  %v4465_v42 = vld [vmem:[#allocation10 + $0x138] sm:$0xf0] }
 0x159   :  { %2831 = vmatpush.bf16.msrb.mxu3 %v4404_v53  ;;  %v4761_v53 = vld [vmem:[#allocation10 + $0x390] sm:$0xf0]  ;;  %2844 = vmatpush.bf16.msrb.mxu1 %v4548_v48  ;;  %v4655_v48 = vld [vmem:[#allocation10 + $0x2a8] sm:$0xf] }
 0x15a   :  { %v4764_v60 = vor.u32 %v5391_v52, %v4761_v53  ;;  %v1865_v21 = vmul.f32 0.2, %v1849_v8  ;;  %vm1857_vm7 = vcmp.gt.f32.partialorder %v1849_v8, 0.0  ;;  %v4468_v52 = vor.u32 %v5316_v41, %v4465_v42  ;;  %v5312_v53 = vld [vmem:[#allocation10 + $0x10c] sm:$0xf] }
 0x15b   :  { %v1722_v18 = vpop.f32.mrf.mxu3  ;;  %v4452_v61 = vor.u32 %v5312_v53, %v4449_v54  ;;  %v5360_v54 = vld [vmem:[#allocation10 + $0x28c] sm:$0xf] }
 0x15c   :  { %2762 = vmatpush.bf16.msrb.mxu0 %v4764_v60  ;;  %v1723_v9 = vadd.f32 %v1722_v18, %v1709_v5  ;;  %v1873_v33 = vsel %vm1857_vm7, %v1849_v8, %v1865_v21  ;;  %v5362_v60 = vld [vmem:[#allocation10 + $0x294] sm:$0xf0]  ;;  %v4623_v18 = vld [vmem:[#allocation10 + $0x268] sm:$0xf] }
 0x15d   :  { %2832 = vmatpush.bf16.msrb.mxu3 %v4388_v2  ;;  %v5387_v2 = vld [vmem:[#allocation10 + $0x364] sm:$0xf]  ;;  %2845 = vmatpush.bf16.msrb.mxu1 %v4532_v0  ;;  %v4640_v5 = vor.u32 %v5362_v60, %v4639_v59  ;;  %v4624_v8 = vor.u32 %v5358_v3, %v4623_v18  ;;  %v5398_v59 = vld [vmem:[#allocation10 + $0x3b4] sm:$0xf0]  ;;  %v4609_v18 = vld [vmem:[#allocation10 + $0x258] sm:$0xf0] }
 0x15e   :  { %v4748_v11 = vor.u32 %v5387_v2, %v4745_v4  ;;  %v1737_v13 = vadd.f32 %v1736_v47, %v1723_v9  ;;  %v1750_v47 = vpop.f32.mrf.mxu2  ;;  %v4751_v3 = vld [vmem:[#allocation10 + $0x368] sm:$0xf] }
 0x15f   :  { %v1751_v0 = vadd.f32 %v1750_v47, %v5845_v32  ;;  %v4657_v47 = vld [vmem:[#allocation10 + $0x2b8] sm:$0xf0] }
 0x160   :  { %2763 = vmatpush.bf16.msrb.mxu0 %v4748_v11  ;;  %v1853_v45 = vadd.f32 %v1841_v43, %v1737_v13  ;;  %v4607_v11 = vld [vmem:[#allocation10 + $0x248] sm:$0xf]  ;;  %v5354_v13 = vld [vmem:[#allocation10 + $0x254] sm:$0xf0] }
 0x161   :  { %2833 = vmatpush.bf16.msrb.mxu3 %v4372_v25  ;;  %v1762_v25 = vpop.f32.mrf.mxu0  ;;  %2846 = vmatpush.bf16.msrb.mxu1 %v4516_v15  ;;  %v4608_v19 = vor.u32 %v5354_v13, %v4607_v11  ;;  %v4593_v11 = vld [vmem:[#allocation10 + $0x238] sm:$0xf0]  ;;  %v4735_v13 = vld [vmem:[#allocation10 + $0x348] sm:$0xf] }
 0x162   :  { %vm1861_vm8 = vcmp.gt.f32.partialorder %v1853_v45, 0.0  ;;  %v1869_v12 = vmul.f32 0.2, %v1853_v45  ;;  %v1763_v58 = vadd.f32 %v1762_v25, %v1749_v10  ;;  %v1842_v25 = vperm.slane %v5857_v40, 3  ;;  %v4673_v40 = vld [vmem:[#allocation10 + $0x2d8] sm:$0xf0] }
 0x163   :  { %v5364_v10 = vld [vmem:[#allocation10 + $0x2ac] sm:$0xf] }
 0x164   :  { %2764 = vmatpush.bf16.msrb.mxu0 %v4732_v24  ;;  %v1877_v34 = vsel %vm1861_vm8, %v1853_v45, %v1869_v12  ;;  %v5350_v24 = vld [vmem:[#allocation10 + $0x234] sm:$0xf0] }
 0x165   :  { %2834 = vmatpush.bf16.msrb.mxu3 %v4356_v35  ;;  %v4716_v35 = vor.u32 %v5379_v30, %v4713_v31  ;;  %v5888_v51 = vpack.c.bf16 %v1877_v34, %v1873_v33  ;;  %2847 = vmatpush.bf16.msrb.mxu1 %v4500_v14  ;;  %v4575_v14 = vld [vmem:[#allocation10 + $0x208] sm:$0xf]  ;;  %v5346_v30 = vld [vmem:[#allocation10 + $0x214] sm:$0xf0]  ;;  %v4689_v31 = vld [vmem:[#allocation10 + $0x2f8] sm:$0xf0] }
 0x167   :  { %v1776_v39 = vpop.f32.mrf.mxu1  ;;  %2697 = vmatmul.bf16.vlgmr.msra.gmra.mxu2 %v5888_v51 }
 0x168   :  { %2765 = vmatpush.bf16.msrb.mxu0 %v4716_v35  ;;  %2801 = vmatpush.bf16.msra.mxu2 %v4688_v57  ;;  %v1777_v63 = vadd.f32 %v1776_v39, %v1763_v58  ;;  %v4576_v57 = vor.u32 %v5346_v30, %v4575_v14  ;;  %v4783_v58 = vld [vmem:[#allocation10 + $0x3a8] sm:$0xf]  ;;  %v5400_v14 = vld [vmem:[#allocation10 + $0x3cc] sm:$0xf]  ;;  %v4801_v30 = vld [vmem:[#allocation10 + $0x3d8] sm:$0xf0] }
 0x169   :  { %2835 = vmatpush.bf16.msrb.mxu3 %v4340_v49  ;;  %v5366_v49 = vld [vmem:[#allocation10 + $0x2b4] sm:$0xf0]  ;;  %v1764_v27 = vpop.f32.mrf.mxu0 }
 0x16a   :  { %v4656_v56 = vor.u32 %v5366_v49, %v4655_v48  ;;  %v1765_v9 = vadd.f32 %v1764_v27, %v1751_v0  ;;  %v4799_v49 = vld [vmem:[#allocation10 + $0x3c8] sm:$0xf]  ;;  %v5402_v27 = vld [vmem:[#allocation10 + $0x3d4] sm:$0xf0] }
 0x16b   :  { %v4800_v53 = vor.u32 %v5402_v27, %v4799_v49  ;;  %v4871_v27 = vld [vmem:[#allocation13 + $0x60] sm:$0xf] }
 0x16c   :  { %2766 = vmatpush.bf16.msrb.mxu0 %v4700_v44  ;;  %2802 = vmatpush.bf16.msra.mxu2 %v4672_v46  ;;  %v4816_v46 = vor.u32 %v5406_v62, %v4815_v38  ;;  %v5380_v62 = vld [vmem:[#allocation10 + $0x32c] sm:$0xf] }
 0x16d   :  { %2836 = vmatpush.bf16.msrb.mxu3 %v4324_v1 }
 0x16f   :  { %v1778_v43 = vpop.f32.mrf.mxu1 }
 0x170   :  { %2837 = vmatmul.bf16.vlgmr.msrb.gmra.mxu3 %v5864_v29  ;;  %v4484_v29 = vor.u32 %v5320_v20, %v4481_v7  ;;  %2803 = vmatpush.bf16.msra.mxu2 %v4656_v56  ;;  %v1779_v16 = vadd.f32 %v1778_v43, %v1765_v9  ;;  %v5372_v7 = vld [vmem:[#allocation10 + $0x2ec] sm:$0xf]  ;;  %v4641_v56 = vld [vmem:[#allocation10 + $0x298] sm:$0xf0] }
 0x171   :  { %v1818_v6 = vpop.f32.mrf.mxu0  ;;  %v4692_v35 = vor.u32 %v5372_v7, %v4689_v31  ;;  %v4644_v60 = vor.u32 %v5360_v54, %v4641_v56  ;;  %v4625_v43 = vld [vmem:[#allocation10 + $0x278] sm:$0xf0]  ;;  %v5348_v9 = vld [vmem:[#allocation10 + $0x22c] sm:$0xf]  ;;  %v4863_v54 = vld [vmem:[#allocation13 + $0x50] sm:$0xf] }
 0x172   :  { %2848 = vmatpush.bf16.msrb.mxu1 %v4484_v29  ;;  %v1804_v2 = vpop.f32.mrf.mxu2  ;;  %v5368_v29 = vld [vmem:[#allocation10 + $0x2cc] sm:$0xf]  ;;  %v4785_v31 = vld [vmem:[#allocation10 + $0x3b8] sm:$0xf0] }
 0x173   :  { %v1790_v50 = vpop.f32.mrf.mxu3  ;;  %v4676_v41 = vor.u32 %v5368_v29, %v4673_v40  ;;  %v5396_v7 = vld [vmem:[#allocation10 + $0x3ac] sm:$0xf]  ;;  %v4737_v40 = vld [vmem:[#allocation10 + $0x358] sm:$0xf0] }
 0x174   :  { %v1791_v1 = vadd.f32 %v1790_v50, %v1777_v63  ;;  %2804 = vmatpush.bf16.msra.mxu2 %v4640_v5  ;;  %v5356_v63 = vld [vmem:[#allocation10 + $0x26c] sm:$0xf]  ;;  %v4767_v50 = vld [vmem:[#allocation10 + $0x388] sm:$0xf]  ;;  %v5394_v5 = vld [vmem:[#allocation10 + $0x394] sm:$0xf0] }
 0x175   :  { %v4628_v0 = vor.u32 %v5356_v63, %v4625_v43  ;;  %v5418_v56 = vld [vmem:[#allocation13 + $0x54] sm:$0xf0]  ;;  %v4847_v63 = vld [vmem:[#allocation13 + $0x30] sm:$0xf] }
 0x176   :  { %2849 = vmatpush.bf16.msrb.mxu1 %v4468_v52  ;;  %v1805_v4 = vadd.f32 %v1804_v2, %v1791_v1  ;;  %v4660_v52 = vor.u32 %v5364_v10, %v4657_v47  ;;  %v4768_v1 = vor.u32 %v5394_v5, %v4767_v50  ;;  %v5352_v2 = vld [vmem:[#allocation10 + $0x24c] sm:$0xf]  ;;  %v4879_v10 = vld [vmem:[#allocation13 + $0x70] sm:$0xf]  ;;  %v5422_v47 = vld [vmem:[#allocation13 + $0x74] sm:$0xf0] }
 0x177   :  { %v1832_v17 = vpop.f32.mrf.mxu1  ;;  %2753 = vmatmul.bf16.vlgmr.msrb.gmra.mxu2 %v5888_v51  ;;  %v4880_v49 = vor.u32 %v5422_v47, %v4879_v10  ;;  %v5414_v43 = vld [vmem:[#allocation13 + $0x34] sm:$0xf0]  ;;  %v4943_v50 = vld [vmem:[#allocation13 + $0xf0] sm:$0xf] }
 0x178   :  { %v1819_v15 = vadd.f32 %v1818_v6, %v1805_v4  ;;  %2805 = vmatpush.bf16.msra.mxu2 %v4624_v8  ;;  %v5390_v6 = vld [vmem:[#allocation10 + $0x374] sm:$0xf0]  ;;  %v4612_v4 = vor.u32 %v5352_v2, %v4609_v18  ;;  %v5438_v5 = vld [vmem:[#allocation13 + $0xf4] sm:$0xf0]  ;;  %v5412_v2 = vld [vmem:[#allocation13 + $0x24] sm:$0xf0] }
 0x179   :  { %v1820_v28 = vpop.f32.mrf.mxu0  ;;  %v4752_v8 = vor.u32 %v5390_v6, %v4751_v3  ;;  %3303 = vmatpush.bf16.msra.mxu3 %v4880_v49  ;;  %v4935_v18 = vld [vmem:[#allocation13 + $0xe0] sm:$0xf]  ;;  %v5436_v6 = vld [vmem:[#allocation13 + $0xe4] sm:$0xf0] }
 0x17a   :  { %2850 = vmatpush.bf16.msrb.mxu1 %v4452_v61  ;;  %v1833_v21 = vadd.f32 %v1832_v17, %v1819_v15  ;;  %v1806_v45 = vpop.f32.mrf.mxu2  ;;  %v4784_v61 = vor.u32 %v5398_v59, %v4783_v58  ;;  %v5386_v15 = vld [vmem:[#allocation10 + $0x354] sm:$0xf0]  ;;  %v4864_v58 = vor.u32 %v5418_v56, %v4863_v54  ;;  %v4855_v59 = vld [vmem:[#allocation13 + $0x40] sm:$0xf]  ;;  %v5448_v54 = vld [vmem:[#allocation13 + $0x144] sm:$0xf0] }
 0x17b   :  { %v1792_v32 = vpop.f32.mrf.mxu3  ;;  %v4736_v17 = vor.u32 %v5386_v15, %v4735_v13  ;;  %v5434_v15 = vld [vmem:[#allocation13 + $0xd4] sm:$0xf0]  ;;  %v4887_v49 = vld [vmem:[#allocation13 + $0x80] sm:$0xf]  ;;  %v5413_v56 = vld [vmem:[#allocation13 + $0x34] sm:$0xf] }
 0x17c   :  { %v1793_v22 = vadd.f32 %v1792_v32, %v1779_v16  ;;  %2806 = vmatpush.bf16.msra.mxu2 %v4608_v19  ;;  %v1850_v20 = vadd.f32 %v1842_v25, %v1833_v21  ;;  %v4596_v16 = vor.u32 %v5348_v9, %v4593_v11  ;;  %v5344_v32 = vld [vmem:[#allocation10 + $0x20c] sm:$0xf]  ;;  %v4577_v19 = vld [vmem:[#allocation10 + $0x218] sm:$0xf0]  ;;  %v4927_v11 = vld [vmem:[#allocation13 + $0xd0] sm:$0xf] }
 0x17d   :  { %2851 = vmatmul.bf16.vlgmr.msrb.gmra.mxu1 %v5872_v55  ;;  %v4592_v55 = vor.u32 %v5350_v24, %v4591_v23  ;;  %v5382_v23 = vld [vmem:[#allocation10 + $0x334] sm:$0xf0]  ;;  %v4580_v24 = vor.u32 %v5344_v32, %v4577_v19  ;;  %v5410_v9 = vld [vmem:[#allocation13 + $0x14] sm:$0xf0]  ;;  %v5408_v32 = vld [vmem:[#allocation13 + $0x4] sm:$0xf0] }
 0x17e   :  { %v1807_v26 = vadd.f32 %v1806_v45, %v1793_v22  ;;  %v1866_v36 = vmul.f32 0.2, %v1850_v20  ;;  %vm1858_vm9 = vcmp.gt.f32.partialorder %v1850_v20, 0.0  ;;  %v4719_v22 = vld [vmem:[#allocation10 + $0x328] sm:$0xf] }
 0x17f   :  { %v1834_v33 = vpop.f32.mrf.mxu1  ;;  %v4720_v21 = vor.u32 %v5382_v23, %v4719_v22  ;;  %v5378_v45 = vld [vmem:[#allocation10 + $0x314] sm:$0xf0]  ;;  %v4919_v19 = vld [vmem:[#allocation13 + $0xc0] sm:$0xf]  ;;  %v5432_v23 = vld [vmem:[#allocation13 + $0xc4] sm:$0xf0] }
 0x180   :  { %v1821_v12 = vadd.f32 %v1820_v28, %v1807_v26  ;;  %2807 = vmatpush.bf16.msra.mxu2 %v4592_v55  ;;  %v1874_v42 = vsel %vm1858_vm9, %v1850_v20, %v1866_v36  ;;  %v5404_v26 = vld [vmem:[#allocation10 + $0x3ec] sm:$0xf]  ;;  %v4817_v28 = vld [vmem:[#allocation10 + $0x3f8] sm:$0xf0]  ;;  %v4804_v20 = vor.u32 %v5400_v14, %v4801_v30  ;;  %v5419_v30 = vld [vmem:[#allocation13 + $0x64] sm:$0xf] }
 0x181   :  { %v5388_v36 = vld [vmem:[#allocation10 + $0x36c] sm:$0xf]  ;;  %v5454_v14 = vld [vmem:[#allocation13 + $0x174] sm:$0xf0]  ;;  %vm3490_vm9 = vcmask 7168  }
 0x182   :  { %v1835_v34 = vadd.f32 %v1834_v33, %v1821_v12  ;;  %v4820_v12 = vor.u32 %v5404_v26, %v4817_v28  ;;  %v4788_v33 = vor.u32 %v5396_v7, %v4785_v31  ;;  %v4911_v26 = vld [vmem:[#allocation13 + $0xb0] sm:$0xf]  ;;  %v5430_v28 = vld [vmem:[#allocation13 + $0xb4] sm:$0xf0] }
 0x184   :  { %v1854_v37 = vadd.f32 %v1842_v25, %v1835_v34  ;;  %2808 = vmatpush.bf16.msra.mxu2 %v4576_v57  ;;  %v4703_v25 = vld [vmem:[#allocation10 + $0x308] sm:$0xf]  ;;  %v5392_v34 = vld [vmem:[#allocation10 + $0x38c] sm:$0xf]  ;;  %v4769_v57 = vld [vmem:[#allocation10 + $0x398] sm:$0xf0] }
 0x185   :  { %v4704_v55 = vor.u32 %v5378_v45, %v4703_v25  ;;  %v4920_v25 = vor.u32 %v5432_v23, %v4919_v19  ;;  %v5433_v19 = vld [vmem:[#allocation13 + $0xd4] sm:$0xf]  ;;  %v4929_v23 = vld [vmem:[#allocation13 + $0xd8] sm:$0xf0] }
 0x186   :  { %vm1862_vm10 = vcmp.gt.f32.partialorder %v1854_v37, 0.0  ;;  %v1870_v39 = vmul.f32 0.2, %v1854_v37 }
 0x187   :  { %2809 = vmatmul.bf16.vlgmr.msra.gmra.mxu2 %v5888_v51 }
 0x188   :  { %2857 = vmatpush.bf16.msrb.mxu2 %v4692_v35  ;;  %v1878_v44 = vsel %vm1862_vm10, %v1854_v37, %v1870_v39  ;;  %v4772_v35 = vor.u32 %v5392_v34, %v4769_v57  ;;  %v4753_v37 = vld [vmem:[#allocation10 + $0x378] sm:$0xf0]  ;;  %v5428_v34 = vld [vmem:[#allocation13 + $0xa4] sm:$0xf0]  ;;  %v4999_v57 = vld [vmem:[#allocation13 + $0x160] sm:$0xf] }
 0x189   :  { %v5897_v48 = vpack.c.bf16 %v1878_v44, %v1874_v42  ;;  %v4756_v29 = vor.u32 %v5388_v36, %v4753_v37  ;;  %v4721_v39 = vld [vmem:[#allocation10 + $0x338] sm:$0xf0]  ;;  %v5376_v42 = vld [vmem:[#allocation10 + $0x30c] sm:$0xf]  ;;  %v5417_v37 = vld [vmem:[#allocation13 + $0x54] sm:$0xf] }
 0x18a   :  { %v4705_v44 = vld [vmem:[#allocation10 + $0x318] sm:$0xf0]  ;;  %v5452_v36 = vld [vmem:[#allocation13 + $0x164] sm:$0xf0] }
 0x18b   :  { %2711 = vmatmul.bf16.vlgmr.msra.gmra.mxu0 %v5897_v48 }
 0x18c   :  { %2858 = vmatpush.bf16.msrb.mxu2 %v4676_v41  ;;  %2815 = vmatpush.bf16.msra.mxu0 %v4816_v46  ;;  %v4724_v41 = vor.u32 %v5380_v62, %v4721_v39  ;;  %v4708_v46 = vor.u32 %v5376_v42, %v4705_v44  ;;  %v5426_v62 = vld [vmem:[#allocation13 + $0x94] sm:$0xf0]  ;;  %v4991_v39 = vld [vmem:[#allocation13 + $0x150] sm:$0xf]  ;;  %v5415_v44 = vld [vmem:[#allocation13 + $0x44] sm:$0xf] }
 0x18d   :  { %v5450_v42 = vld [vmem:[#allocation13 + $0x154] sm:$0xf0] }
 0x18e   :  { %v4992_v10 = vor.u32 %v5450_v42, %v4991_v39  ;;  %v5009_v42 = vld [vmem:[#allocation13 + $0x178] sm:$0xf0] }
 0x190   :  { %2859 = vmatpush.bf16.msrb.mxu2 %v4660_v52  ;;  %2816 = vmatpush.bf16.msra.mxu0 %v4800_v53  ;;  %v5420_v52 = vld [vmem:[#allocation13 + $0x64] sm:$0xf0] }
 0x191   :  { %v4872_v53 = vor.u32 %v5420_v52, %v4871_v27  ;;  %v5424_v27 = vld [vmem:[#allocation13 + $0x84] sm:$0xf0]  ;;  %v4983_v52 = vld [vmem:[#allocation13 + $0x140] sm:$0xf] }
 0x193   :  { %3304 = vmatpush.bf16.msra.mxu3 %v4872_v53  ;;  %v4888_v53 = vor.u32 %v5424_v27, %v4887_v49 }
 0x194   :  { %2860 = vmatpush.bf16.msrb.mxu2 %v4644_v60  ;;  %2817 = vmatpush.bf16.msra.mxu0 %v4784_v61  ;;  %v5416_v60 = vld [vmem:[#allocation13 + $0x44] sm:$0xf0] }
 0x195   :  { %v4856_v61 = vor.u32 %v5416_v60, %v4855_v59  ;;  %v4984_v60 = vor.u32 %v5448_v54, %v4983_v52 }
 0x197   :  { %3305 = vmatpush.bf16.msra.mxu3 %v4864_v58  ;;  %v4849_v58 = vld [vmem:[#allocation13 + $0x38] sm:$0xf0] }
 0x198   :  { %2861 = vmatpush.bf16.msrb.mxu2 %v4628_v0  ;;  %2818 = vmatpush.bf16.msra.mxu0 %v4768_v1  ;;  %v4944_v0 = vor.u32 %v5438_v5, %v4943_v50  ;;  %v4839_v1 = vld [vmem:[#allocation13 + $0x20] sm:$0xf] }
 0x199   :  { %v4840_v3 = vor.u32 %v5412_v2, %v4839_v1  ;;  %v5446_v1 = vld [vmem:[#allocation13 + $0x134] sm:$0xf0] }
 0x19a   :  { %3317 = vmatpush.bf16.msra.mxu1 %v4944_v0  ;;  %v4975_v0 = vld [vmem:[#allocation13 + $0x130] sm:$0xf] }
 0x19b   :  { %2767 = vmatmul.bf16.vlgmr.msrb.gmra.mxu0 %v5897_v48  ;;  %3306 = vmatpush.bf16.msra.mxu3 %v4856_v61  ;;  %v4852_v61 = vor.u32 %v5413_v56, %v4849_v58  ;;  %v4976_v2 = vor.u32 %v5446_v1, %v4975_v0  ;;  %v4905_v58 = vld [vmem:[#allocation13 + $0xa8] sm:$0xf0]  ;;  %v5055_v0 = vld [vmem:[#allocation13 + $0x1d0] sm:$0xf]  ;;  %v5466_v1 = vld [vmem:[#allocation13 + $0x1d4] sm:$0xf0] }
 0x19c   :  { %2862 = vmatpush.bf16.msrb.mxu2 %v4612_v4  ;;  %2819 = vmatpush.bf16.msra.mxu0 %v4752_v8  ;;  %v4936_v4 = vor.u32 %v5436_v6, %v4935_v18  ;;  %v4831_v8 = vld [vmem:[#allocation13 + $0x10] sm:$0xf]  ;;  %v5411_v18 = vld [vmem:[#allocation13 + $0x24] sm:$0xf] }
 0x19d   :  { %v4832_v13 = vor.u32 %v5410_v9, %v4831_v8  ;;  %v5435_v6 = vld [vmem:[#allocation13 + $0xe4] sm:$0xf]  ;;  %v4937_v8 = vld [vmem:[#allocation13 + $0xe8] sm:$0xf0] }
 0x19e   :  { %3318 = vmatpush.bf16.msra.mxu1 %v4936_v4  ;;  %v4940_v9 = vor.u32 %v5435_v6, %v4937_v8  ;;  %v5449_v6 = vld [vmem:[#allocation13 + $0x154] sm:$0xf] }
 0x1a0   :  { %2863 = vmatpush.bf16.msrb.mxu2 %v4596_v16  ;;  %2820 = vmatpush.bf16.msra.mxu0 %v4736_v17  ;;  %v4928_v16 = vor.u32 %v5434_v15, %v4927_v11  ;;  %v4823_v17 = vld [vmem:[#allocation13] sm:$0xf]  ;;  %v5908_v11 = vld [vmem:[#allocation11] sm:$0xf]  ;;  %v5444_v15 = vld [vmem:[#allocation13 + $0x124] sm:$0xf0] }
 0x1a1   :  { %v4824_v22 = vor.u32 %v5408_v32, %v4823_v17  ;;  %v5409_v17 = vld [vmem:[#allocation13 + $0x14] sm:$0xf]  ;;  %v4833_v32 = vld [vmem:[#allocation13 + $0x18] sm:$0xf0] }
 0x1a2   :  { %3319 = vmatpush.bf16.msra.mxu1 %v4928_v16 }
 0x1a4   :  { %2864 = vmatpush.bf16.msrb.mxu2 %v4580_v24  ;;  %2821 = vmatpush.bf16.msra.mxu0 %v4720_v21  ;;  %v5421_v24 = vld [vmem:[#allocation13 + $0x74] sm:$0xf]  ;;  %v4881_v21 = vld [vmem:[#allocation13 + $0x78] sm:$0xf0] }
 0x1a5   :  { %v4884_v45 = vor.u32 %v5421_v24, %v4881_v21  ;;  %v4932_v24 = vor.u32 %v5433_v19, %v4929_v23  ;;  %v2013_v21 = vperm.slane %v5908_v11, 0  ;;  %v2014_v19 = vperm.slane %v5908_v11, 1 }
 0x1a6   :  { %3320 = vmatpush.bf16.msra.mxu1 %v4920_v25 }
 0x1a7   :  { %2865 = vmatmul.bf16.vlgmr.msrb.gmra.mxu2 %v5888_v51  ;;  %v5384_v51 = vld [vmem:[#allocation10 + $0x34c] sm:$0xf] }
 0x1a8   :  { %2822 = vmatpush.bf16.msra.mxu0 %v4704_v55  ;;  %v4740_v38 = vor.u32 %v5384_v51, %v4737_v40  ;;  %v5007_v55 = vld [vmem:[#allocation13 + $0x170] sm:$0xf]  ;;  %v5000_v51 = vor.u32 %v5452_v36, %v4999_v57  ;;  %v5440_v57 = vld [vmem:[#allocation13 + $0x104] sm:$0xf0] }
 0x1a9   :  { %v5008_v7 = vor.u32 %v5454_v14, %v5007_v55  ;;  %v5407_v55 = vld [vmem:[#allocation13 + $0x4] sm:$0xf] }
 0x1aa   :  { %v5431_v14 = vld [vmem:[#allocation13 + $0xc4] sm:$0xf] }
 0x1ab   :  { %2823 = vmatmul.bf16.vlgmr.msra.gmra.mxu0 %v5897_v48  ;;  %3331 = vmatpush.bf16.msra.mxu2 %v5008_v7 }
 0x1ac   :  { %2871 = vmatpush.bf16.msrb.mxu0 %v4820_v12  ;;  %v4912_v12 = vor.u32 %v5430_v28, %v4911_v26  ;;  %v5442_v26 = vld [vmem:[#allocation13 + $0x114] sm:$0xf0] }
 0x1ae   :  { %3321 = vmatpush.bf16.msra.mxu1 %v4912_v12  ;;  %v4825_v12 = vld [vmem:[#allocation13 + $0x8] sm:$0xf0] }
 0x1af   :  { %3332 = vmatpush.bf16.msra.mxu2 %v5000_v51  ;;  %v4828_v7 = vor.u32 %v5407_v55, %v4825_v12  ;;  %v5429_v51 = vld [vmem:[#allocation13 + $0xb4] sm:$0xf] }
 0x1b0   :  { %2872 = vmatpush.bf16.msrb.mxu0 %v4804_v20  ;;  %v4873_v20 = vld [vmem:[#allocation13 + $0x68] sm:$0xf0]  ;;  %v5904_v59 = vpop.f32.mrf.mxu1 }
 0x1b1   :  { %v4876_v31 = vor.u32 %v5419_v30, %v4873_v20 }
 0x1b3   :  { %3333 = vmatpush.bf16.msra.mxu2 %v4992_v10  ;;  %v5063_v10 = vld [vmem:[#allocation13 + $0x1e0] sm:$0xf] }
 0x1b4   :  { %2873 = vmatpush.bf16.msrb.mxu0 %v4788_v33  ;;  %v4903_v33 = vld [vmem:[#allocation13 + $0xa0] sm:$0xf] }
 0x1b7   :  { %3334 = vmatpush.bf16.msra.mxu2 %v4984_v60  ;;  %v5451_v60 = vld [vmem:[#allocation13 + $0x164] sm:$0xf] }
 0x1b8   :  { %2874 = vmatpush.bf16.msrb.mxu0 %v4772_v35  ;;  %v4904_v35 = vor.u32 %v5428_v34, %v4903_v33  ;;  %v2686_v25 = vpop.f32.mrf.mxu1  ;;  %v4951_v34 = vld [vmem:[#allocation13 + $0x100] sm:$0xf] }
 0x1ba   :  { %3322 = vmatpush.bf16.msra.mxu1 %v4904_v35  ;;  %v5071_v35 = vld [vmem:[#allocation13 + $0x1f0] sm:$0xf] }
 0x1bb   :  { %3335 = vmatpush.bf16.msra.mxu2 %v4976_v2 }
 0x1bc   :  { %2875 = vmatpush.bf16.msrb.mxu0 %v4756_v29  ;;  %v4865_v29 = vld [vmem:[#allocation13 + $0x58] sm:$0xf0] }
 0x1bd   :  { %v4868_v40 = vor.u32 %v5417_v37, %v4865_v29  ;;  %v4952_v37 = vor.u32 %v5440_v57, %v4951_v34  ;;  %v5470_v29 = vld [vmem:[#allocation13 + $0x1f4] sm:$0xf0]  ;;  %v5445_v57 = vld [vmem:[#allocation13 + $0x134] sm:$0xf] }
 0x1c0   :  { %2876 = vmatpush.bf16.msrb.mxu0 %v4740_v38  ;;  %v4895_v38 = vld [vmem:[#allocation13 + $0x90] sm:$0xf]  ;;  %v2740_v56 = vpop.f32.mrf.mxu1 }
 0x1c4   :  { %2877 = vmatpush.bf16.msrb.mxu0 %v4724_v41  ;;  %v4896_v41 = vor.u32 %v5426_v62, %v4895_v38  ;;  %v5072_v62 = vor.u32 %v5470_v29, %v5071_v35  ;;  %v4977_v35 = vld [vmem:[#allocation13 + $0x138] sm:$0xf0] }
 0x1c5   :  { %v4980_v29 = vor.u32 %v5445_v57, %v4977_v35 }
 0x1c6   :  { %3323 = vmatpush.bf16.msra.mxu1 %v4896_v41  ;;  %v5453_v41 = vld [vmem:[#allocation13 + $0x174] sm:$0xf] }
 0x1c8   :  { %2878 = vmatpush.bf16.msrb.mxu0 %v4708_v46  ;;  %v4857_v46 = vld [vmem:[#allocation13 + $0x48] sm:$0xf0] }
 0x1c9   :  { %v4860_v47 = vor.u32 %v5415_v44, %v4857_v46  ;;  %v5012_v46 = vor.u32 %v5453_v41, %v5009_v42 }
 0x1ca   :  { %3324 = vmatpush.bf16.msra.mxu1 %v4888_v53  ;;  %v5427_v53 = vld [vmem:[#allocation13 + $0xa4] sm:$0xf] }
 0x1cb   :  { %2879 = vmatmul.bf16.vlgmr.msrb.gmra.mxu0 %v5897_v48  ;;  %v4848_v48 = vor.u32 %v5414_v43, %v4847_v63  ;;  %v5437_v63 = vld [vmem:[#allocation13 + $0xf4] sm:$0xf]  ;;  %v4945_v43 = vld [vmem:[#allocation13 + $0xf8] sm:$0xf0] }
 0x1cc   :  { %v4948_v50 = vor.u32 %v5437_v63, %v4945_v43  ;;  %3345 = vmatpush.bf16.msra.mxu0 %v5072_v62 }
 0x1cd   :  { %3307 = vmatpush.bf16.msra.mxu3 %v4848_v48  ;;  %v2670_v48 = vpop.f32.mrf.mxu3 }
 0x1ce   :  { %3373 = vmatpush.bf16.msrb.mxu1 %v4948_v50  ;;  %v2671_v36 = vadd.f32 %v2670_v48, %v2013_v21 }
 0x1d0   :  { %v2685_v44 = vadd.f32 %v5904_v59, %v2671_v36  ;;  %v4908_v59 = vor.u32 %v5427_v53, %v4905_v58 }
 0x1d1   :  { %3308 = vmatpush.bf16.msra.mxu3 %v4840_v3  ;;  %v4841_v3 = vld [vmem:[#allocation13 + $0x28] sm:$0xf0] }
 0x1d2   :  { %v4844_v4 = vor.u32 %v5411_v18, %v4841_v3  ;;  %3374 = vmatpush.bf16.msrb.mxu1 %v4940_v9  ;;  %v5425_v18 = vld [vmem:[#allocation13 + $0x94] sm:$0xf]  ;;  %v4897_v3 = vld [vmem:[#allocation13 + $0x98] sm:$0xf0] }
 0x1d3   :  { %v4900_v8 = vor.u32 %v5425_v18, %v4897_v3  ;;  %v4993_v9 = vld [vmem:[#allocation13 + $0x158] sm:$0xf0]  ;;  %v5439_v18 = vld [vmem:[#allocation13 + $0x104] sm:$0xf]  ;;  %v4953_v3 = vld [vmem:[#allocation13 + $0x108] sm:$0xf0] }
 0x1d5   :  { %3309 = vmatpush.bf16.msra.mxu3 %v4832_v13  ;;  %v4967_v13 = vld [vmem:[#allocation13 + $0x120] sm:$0xf]  ;;  %v2672_v30 = vpop.f32.mrf.mxu3 }
 0x1d6   :  { %v4968_v16 = vor.u32 %v5444_v15, %v4967_v13  ;;  %3375 = vmatpush.bf16.msrb.mxu1 %v4932_v24  ;;  %v2673_v49 = vadd.f32 %v2672_v30, %v2013_v21  ;;  %v5423_v24 = vld [vmem:[#allocation13 + $0x84] sm:$0xf]  ;;  %v4889_v21 = vld [vmem:[#allocation13 + $0x88] sm:$0xf0]  ;;  %v2742_v30 = vpop.f32.mrf.mxu1 }
 0x1d7   :  { %v4892_v55 = vor.u32 %v5423_v24, %v4889_v21 }
 0x1d8   :  { %3336 = vmatpush.bf16.msra.mxu2 %v4968_v16  ;;  %v2687_v63 = vadd.f32 %v2686_v25, %v2673_v49  ;;  %v4996_v16 = vor.u32 %v5449_v6, %v4993_v9  ;;  %v5447_v25 = vld [vmem:[#allocation13 + $0x144] sm:$0xf]  ;;  %v5441_v49 = vld [vmem:[#allocation13 + $0x114] sm:$0xf] }
 0x1d9   :  { %3310 = vmatpush.bf16.msra.mxu3 %v4824_v22  ;;  %v4836_v22 = vor.u32 %v5409_v17, %v4833_v32  ;;  %v5047_v17 = vld [vmem:[#allocation13 + $0x1c0] sm:$0xf]  ;;  %v5464_v32 = vld [vmem:[#allocation13 + $0x1c4] sm:$0xf0]  ;;  %v5469_v6 = vld [vmem:[#allocation13 + $0x1f4] sm:$0xf] }
 0x1da   :  { %v5048_v23 = vor.u32 %v5464_v32, %v5047_v17  ;;  %v5467_v32 = vld [vmem:[#allocation13 + $0x1e4] sm:$0xf] }
 0x1dd   :  { %3359 = vmatpush.bf16.msrb.mxu3 %v4884_v45  ;;  %v4959_v45 = vld [vmem:[#allocation13 + $0x110] sm:$0xf]  ;;  %v2726_v54 = vpop.f32.mrf.mxu3 }
 0x1de   :  { %v4960_v28 = vor.u32 %v5442_v26, %v4959_v45  ;;  %v4985_v45 = vld [vmem:[#allocation13 + $0x148] sm:$0xf0] }
 0x1df   :  { %v4988_v12 = vor.u32 %v5447_v25, %v4985_v45 }
 0x1e0   :  { %3337 = vmatpush.bf16.msra.mxu2 %v4960_v28 }
 0x1e1   :  { %3360 = vmatpush.bf16.msrb.mxu3 %v4876_v31  ;;  %v4921_v31 = vld [vmem:[#allocation13 + $0xc8] sm:$0xf0] }
 0x1e2   :  { %v4924_v33 = vor.u32 %v5431_v14, %v4921_v31  ;;  %v5462_v31 = vld [vmem:[#allocation13 + $0x1b4] sm:$0xf0] }
 0x1e4   :  { %3376 = vmatpush.bf16.msrb.mxu1 %v4924_v33  ;;  %3338 = vmatpush.bf16.msra.mxu2 %v4952_v37  ;;  %v2727_v33 = vadd.f32 %v2726_v54, %v2014_v19 }
 0x1e5   :  { %3361 = vmatpush.bf16.msrb.mxu3 %v4868_v40  ;;  %v4913_v40 = vld [vmem:[#allocation13 + $0xb8] sm:$0xf0]  ;;  %v2728_v14 = vpop.f32.mrf.mxu3 }
 0x1e6   :  { %v4916_v39 = vor.u32 %v5429_v51, %v4913_v40  ;;  %v5031_v51 = vld [vmem:[#allocation13 + $0x1a0] sm:$0xf]  ;;  %v5460_v40 = vld [vmem:[#allocation13 + $0x1a4] sm:$0xf0]  ;;  %v2741_v62 = vadd.f32 %v2740_v56, %v2727_v33  ;;  %v2729_v42 = vadd.f32 %v2728_v14, %v2014_v19  ;;  %v2796_v56 = vpop.f32.mrf.mxu1  ;;  %v5065_v19 = vld [vmem:[#allocation13 + $0x1e8] sm:$0xf0] }
 0x1e7   :  { %v5032_v41 = vor.u32 %v5460_v40, %v5031_v51  ;;  %v5068_v24 = vor.u32 %v5467_v32, %v5065_v19  ;;  %v5463_v33 = vld [vmem:[#allocation13 + $0x1c4] sm:$0xf]  ;;  %v5041_v51 = vld [vmem:[#allocation13 + $0x1b8] sm:$0xf0] }
 0x1e8   :  { %3377 = vmatpush.bf16.msrb.mxu1 %v4916_v39  ;;  %3387 = vmatpush.bf16.msrb.mxu2 %v5012_v46  ;;  %v4969_v39 = vld [vmem:[#allocation13 + $0x128] sm:$0xf0]  ;;  %v2977_v32 = vld [vmem:[%s5942_s8] sm:$0x3] }
 0x1e9   :  { %3362 = vmatpush.bf16.msrb.mxu3 %v4860_v47  ;;  %v5468_v47 = vld [vmem:[#allocation13 + $0x1e4] sm:$0xf0] }
 0x1ea   :  { %v5906_v5 = vpop.f32.mrf.mxu2  ;;  %v5064_v52 = vor.u32 %v5468_v47, %v5063_v10  ;;  %v5023_v10 = vld [vmem:[#allocation13 + $0x190] sm:$0xf]  ;;  %v5458_v47 = vld [vmem:[#allocation13 + $0x194] sm:$0xf0] }
 0x1eb   :  { %v2699_v27 = vadd.f32 %v5906_v5, %v2685_v44  ;;  %v5056_v5 = vor.u32 %v5466_v1, %v5055_v0  ;;  %v5024_v58 = vor.u32 %v5458_v47, %v5023_v10  ;;  %v5456_v0 = vld [vmem:[#allocation13 + $0x184] sm:$0xf0]  ;;  %v2015_v1 = vperm.slane %v5908_v11, 2  ;;  %v5025_v10 = vld [vmem:[#allocation13 + $0x198] sm:$0xf0] }
 0x1ec   :  { %3346 = vmatpush.bf16.msra.mxu0 %v5064_v52  ;;  %3378 = vmatpush.bf16.msrb.mxu1 %v4908_v59  ;;  %v2743_v52 = vadd.f32 %v2742_v30, %v2729_v42 }
 0x1ed   :  { %3363 = vmatpush.bf16.msrb.mxu3 %v4852_v61  ;;  %v5001_v61 = vld [vmem:[#allocation13 + $0x168] sm:$0xf0]  ;;  %v2782_v54 = vpop.f32.mrf.mxu3 }
 0x1ee   :  { %v5004_v50 = vor.u32 %v5451_v60, %v5001_v61  ;;  %v2783_v17 = vadd.f32 %v2782_v54, %v2015_v1  ;;  %v2798_v25 = vpop.f32.mrf.mxu1 }
 0x1f0   :  { %3388 = vmatpush.bf16.msrb.mxu2 %v5004_v50  ;;  %3347 = vmatpush.bf16.msra.mxu0 %v5056_v5  ;;  %v2797_v21 = vadd.f32 %v2796_v56, %v2783_v17 }
 0x1f1   :  { %3364 = vmatpush.bf16.msrb.mxu3 %v4844_v4  ;;  %3379 = vmatpush.bf16.msrb.mxu1 %v4900_v8 }
 0x1f2   :  { %v2700_v20 = vpop.f32.mrf.mxu2 }
 0x1f3   :  { %v2701_v2 = vadd.f32 %v2700_v20, %v2687_v63 }
 0x1f4   :  { %3389 = vmatpush.bf16.msrb.mxu2 %v4996_v16  ;;  %3348 = vmatpush.bf16.msra.mxu0 %v5048_v23 }
 0x1f5   :  { %3365 = vmatpush.bf16.msrb.mxu3 %v4836_v22  ;;  %3380 = vmatpush.bf16.msrb.mxu1 %v4892_v55 }
 0x1f8   :  { %3390 = vmatpush.bf16.msrb.mxu2 %v4988_v12  ;;  %v5057_v12 = vld [vmem:[#allocation13 + $0x1d8] sm:$0xf0] }
 0x1f9   :  { %3366 = vmatpush.bf16.msrb.mxu3 %v4828_v7  ;;  %v5039_v7 = vld [vmem:[#allocation13 + $0x1b0] sm:$0xf] }
 0x1fa   :  { %v2754_v48 = vpop.f32.mrf.mxu2  ;;  %v5040_v34 = vor.u32 %v5462_v31, %v5039_v7 }
 0x1fb   :  { %v2755_v44 = vadd.f32 %v2754_v48, %v2741_v62  ;;  %v5015_v48 = vld [vmem:[#allocation13 + $0x180] sm:$0xf] }
 0x1fc   :  { %3349 = vmatpush.bf16.msra.mxu0 %v5040_v34  ;;  %3391 = vmatpush.bf16.msrb.mxu2 %v4980_v29  ;;  %v5016_v5 = vor.u32 %v5456_v0, %v5015_v48  ;;  %v5049_v34 = vld [vmem:[#allocation13 + $0x1c8] sm:$0xf0]  ;;  %v5461_v29 = vld [vmem:[#allocation13 + $0x1b4] sm:$0xf] }
 0x1fd   :  { %v5052_v35 = vor.u32 %v5463_v33, %v5049_v34  ;;  %v5044_v62 = vor.u32 %v5461_v29, %v5041_v51 }
 0x200   :  { %3350 = vmatpush.bf16.msra.mxu0 %v5032_v41  ;;  %v5033_v41 = vld [vmem:[#allocation13 + $0x1a8] sm:$0xf0] }
 0x202   :  { %v2756_v36 = vpop.f32.mrf.mxu2 }
 0x203   :  { %v2757_v60 = vadd.f32 %v2756_v36, %v2743_v52  ;;  %v5017_v52 = vld [vmem:[#allocation13 + $0x188] sm:$0xf0] }
 0x204   :  { %3351 = vmatpush.bf16.msra.mxu0 %v5024_v58 }
 0x208   :  { %v2712_v38 = vpop.f32.mrf.mxu0  ;;  %3352 = vmatpush.bf16.msra.mxu0 %v5016_v5 }
 0x209   :  { %v2713_v43 = vadd.f32 %v2712_v38, %v2699_v27  ;;  %v5443_v38 = vld [vmem:[#allocation13 + $0x124] sm:$0xf]  ;;  %v4961_v27 = vld [vmem:[#allocation13 + $0x118] sm:$0xf0] }
 0x20a   :  { %v4972_v46 = vor.u32 %v5443_v38, %v4969_v39  ;;  %v4964_v61 = vor.u32 %v5441_v49, %v4961_v27  ;;  %v2810_v50 = vpop.f32.mrf.mxu2  ;;  %v5459_v39 = vld [vmem:[#allocation13 + $0x1a4] sm:$0xf] }
 0x20b   :  { %v2893_v13 = vmul.f32 0.2, %v2713_v43  ;;  %vm2885_vm11 = vcmp.gt.f32.partialorder %v2713_v43, 0.0  ;;  %v5455_v27 = vld [vmem:[#allocation13 + $0x184] sm:$0xf] }
 0x20c   :  { %3392 = vmatpush.bf16.msrb.mxu2 %v4972_v46  ;;  %v5457_v46 = vld [vmem:[#allocation13 + $0x194] sm:$0xf]  ;;  %v5020_v58 = vor.u32 %v5455_v27, %v5017_v52 }
 0x20d   :  { %v2901_v26 = vsel %vm2885_vm11, %v2713_v43, %v2893_v13  ;;  %v4956_v13 = vor.u32 %v5439_v18, %v4953_v3  ;;  %v5028_v49 = vor.u32 %v5457_v46, %v5025_v10 }
 0x210   :  { %v2714_v4 = vpop.f32.mrf.mxu0  ;;  %3393 = vmatpush.bf16.msrb.mxu2 %v4964_v61 }
 0x211   :  { %v2715_v15 = vadd.f32 %v2714_v4, %v2701_v2  ;;  %v5073_v4 = vld [vmem:[#allocation13 + $0x1f8] sm:$0xf0] }
 0x212   :  { %v2812_v55 = vpop.f32.mrf.mxu2 }
 0x213   :  { %vm2889_vm12 = vcmp.gt.f32.partialorder %v2715_v15, 0.0  ;;  %v2897_v22 = vmul.f32 0.2, %v2715_v15 }
 0x214   :  { %3394 = vmatpush.bf16.msrb.mxu2 %v4956_v13 }
 0x215   :  { %v2905_v28 = vsel %vm2889_vm12, %v2715_v15, %v2897_v22  ;;  %v5076_v15 = vor.u32 %v5469_v6, %v5073_v4  ;;  %v2784_v22 = vpop.f32.mrf.mxu3 }
 0x216   :  { %v5914_v20 = vpack.c.bf16 %v2905_v28, %v2901_v26  ;;  %v2785_v45 = vadd.f32 %v2784_v22, %v2015_v1  ;;  %v2811_v26 = vadd.f32 %v2810_v50, %v2797_v21  ;;  %v5465_v28 = vld [vmem:[#allocation13 + $0x1d4] sm:$0xf] }
 0x217   :  { %3401 = vmatpush.bf16.msrb.mxu0 %v5076_v15  ;;  %v5060_v7 = vor.u32 %v5465_v28, %v5057_v12  ;;  %v3427_v28 = vld [vmem:[%s5943_s9] sm:$0x3] }
 0x218   :  { %v2768_v37 = vpop.f32.mrf.mxu0  ;;  %3311 = vmatmul.bf16.vlgmr.msra.gmra.mxu3 %v5914_v20  ;;  %v2799_v14 = vadd.f32 %v2798_v25, %v2785_v45 }
 0x219   :  { %v2769_v53 = vadd.f32 %v2768_v37, %v2755_v44  ;;  %v5036_v44 = vor.u32 %v5459_v39, %v5033_v41 }
 0x21a   :  { %v2813_v31 = vadd.f32 %v2812_v55, %v2799_v14 }
 0x21b   :  { %v2894_v43 = vmul.f32 0.2, %v2769_v53  ;;  %vm2886_vm13 = vcmp.gt.f32.partialorder %v2769_v53, 0.0  ;;  %3402 = vmatpush.bf16.msrb.mxu0 %v5068_v24  ;;  %v2979_v24 = vperm.slane %v2977_v32, 0 }
 0x21d   :  { %v2902_v8 = vsel %vm2886_vm13, %v2769_v53, %v2894_v43  ;;  %v2838_v47 = vpop.f32.mrf.mxu3  ;;  %v2852_v53 = vpop.f32.mrf.mxu1 }
 0x21f   :  { %3403 = vmatpush.bf16.msrb.mxu0 %v5060_v7  ;;  %v3428_v7 = vunpack.c.l.bf16 %v3427_v28 }
 0x220   :  { %v2770_v63 = vpop.f32.mrf.mxu0 }
 0x221   :  { %v2771_v59 = vadd.f32 %v2770_v63, %v2757_v60  ;;  %v2016_v60 = vperm.slane %v5908_v11, 3 }
 0x223   :  { %vm2890_vm14 = vcmp.gt.f32.partialorder %v2771_v59, 0.0  ;;  %v2898_v2 = vmul.f32 0.2, %v2771_v59  ;;  %3404 = vmatpush.bf16.msrb.mxu0 %v5052_v35  ;;  %v2839_v61 = vadd.f32 %v2838_v47, %v2016_v60  ;;  %v3430_v35 = vperm.slane %v3428_v7, 0 }
 0x225   :  { %v2906_v9 = vsel %vm2890_vm14, %v2771_v59, %v2898_v2  ;;  %v2840_v56 = vpop.f32.mrf.mxu3  ;;  %v2853_v43 = vadd.f32 %v2852_v53, %v2839_v61  ;;  %v2854_v59 = vpop.f32.mrf.mxu1 }
 0x226   :  { %v2910_v16 = vpack.c.bf16 %v2906_v9, %v2902_v8  ;;  %v2841_v50 = vadd.f32 %v2840_v56, %v2016_v60 }
 0x227   :  { %3405 = vmatpush.bf16.msrb.mxu0 %v5044_v62 }
 0x228   :  { %v2824_v23 = vpop.f32.mrf.mxu0  ;;  %3325 = vmatmul.bf16.vlgmr.msra.gmra.mxu1 %v2910_v16  ;;  %3367 = vmatmul.bf16.vlgmr.msrb.gmra.mxu3 %v5914_v20  ;;  %v2855_v1 = vadd.f32 %v2854_v59, %v2841_v50 }
 0x229   :  { %v2825_v30 = vadd.f32 %v2824_v23, %v2811_v26  ;;  %v2980_v26 = vperm.slane %v2977_v32, 1 }
 0x22a   :  { %v2866_v54 = vpop.f32.mrf.mxu2 }
 0x22b   :  { %v2895_v36 = vmul.f32 0.2, %v2825_v30  ;;  %vm2887_vm15 = vcmp.gt.f32.partialorder %v2825_v30, 0.0  ;;  %3406 = vmatpush.bf16.msrb.mxu0 %v5036_v44  ;;  %v2867_v48 = vadd.f32 %v2866_v54, %v2853_v43 }
 0x22d   :  { %v2903_v40 = vsel %vm2887_vm15, %v2825_v30, %v2895_v36  ;;  %v3431_v36 = vperm.slane %v3428_v7, 2 }
 0x22f   :  { %3407 = vmatpush.bf16.msrb.mxu0 %v5028_v49  ;;  %v3435_v44 = vperm.slane %v3431_v36, 0 }
 0x230   :  { %v2826_v57 = vpop.f32.mrf.mxu0 }
 0x231   :  { %v2827_v20 = vadd.f32 %v2826_v57, %v2813_v31 }
 0x232   :  { %v2868_v0 = vpop.f32.mrf.mxu2 }
 0x233   :  { %vm2891_vm0 = vcmp.gt.f32.partialorder %v2827_v20, 0.0  ;;  %v2899_v37 = vmul.f32 0.2, %v2827_v20  ;;  %3408 = vmatpush.bf16.msrb.mxu0 %v5020_v58  ;;  %v2869_v5 = vadd.f32 %v2868_v0, %v2855_v1 }
 0x235   :  { %v2907_v38 = vsel %vm2891_vm0, %v2827_v20, %v2899_v37 }
 0x236   :  { %v2911_v42 = vpack.c.bf16 %v2907_v38, %v2903_v40 }
 0x238   :  { %3339 = vmatmul.bf16.vlgmr.msra.gmra.mxu2 %v2911_v42  ;;  %3381 = vmatmul.bf16.vlgmr.msrb.gmra.mxu1 %v2910_v16 }
 0x248   :  { %v2880_v63 = vpop.f32.mrf.mxu0  ;;  %3395 = vmatmul.bf16.vlgmr.msrb.gmra.mxu2 %v2911_v42  ;;  %v3434_v42 = vperm.slane %v3430_v35, 0 }
 0x249   :  { %v2881_v2 = vadd.f32 %v2880_v63, %v2867_v48 }
 0x24b   :  { %v2896_v3 = vmul.f32 0.2, %v2881_v2  ;;  %vm2888_vm1 = vcmp.gt.f32.partialorder %v2881_v2, 0.0 }
 0x24d   :  { %v2904_v11 = vsel %vm2888_vm1, %v2881_v2, %v2896_v3  ;;  %v5484_v2 = vld [vmem:[#allocation2] ss:$0 sm:$0xff] }
 0x250   :  { %v2882_v18 = vpop.f32.mrf.mxu0 }
 0x251   :  { %v2883_v6 = vadd.f32 %v2882_v18, %v2869_v5 }
 0x253   :  { %vm2892_vm2 = vcmp.gt.f32.partialorder %v2883_v6, 0.0  ;;  %v2900_v4 = vmul.f32 0.2, %v2883_v6 }
 0x255   :  { %v2908_v8 = vsel %vm2892_vm2, %v2883_v6, %v2900_v4 }
 0x256   :  { %v2912_v9 = vpack.c.bf16 %v2908_v8, %v2904_v11 }
 0x258   :  { %3353 = vmatmul.bf16.vlgmr.msra.gmra.mxu0 %v2912_v9 }
 0x268   :  { %3409 = vmatmul.bf16.vlgmr.msrb.gmra.mxu0 %v2912_v9 }
 0x29b   :  { %v3312_v13 = vpop.f32.mrf.mxu3 }
 0x29c   :  { %v3313_v21 = vadd.f32 %v3312_v13, %v2979_v24 }
 0x2a3   :  { %v3314_v17 = vpop.f32.mrf.mxu3 }
 0x2a4   :  { %v3315_v34 = vadd.f32 %v3314_v17, %v2979_v24 }
 0x2a5   :  { %v3326_v15 = vpop.f32.mrf.mxu1 }
 0x2a6   :  { %v3327_v45 = vadd.f32 %v3326_v15, %v3313_v21 }
 0x2ab   :  { %v3368_v25 = vpop.f32.mrf.mxu3 }
 0x2ac   :  { %v3369_v31 = vadd.f32 %v3368_v25, %v2980_v26 }
 0x2ad   :  { %v3328_v19 = vpop.f32.mrf.mxu1 }
 0x2ae   :  { %v3329_v20 = vadd.f32 %v3328_v19, %v3315_v34 }
 0x2b3   :  { %v3370_v37 = vpop.f32.mrf.mxu3 }
 0x2b4   :  { %v3371_v39 = vadd.f32 %v3370_v37, %v2980_v26 }
 0x2b5   :  { %v3382_v55 = vpop.f32.mrf.mxu1 }
 0x2b6   :  { %v3383_v57 = vadd.f32 %v3382_v55, %v3369_v31 }
 0x2bb   :  { %v3340_v16 = vpop.f32.mrf.mxu2 }
 0x2bc   :  { %v3341_v14 = vadd.f32 %v3340_v16, %v3327_v45 }
 0x2bd   :  { %v3384_v41 = vpop.f32.mrf.mxu1 }
 0x2be   :  { %v3385_v27 = vadd.f32 %v3384_v41, %v3371_v39 }
 0x2c3   :  { %v3342_v22 = vpop.f32.mrf.mxu2 }
 0x2c4   :  { %v3343_v38 = vadd.f32 %v3342_v22, %v3329_v20 }
 0x2cb   :  { %v3396_v30 = vpop.f32.mrf.mxu2 }
 0x2cc   :  { %v3397_v29 = vadd.f32 %v3396_v30, %v3383_v57 }
 0x2d3   :  { %v3398_v49 = vpop.f32.mrf.mxu2 }
 0x2d4   :  { %v3399_v58 = vadd.f32 %v3398_v49, %v3385_v27 }
 0x2d5   :  { %v3354_v23 = vpop.f32.mrf.mxu0 }
 0x2d6   :  { %v3355_v33 = vadd.f32 %v3354_v23, %v3341_v14 }
 0x2d8   :  { %v3419_v51 = vmul.f32 0.2, %v3355_v33  ;;  %vm3415_vm3 = vcmp.gt.f32.partialorder %v3355_v33, 0.0 }
 0x2da   :  { %v3423_v47 = vsel %vm3415_vm3, %v3355_v33, %v3419_v51 }
 0x2db   :  { %v3436_v53 = vmul.f32 %v3434_v42, %v3423_v47 }
 0x2dd   :  { %v3356_v12 = vpop.f32.mrf.mxu0 }
 0x2de   :  { %v3357_v46 = vadd.f32 %v3356_v12, %v3343_v38 }
 0x2e0   :  { %v3421_v60 = vmul.f32 0.2, %v3357_v46  ;;  %vm3417_vm5 = vcmp.gt.f32.partialorder %v3357_v46, 0.0 }
 0x2e2   :  { %v3425_v59 = vsel %vm3417_vm5, %v3357_v46, %v3421_v60 }
 0x2e3   :  { %v3438_v48 = vmul.f32 %v3434_v42, %v3425_v59 }
 0x2e5   :  { %v3410_v40 = vpop.f32.mrf.mxu0 }
 0x2e6   :  { %v3411_v62 = vadd.f32 %v3410_v40, %v3397_v29 }
 0x2e8   :  { %vm3416_vm4 = vcmp.gt.f32.partialorder %v3411_v62, 0.0  ;;  %v3420_v10 = vmul.f32 0.2, %v3411_v62 }
 0x2ea   :  { %v3424_v52 = vsel %vm3416_vm4, %v3411_v62, %v3420_v10 }
 0x2eb   :  { %v3437_v54 = vmul.f32 %v3435_v44, %v3424_v52 }
 0x2ed   :  { %v3412_v61 = vpop.f32.mrf.mxu0  ;;  %v3440_v56 = vadd.f32 %v3437_v54, %v3436_v53 }
 0x2ee   :  { %v3413_v63 = vadd.f32 %v3412_v61, %v3399_v58 }
 0x2ef   :  { %3441 = vadd.xlane.f32.xlu0 %v3440_v56 }
 0x2f0   :  { %vm3418_vm6 = vcmp.gt.f32.partialorder %v3413_v63, 0.0  ;;  %v3422_v43 = vmul.f32 0.2, %v3413_v63 }
 0x2f2   :  { %v3426_v50 = vsel %vm3418_vm6, %v3413_v63, %v3422_v43 }
 0x2f3   :  { %v3439_v0 = vmul.f32 %v3435_v44, %v3426_v50 }
 0x2f5   :  { %v3443_v1 = vadd.f32 %v3439_v0, %v3438_v48 }
 0x2f7   :  { %3444 = vadd.xlane.f32.xlu0 %v3443_v1 }
 0x362   :  { %v3442_v5 = vpop.xlane.xlu0 %3441 }
 0x363   :  { %v3450_v18 = vadd.f32 %v5484_v2, %v3442_v5 }
 0x365   :  { %v5077_v3 = vmul.f32 -1.442695, %v3450_v18 }
 0x367   :  { %5485 = vpow2.f32 %v5077_v3 }
 0x36a   :  { %v3445_v6 = vpop.xlane.xlu0 %3444 }
 0x36b   :  { %v3451_v4 = vadd.f32 %v5484_v2, %v3445_v6 }
 0x36d   :  { %v5486_v11 = vpop.eup %5485  ;;  %v5078_v8 = vmul.f32 -1.442695, %v3451_v4 }
 0x36e   :  { %v3458_v9 = vadd.f32 1.0, %v5486_v11 }
 0x36f   :  { %5487 = vpow2.f32 %v5078_v8 }
 0x370   :  { %5489 = vrcp.f32 %v3458_v9  ;;  %v3471_v19 = vand.u32 2147483648, %v3458_v9  ;;  %v3469_v23 = vand.u32 2147483647, %v3458_v9  ;;  %vm3465_vm8 = vweird.f32 %v3458_v9 }
 0x372   :  { %v3472_v25 = vor.u32 1.1754944e-38, %v3471_v19  ;;  %vm3470_vm11 = vcmp.eq.f32.partialorder %v3469_v23, 8.507059e+37 }
 0x375   :  { %v5488_v13 = vpop.eup %5487 }
 0x376   :  { %v5490_v15 = vpop.eup %5489  ;;  %v3459_v16 = vadd.f32 1.0, %v5488_v13 }
 0x377   :  { %v3461_v17 = vmul.f32 %v5490_v15, %v3458_v9  ;;  %vm3466_vm7 = vweird.f32 %v5490_v15 }
 0x378   :  { %5491 = vrcp.f32 %v3459_v16  ;;  %vm3467_vm10 = vmor %vm3465_vm8, %vm3466_vm7  ;;  %v3486_v12 = vand.u32 2147483648, %v3459_v16  ;;  %v3484_v30 = vand.u32 2147483647, %v3459_v16  ;;  %vm3480_vm13 = vweird.f32 %v3459_v16 }
 0x379   :  { %v3462_v32 = vsub.f32 1.0, %v3461_v17 }
 0x37a   :  { %v3487_v31 = vor.u32 1.1754944e-38, %v3486_v12  ;;  %vm3485_vm15 = vcmp.eq.f32.partialorder %v3484_v30, 8.507059e+37 }
 0x37b   :  { %v3463_v22 = vmul.f32 %v5490_v15, %v3462_v32 }
 0x37d   :  { %v3464_v24 = vadd.f32 %v5490_v15, %v3463_v22 }
 0x37e   :  { %v5492_v21 = vpop.eup %5491 }
 0x37f   :  { %v3468_v45 = vsel %vm3467_vm10, %v5490_v15, %v3464_v24  ;;  %v3476_v26 = vmul.f32 %v5492_v21, %v3459_v16  ;;  %vm3481_vm12 = vweird.f32 %v5492_v21 }
 0x380   :  { %v3473_v28 = vsel %vm3470_vm11, %v3472_v25, %v3468_v45  ;;  %vm3482_vm14 = vmor %vm3480_vm13, %vm3481_vm12 }
 0x381   :  { %3491 = vst.msk [vmem:[%s5945_s11] sm:$0xff] %vm3490_vm9, %v3473_v28  ;;  %v3477_v55 = vsub.f32 1.0, %v3476_v26 }
 0x383   :  { %v3478_v14 = vmul.f32 %v5492_v21, %v3477_v55 }
 0x385   :  { %v3479_v7 = vadd.f32 %v5492_v21, %v3478_v14 }
 0x387   :  { %v3483_v33 = vsel %vm3482_vm14, %v5492_v21, %v3479_v7 }
 0x388   :  { %v3488_v34 = vsel %vm3485_vm15, %v3487_v31, %v3483_v33 }
 0x389   :  { %3492 = vst.msk [vmem:[%s5945_s11 + $0x8] sm:$0xff] %vm3490_vm9, %v3488_v34 }
 0x38a   :  { %3497 = vsyncpa [#allocation4], 1 }
 0x38b   :  { %3498 = vsyncpa [#allocation6], 1 }
 0x38c   :  { %3499 = vsyncpa [#allocation9], 1 }
 0x38d   :  { %3500 = vsyncpa [#allocation12], 1 }

</bundles_post_ra>
